<compile_context>
chip_gen: v7x
topology: tpu7x:2x2x1
jax: 0.10.0
libtpu: 0.0.40
codegen_flags: <defaults>
</compile_context>

<pallas_src>
import jax
import jax.numpy as jnp
from jax import lax
from jax.experimental import pallas as pl
from jax.experimental.pallas import tpu as pltpu

N, CIN, H, W = 2, 4, 16, 16      # batch, in-channels, spatial
C1, C2 = 128, 128                # synthetic encoder widths (lane-dense on TPU)
KH = KW = 3                      # 3x3 convs, stride 1, pad 1
HW = H * W                       # 256 pixels per image (rows per grid step)
NHW = N * HW
K1 = KH * KW * CIN               # 36 (conv1 im2col depth)
PAD = 32                         # zero halo rows above/below staged f1 (aligned)
PROWS = PAD + HW + PAD           # 320 rows in the f1 staging scratch


def _backbone_kernel(p1_ref, w1_ref, b1_ref, w2_ref, b2_ref, out_ref,
                     f1p_ref, acc_ref):
    # ---- conv1 + bias + ReLU: one MXU matmul (HW, K1) x (K1, C1), f32 accum
    f1 = jnp.dot(p1_ref[...], w1_ref[...], preferred_element_type=jnp.float32)
    f1 = jnp.maximum(f1 + b1_ref[...], 0.0)                      # (HW, C1) f32

    # ---- stage f1 as bf16 in a row-padded scratch; zero pad rows == y halo
    f1p_ref[0:PAD, :] = jnp.zeros((PAD, C1), jnp.bfloat16)
    f1p_ref[PAD + HW:PROWS, :] = jnp.zeros((PAD, C1), jnp.bfloat16)
    f1p_ref[PAD:PAD + HW, :] = f1.astype(jnp.bfloat16)           # aligned store

    # ---- per-row x coordinate; masks kill rows whose shifted read wrapped
    #      across an image-row boundary (y halo handled by the zero pad rows)
    r_idx = lax.broadcasted_iota(jnp.int32, (HW, 1), 0)
    x_idx = r_idx % W
    ok_l = x_idx >= 1                 # valid destination rows for sx = -1 taps
    ok_r = x_idx <= W - 2             # valid destination rows for sx = +1 taps

    # ---- conv2 as 9 accumulated (HW, C1) x (C1, C2) MXU matmuls, one per tap
    for dy in range(KH):
        for dx in range(KW):
            t = dy * KW + dx
            sy, sx = dy - 1, dx - 1
            start = PAD + sy * W + sx                 # static, in-bounds by PAD
            lhs = f1p_ref[start:start + HW, :]        # bf16 (HW, C1) slab load
            if sx == -1:
                lhs = jnp.where(ok_l, lhs, jnp.zeros_like(lhs))
            elif sx == 1:
                lhs = jnp.where(ok_r, lhs, jnp.zeros_like(lhs))
            part = jnp.dot(lhs, w2_ref[t], preferred_element_type=jnp.float32)
            if t == 0:
                acc_ref[...] = part
            else:
                acc_ref[...] += part

    # ---- conv2 bias + ReLU, AdaptiveAvgPool2d((1,1)) + flatten
    f2 = jnp.maximum(acc_ref[...] + b2_ref[...], 0.0)            # (HW, C2) f32
    pooled = jnp.sum(f2, axis=0, keepdims=True) * (1.0 / HW)     # (1, C2)
    out_ref[...] = pooled.reshape(1, 1, C2)


@jax.jit
def backbone_forward(x_nchw, w1, b1, w2, b2):
    """x_nchw: (N, CIN, H, W) f32; conv weights in HWIO -> (N, C2) f32."""
    # conv1 im2col in the wrapper (cheap XLA glue; ~37 KB); bf16 MXU inputs
    x = jnp.transpose(x_nchw, (0, 2, 3, 1))                      # NCHW -> NHWC
    xp = jnp.pad(x, ((0, 0), (1, 1), (1, 1), (0, 0)))            # pad=1 halo
    cols = [xp[:, dy:dy + H, dx:dx + W, :]
            for dy in range(KH) for dx in range(KW)]
    p1 = jnp.concatenate(cols, axis=-1).reshape(NHW, K1).astype(jnp.bfloat16)
    w1m = w1.reshape(K1, C1).astype(jnp.bfloat16)                # tap-major rows
    w2m = w2.reshape(KH * KW, C1, C2).astype(jnp.bfloat16)       # (9, C1, C2)

    flops = 2 * (NHW * K1 * C1 + NHW * (KH * KW * C1) * C2)
    bytes_accessed = (NHW * K1 * 2 + K1 * C1 * 2 + C1 * 4
                      + KH * KW * C1 * C2 * 2 + C2 * 4 + N * C2 * 4)

    grid_spec = pltpu.PrefetchScalarGridSpec(
        num_scalar_prefetch=0,
        grid=(N,),                                   # one image per grid step
        in_specs=[
            pl.BlockSpec((HW, K1), lambda i: (i, 0)),
            pl.BlockSpec((K1, C1), lambda i: (0, 0)),
            pl.BlockSpec((1, C1), lambda i: (0, 0)),
            pl.BlockSpec((KH * KW, C1, C2), lambda i: (0, 0, 0)),
            pl.BlockSpec((1, C2), lambda i: (0, 0)),
        ],
        out_specs=pl.BlockSpec((1, 1, C2), lambda i: (i, 0, 0)),
        scratch_shapes=[
            pltpu.VMEM((PROWS, C1), jnp.bfloat16),   # padded f1 staging (80 KB)
            pltpu.VMEM((HW, C2), jnp.float32),       # conv2 f32 accumulator
        ],
    )
    out = pl.pallas_call(
        _backbone_kernel,
        out_shape=jax.ShapeDtypeStruct((N, 1, C2), jnp.float32),
        grid_spec=grid_spec,
        compiler_params=pltpu.CompilerParams(
            dimension_semantics=("parallel",),       # 2 TCs on v7x
            vmem_limit_bytes=32 * 1024 * 1024),
        cost_estimate=pl.CostEstimate(flops=flops,
                                      bytes_accessed=bytes_accessed,
                                      transcendentals=0),
    )(p1, w1m, b1, w2m, b2)
    return out.reshape(N, C2)


def _ref_forward(x_nchw, w1, b1, w2, b2):
    """Pure-JAX reference (lax convs) with the same bf16 input rounding."""
    xb = x_nchw.astype(jnp.bfloat16).astype(jnp.float32)
    w1b = w1.astype(jnp.bfloat16).astype(jnp.float32)
    w2b = w2.astype(jnp.bfloat16).astype(jnp.float32)
    x = jnp.transpose(xb, (0, 2, 3, 1))
    dn1 = lax.conv_dimension_numbers(x.shape, w1b.shape, ("NHWC", "HWIO", "NHWC"))
    f1 = lax.conv_general_dilated(x, w1b, (1, 1), "SAME", dimension_numbers=dn1)
    f1 = jnp.maximum(f1 + b1.reshape(1, 1, 1, C1), 0.0)
    f1 = f1.astype(jnp.bfloat16).astype(jnp.float32)   # kernel stages f1 as bf16
    dn2 = lax.conv_dimension_numbers(f1.shape, w2b.shape, ("NHWC", "HWIO", "NHWC"))
    f2 = lax.conv_general_dilated(f1, w2b, (1, 1), "SAME", dimension_numbers=dn2)
    f2 = jnp.maximum(f2 + b2.reshape(1, 1, 1, C2), 0.0)
    return jnp.mean(f2, axis=(1, 2))


if __name__ == "__main__":
    key = jax.random.PRNGKey(0)
    kx, k1, k2, k3, k4 = jax.random.split(key, 5)

    # deterministic synthetic parameters (HWIO conv weights + biases)
    x = jax.random.normal(kx, (N, CIN, H, W), jnp.float32)
    w1 = 0.1 * jax.random.normal(k1, (KH, KW, CIN, C1), jnp.float32)
    b1 = 0.1 * jax.random.normal(k2, (1, C1), jnp.float32)
    w2 = 0.1 * jax.random.normal(k3, (KH, KW, C1, C2), jnp.float32)
    b2 = 0.1 * jax.random.normal(k4, (1, C2), jnp.float32)

    out = jax.block_until_ready(backbone_forward(x, w1, b1, w2, b2))
    ref = jax.block_until_ready(_ref_forward(x, w1, b1, w2, b2))

    assert out.shape == (N, C2), out.shape
    max_err = float(jnp.max(jnp.abs(out - ref)))
    assert jnp.allclose(out, ref, atol=1e-2, rtol=1e-2), max_err
    print("KERNEL_OK")
</pallas_src>

<mosaic_0001>
module attributes {stable_mosaic.version = 11 : i64} {
  func.func @_backbone_kernel(%arg0: i32, %arg1: memref<256x36xbf16, #tpu.memory_space<vmem>>, %arg2: memref<36x128xbf16, #tpu.memory_space<vmem>>, %arg3: memref<1x128xf32, #tpu.memory_space<vmem>>, %arg4: memref<9x128x128xbf16, #tpu.memory_space<vmem>>, %arg5: memref<1x128xf32, #tpu.memory_space<vmem>>, %arg6: memref<1x1x128xf32, #tpu.memory_space<vmem>>, %arg7: memref<320x128xbf16, #tpu.memory_space<vmem>>, %arg8: memref<256x128xf32, #tpu.memory_space<vmem>>) attributes {dimension_semantics = [#tpu.dimension_semantics<parallel>], iteration_bounds = array<i64: 2>, scalar_prefetch = 0 : i64, scratch_operands = 2 : i64, tpu.core_type = #tpu.core_type<tc>, window_params = [{transform_indices = @transform_0, window_bounds = array<i64: 256, 36>}, {pipeline_mode = #tpu.pipeline_mode<synchronous>, transform_indices = @transform_1, window_bounds = array<i64: 36, 128>}, {pipeline_mode = #tpu.pipeline_mode<synchronous>, transform_indices = @transform_2, window_bounds = array<i64: 1, 128>}, {pipeline_mode = #tpu.pipeline_mode<synchronous>, transform_indices = @transform_3, window_bounds = array<i64: 9, 128, 128>}, {pipeline_mode = #tpu.pipeline_mode<synchronous>, transform_indices = @transform_4, window_bounds = array<i64: 1, 128>}, {transform_indices = @transform_5, window_bounds = array<i64: 1, 1, 128>}]} {
    %c0 = arith.constant 0 : index
    %c0_0 = arith.constant 0 : index
    %0 = vector.load %arg1[%c0, %c0_0] : memref<256x36xbf16, #tpu.memory_space<vmem>>, vector<256x36xbf16>
    %c0_1 = arith.constant 0 : index
    %c0_2 = arith.constant 0 : index
    %1 = vector.load %arg2[%c0_1, %c0_2] : memref<36x128xbf16, #tpu.memory_space<vmem>>, vector<36x128xbf16>
    %cst = arith.constant dense<0.000000e+00> : vector<256x128xf32>
    %2 = tpu.matmul %0, %1, %cst {dimension_numbers = #tpu.dot_dimension_numbers<[1], [0], [0], [1], [0, 0, 1, 1], [], []>} : vector<256x36xbf16>, vector<36x128xbf16>, vector<256x128xf32> -> vector<256x128xf32>
    %c0_3 = arith.constant 0 : index
    %c0_4 = arith.constant 0 : index
    %3 = vector.load %arg3[%c0_3, %c0_4] : memref<1x128xf32, #tpu.memory_space<vmem>>, vector<1x128xf32>
    %4 = vector.broadcast %3 : vector<1x128xf32> to vector<256x128xf32>
    %5 = arith.addf %2, %4 : vector<256x128xf32>
    %cst_5 = arith.constant 0.000000e+00 : f32
    %6 = vector.broadcast %cst_5 : f32 to vector<256x128xf32>
    %7 = arith.maximumf %5, %6 : vector<256x128xf32>
    %cst_6 = arith.constant 0.000000e+00 : bf16
    %8 = vector.broadcast %cst_6 : bf16 to vector<32x128xbf16>
    %c0_7 = arith.constant 0 : index
    %c0_8 = arith.constant 0 : index
    %9 = vector.load %arg7[%c0_7, %c0_8] : memref<320x128xbf16, #tpu.memory_space<vmem>>, vector<32x128xbf16>
    tpu.vector_store %arg7[%c0_7, %c0_8], %8 {strides = array<i32>} : memref<320x128xbf16, #tpu.memory_space<vmem>>, vector<32x128xbf16>,
    %cst_9 = arith.constant 0.000000e+00 : bf16
    %10 = vector.broadcast %cst_9 : bf16 to vector<32x128xbf16>
    %c288 = arith.constant 288 : index
    %c0_10 = arith.constant 0 : index
    %11 = vector.load %arg7[%c288, %c0_10] : memref<320x128xbf16, #tpu.memory_space<vmem>>, vector<32x128xbf16>
    tpu.vector_store %arg7[%c288, %c0_10], %10 {strides = array<i32>} : memref<320x128xbf16, #tpu.memory_space<vmem>>, vector<32x128xbf16>,
    %12 = arith.truncf %7 : vector<256x128xf32> to vector<256x128xbf16>
    %c32 = arith.constant 32 : index
    %c0_11 = arith.constant 0 : index
    %13 = vector.load %arg7[%c32, %c0_11] : memref<320x128xbf16, #tpu.memory_space<vmem>>, vector<256x128xbf16>
    tpu.vector_store %arg7[%c32, %c0_11], %12 {strides = array<i32>} : memref<320x128xbf16, #tpu.memory_space<vmem>>, vector<256x128xbf16>,
    %14 = tpu.iota {dimensions = array<i32: 0>} : vector<256x1xi32>
    %c16_i32 = arith.constant 16 : i32
    %c0_i32 = arith.constant 0 : i32
    %15 = arith.cmpi eq, %c16_i32, %c0_i32 : i32
    %c1_i32 = arith.constant 1 : i32
    %16 = arith.select %15, %c1_i32, %c16_i32 : i32
    %17 = vector.broadcast %16 : i32 to vector<256x1xi32>
    %18 = arith.remsi %14, %17 : vector<256x1xi32>
    %c0_i32_12 = arith.constant 0 : i32
    %19 = vector.broadcast %c0_i32_12 : i32 to vector<256x1xi32>
    %20 = arith.cmpi ne, %18, %19 : vector<256x1xi32>
    %c0_i32_13 = arith.constant 0 : i32
    %21 = vector.broadcast %c0_i32_13 : i32 to vector<256x1xi32>
    %22 = arith.cmpi slt, %18, %21 : vector<256x1xi32>
    %c0_i32_14 = arith.constant 0 : i32
    %23 = arith.cmpi slt, %16, %c0_i32_14 : i32
    %24 = vector.broadcast %23 : i1 to vector<256x1xi1>
    %25 = vector.broadcast %24 : vector<256x1xi1> to vector<256x1xi1>
    %26 = arith.xori %22, %25 : vector<256x1xi1>
    %27 = arith.andi %26, %20 : vector<256x1xi1>
    %28 = vector.broadcast %16 : i32 to vector<256x1xi32>
    %29 = arith.addi %18, %28 : vector<256x1xi32>
    %30 = arith.select %27, %29, %18 : vector<256x1xi1>, vector<256x1xi32>
    %c1_i32_15 = arith.constant 1 : i32
    %31 = vector.broadcast %c1_i32_15 : i32 to vector<256x1xi32>
    %32 = arith.cmpi sge, %30, %31 : vector<256x1xi32>
    %c14_i32 = arith.constant 14 : i32
    %33 = vector.broadcast %c14_i32 : i32 to vector<256x1xi32>
    %34 = arith.cmpi sle, %30, %33 : vector<256x1xi32>
    %c15 = arith.constant 15 : index
    %c0_16 = arith.constant 0 : index
    %35 = vector.load %arg7[%c15, %c0_16] : memref<320x128xbf16, #tpu.memory_space<vmem>>, vector<256x128xbf16>
    %cst_17 = arith.constant 0.000000e+00 : bf16
    %36 = vector.broadcast %cst_17 : bf16 to vector<256x128xbf16>
    %37 = vector.shape_cast %32 : vector<256x1xi1> to vector<256x1xi1>
    %38 = vector.broadcast %37 : vector<256x1xi1> to vector<256x128xi1>
    %39 = arith.select %38, %35, %36 : vector<256x128xi1>, vector<256x128xbf16>
    %c0_18 = arith.constant 0 : index
    %c0_19 = arith.constant 0 : index
    %c0_20 = arith.constant 0 : index
    %40 = vector.load %arg4[%c0_18, %c0_19, %c0_20] : memref<9x128x128xbf16, #tpu.memory_space<vmem>>, vector<1x128x128xbf16>
    %41 = vector.shape_cast %40 : vector<1x128x128xbf16> to vector<128x128xbf16>
    %cst_21 = arith.constant dense<0.000000e+00> : vector<256x128xf32>
    %42 = tpu.matmul %39, %41, %cst_21 {dimension_numbers = #tpu.dot_dimension_numbers<[1], [0], [0], [1], [0, 0, 1, 1], [], []>} : vector<256x128xbf16>, vector<128x128xbf16>, vector<256x128xf32> -> vector<256x128xf32>
    %c0_22 = arith.constant 0 : index
    %c0_23 = arith.constant 0 : index
    %43 = vector.load %arg8[%c0_22, %c0_23] : memref<256x128xf32, #tpu.memory_space<vmem>>, vector<256x128xf32>
    tpu.vector_store %arg8[%c0_22, %c0_23], %42 {strides = array<i32>} : memref<256x128xf32, #tpu.memory_space<vmem>>, vector<256x128xf32>,
    %c16 = arith.constant 16 : index
    %c0_24 = arith.constant 0 : index
    %44 = vector.load %arg7[%c16, %c0_24] : memref<320x128xbf16, #tpu.memory_space<vmem>>, vector<256x128xbf16>
    %c1 = arith.constant 1 : index
    %c0_25 = arith.constant 0 : index
    %c0_26 = arith.constant 0 : index
    %45 = vector.load %arg4[%c1, %c0_25, %c0_26] : memref<9x128x128xbf16, #tpu.memory_space<vmem>>, vector<1x128x128xbf16>
    %46 = vector.shape_cast %45 : vector<1x128x128xbf16> to vector<128x128xbf16>
    %cst_27 = arith.constant dense<0.000000e+00> : vector<256x128xf32>
    %47 = tpu.matmul %44, %46, %cst_27 {dimension_numbers = #tpu.dot_dimension_numbers<[1], [0], [0], [1], [0, 0, 1, 1], [], []>} : vector<256x128xbf16>, vector<128x128xbf16>, vector<256x128xf32> -> vector<256x128xf32>
    %c0_28 = arith.constant 0 : index
    %c0_29 = arith.constant 0 : index
    %48 = vector.load %arg8[%c0_28, %c0_29] : memref<256x128xf32, #tpu.memory_space<vmem>>, vector<256x128xf32>
    %49 = arith.addf %48, %47 : vector<256x128xf32>
    %c0_30 = arith.constant 0 : index
    %c0_31 = arith.constant 0 : index
    %50 = vector.load %arg8[%c0_30, %c0_31] : memref<256x128xf32, #tpu.memory_space<vmem>>, vector<256x128xf32>
    tpu.vector_store %arg8[%c0_30, %c0_31], %49 {strides = array<i32>} : memref<256x128xf32, #tpu.memory_space<vmem>>, vector<256x128xf32>,
    %c17 = arith.constant 17 : index
    %c0_32 = arith.constant 0 : index
    %51 = vector.load %arg7[%c17, %c0_32] : memref<320x128xbf16, #tpu.memory_space<vmem>>, vector<256x128xbf16>
    %cst_33 = arith.constant 0.000000e+00 : bf16
    %52 = vector.broadcast %cst_33 : bf16 to vector<256x128xbf16>
    %53 = vector.shape_cast %34 : vector<256x1xi1> to vector<256x1xi1>
    %54 = vector.broadcast %53 : vector<256x1xi1> to vector<256x128xi1>
    %55 = arith.select %54, %51, %52 : vector<256x128xi1>, vector<256x128xbf16>
    %c2 = arith.constant 2 : index
    %c0_34 = arith.constant 0 : index
    %c0_35 = arith.constant 0 : index
    %56 = vector.load %arg4[%c2, %c0_34, %c0_35] : memref<9x128x128xbf16, #tpu.memory_space<vmem>>, vector<1x128x128xbf16>
    %57 = vector.shape_cast %56 : vector<1x128x128xbf16> to vector<128x128xbf16>
    %cst_36 = arith.constant dense<0.000000e+00> : vector<256x128xf32>
    %58 = tpu.matmul %55, %57, %cst_36 {dimension_numbers = #tpu.dot_dimension_numbers<[1], [0], [0], [1], [0, 0, 1, 1], [], []>} : vector<256x128xbf16>, vector<128x128xbf16>, vector<256x128xf32> -> vector<256x128xf32>
    %c0_37 = arith.constant 0 : index
    %c0_38 = arith.constant 0 : index
    %59 = vector.load %arg8[%c0_37, %c0_38] : memref<256x128xf32, #tpu.memory_space<vmem>>, vector<256x128xf32>
    %60 = arith.addf %59, %58 : vector<256x128xf32>
    %c0_39 = arith.constant 0 : index
    %c0_40 = arith.constant 0 : index
    %61 = vector.load %arg8[%c0_39, %c0_40] : memref<256x128xf32, #tpu.memory_space<vmem>>, vector<256x128xf32>
    tpu.vector_store %arg8[%c0_39, %c0_40], %60 {strides = array<i32>} : memref<256x128xf32, #tpu.memory_space<vmem>>, vector<256x128xf32>,
    %c31 = arith.constant 31 : index
    %c0_41 = arith.constant 0 : index
    %62 = vector.load %arg7[%c31, %c0_41] : memref<320x128xbf16, #tpu.memory_space<vmem>>, vector<256x128xbf16>
    %cst_42 = arith.constant 0.000000e+00 : bf16
    %63 = vector.broadcast %cst_42 : bf16 to vector<256x128xbf16>
    %64 = vector.shape_cast %32 : vector<256x1xi1> to vector<256x1xi1>
    %65 = vector.broadcast %64 : vector<256x1xi1> to vector<256x128xi1>
    %66 = arith.select %65, %62, %63 : vector<256x128xi1>, vector<256x128xbf16>
    %c3 = arith.constant 3 : index
    %c0_43 = arith.constant 0 : index
    %c0_44 = arith.constant 0 : index
    %67 = vector.load %arg4[%c3, %c0_43, %c0_44] : memref<9x128x128xbf16, #tpu.memory_space<vmem>>, vector<1x128x128xbf16>
    %68 = vector.shape_cast %67 : vector<1x128x128xbf16> to vector<128x128xbf16>
    %cst_45 = arith.constant dense<0.000000e+00> : vector<256x128xf32>
    %69 = tpu.matmul %66, %68, %cst_45 {dimension_numbers = #tpu.dot_dimension_numbers<[1], [0], [0], [1], [0, 0, 1, 1], [], []>} : vector<256x128xbf16>, vector<128x128xbf16>, vector<256x128xf32> -> vector<256x128xf32>
    %c0_46 = arith.constant 0 : index
    %c0_47 = arith.constant 0 : index
    %70 = vector.load %arg8[%c0_46, %c0_47] : memref<256x128xf32, #tpu.memory_space<vmem>>, vector<256x128xf32>
    %71 = arith.addf %70, %69 : vector<256x128xf32>
    %c0_48 = arith.constant 0 : index
    %c0_49 = arith.constant 0 : index
    %72 = vector.load %arg8[%c0_48, %c0_49] : memref<256x128xf32, #tpu.memory_space<vmem>>, vector<256x128xf32>
    tpu.vector_store %arg8[%c0_48, %c0_49], %71 {strides = array<i32>} : memref<256x128xf32, #tpu.memory_space<vmem>>, vector<256x128xf32>,
    %c32_50 = arith.constant 32 : index
    %c0_51 = arith.constant 0 : index
    %73 = vector.load %arg7[%c32_50, %c0_51] : memref<320x128xbf16, #tpu.memory_space<vmem>>, vector<256x128xbf16>
    %c4 = arith.constant 4 : index
    %c0_52 = arith.constant 0 : index
    %c0_53 = arith.constant 0 : index
    %74 = vector.load %arg4[%c4, %c0_52, %c0_53] : memref<9x128x128xbf16, #tpu.memory_space<vmem>>, vector<1x128x128xbf16>
    %75 = vector.shape_cast %74 : vector<1x128x128xbf16> to vector<128x128xbf16>
    %cst_54 = arith.constant dense<0.000000e+00> : vector<256x128xf32>
    %76 = tpu.matmul %73, %75, %cst_54 {dimension_numbers = #tpu.dot_dimension_numbers<[1], [0], [0], [1], [0, 0, 1, 1], [], []>} : vector<256x128xbf16>, vector<128x128xbf16>, vector<256x128xf32> -> vector<256x128xf32>
    %c0_55 = arith.constant 0 : index
    %c0_56 = arith.constant 0 : index
    %77 = vector.load %arg8[%c0_55, %c0_56] : memref<256x128xf32, #tpu.memory_space<vmem>>, vector<256x128xf32>
    %78 = arith.addf %77, %76 : vector<256x128xf32>
    %c0_57 = arith.constant 0 : index
    %c0_58 = arith.constant 0 : index
    %79 = vector.load %arg8[%c0_57, %c0_58] : memref<256x128xf32, #tpu.memory_space<vmem>>, vector<256x128xf32>
    tpu.vector_store %arg8[%c0_57, %c0_58], %78 {strides = array<i32>} : memref<256x128xf32, #tpu.memory_space<vmem>>, vector<256x128xf32>,
    %c33 = arith.constant 33 : index
    %c0_59 = arith.constant 0 : index
    %80 = vector.load %arg7[%c33, %c0_59] : memref<320x128xbf16, #tpu.memory_space<vmem>>, vector<256x128xbf16>
    %cst_60 = arith.constant 0.000000e+00 : bf16
    %81 = vector.broadcast %cst_60 : bf16 to vector<256x128xbf16>
    %82 = vector.shape_cast %34 : vector<256x1xi1> to vector<256x1xi1>
    %83 = vector.broadcast %82 : vector<256x1xi1> to vector<256x128xi1>
    %84 = arith.select %83, %80, %81 : vector<256x128xi1>, vector<256x128xbf16>
    %c5 = arith.constant 5 : index
    %c0_61 = arith.constant 0 : index
    %c0_62 = arith.constant 0 : index
    %85 = vector.load %arg4[%c5, %c0_61, %c0_62] : memref<9x128x128xbf16, #tpu.memory_space<vmem>>, vector<1x128x128xbf16>
    %86 = vector.shape_cast %85 : vector<1x128x128xbf16> to vector<128x128xbf16>
    %cst_63 = arith.constant dense<0.000000e+00> : vector<256x128xf32>
    %87 = tpu.matmul %84, %86, %cst_63 {dimension_numbers = #tpu.dot_dimension_numbers<[1], [0], [0], [1], [0, 0, 1, 1], [], []>} : vector<256x128xbf16>, vector<128x128xbf16>, vector<256x128xf32> -> vector<256x128xf32>
    %c0_64 = arith.constant 0 : index
    %c0_65 = arith.constant 0 : index
    %88 = vector.load %arg8[%c0_64, %c0_65] : memref<256x128xf32, #tpu.memory_space<vmem>>, vector<256x128xf32>
    %89 = arith.addf %88, %87 : vector<256x128xf32>
    %c0_66 = arith.constant 0 : index
    %c0_67 = arith.constant 0 : index
    %90 = vector.load %arg8[%c0_66, %c0_67] : memref<256x128xf32, #tpu.memory_space<vmem>>, vector<256x128xf32>
    tpu.vector_store %arg8[%c0_66, %c0_67], %89 {strides = array<i32>} : memref<256x128xf32, #tpu.memory_space<vmem>>, vector<256x128xf32>,
    %c47 = arith.constant 47 : index
    %c0_68 = arith.constant 0 : index
    %91 = vector.load %arg7[%c47, %c0_68] : memref<320x128xbf16, #tpu.memory_space<vmem>>, vector<256x128xbf16>
    %cst_69 = arith.constant 0.000000e+00 : bf16
    %92 = vector.broadcast %cst_69 : bf16 to vector<256x128xbf16>
    %93 = vector.shape_cast %32 : vector<256x1xi1> to vector<256x1xi1>
    %94 = vector.broadcast %93 : vector<256x1xi1> to vector<256x128xi1>
    %95 = arith.select %94, %91, %92 : vector<256x128xi1>, vector<256x128xbf16>
    %c6 = arith.constant 6 : index
    %c0_70 = arith.constant 0 : index
    %c0_71 = arith.constant 0 : index
    %96 = vector.load %arg4[%c6, %c0_70, %c0_71] : memref<9x128x128xbf16, #tpu.memory_space<vmem>>, vector<1x128x128xbf16>
    %97 = vector.shape_cast %96 : vector<1x128x128xbf16> to vector<128x128xbf16>
    %cst_72 = arith.constant dense<0.000000e+00> : vector<256x128xf32>
    %98 = tpu.matmul %95, %97, %cst_72 {dimension_numbers = #tpu.dot_dimension_numbers<[1], [0], [0], [1], [0, 0, 1, 1], [], []>} : vector<256x128xbf16>, vector<128x128xbf16>, vector<256x128xf32> -> vector<256x128xf32>
    %c0_73 = arith.constant 0 : index
    %c0_74 = arith.constant 0 : index
    %99 = vector.load %arg8[%c0_73, %c0_74] : memref<256x128xf32, #tpu.memory_space<vmem>>, vector<256x128xf32>
    %100 = arith.addf %99, %98 : vector<256x128xf32>
    %c0_75 = arith.constant 0 : index
    %c0_76 = arith.constant 0 : index
    %101 = vector.load %arg8[%c0_75, %c0_76] : memref<256x128xf32, #tpu.memory_space<vmem>>, vector<256x128xf32>
    tpu.vector_store %arg8[%c0_75, %c0_76], %100 {strides = array<i32>} : memref<256x128xf32, #tpu.memory_space<vmem>>, vector<256x128xf32>,
    %c48 = arith.constant 48 : index
    %c0_77 = arith.constant 0 : index
    %102 = vector.load %arg7[%c48, %c0_77] : memref<320x128xbf16, #tpu.memory_space<vmem>>, vector<256x128xbf16>
    %c7 = arith.constant 7 : index
    %c0_78 = arith.constant 0 : index
    %c0_79 = arith.constant 0 : index
    %103 = vector.load %arg4[%c7, %c0_78, %c0_79] : memref<9x128x128xbf16, #tpu.memory_space<vmem>>, vector<1x128x128xbf16>
    %104 = vector.shape_cast %103 : vector<1x128x128xbf16> to vector<128x128xbf16>
    %cst_80 = arith.constant dense<0.000000e+00> : vector<256x128xf32>
    %105 = tpu.matmul %102, %104, %cst_80 {dimension_numbers = #tpu.dot_dimension_numbers<[1], [0], [0], [1], [0, 0, 1, 1], [], []>} : vector<256x128xbf16>, vector<128x128xbf16>, vector<256x128xf32> -> vector<256x128xf32>
    %c0_81 = arith.constant 0 : index
    %c0_82 = arith.constant 0 : index
    %106 = vector.load %arg8[%c0_81, %c0_82] : memref<256x128xf32, #tpu.memory_space<vmem>>, vector<256x128xf32>
    %107 = arith.addf %106, %105 : vector<256x128xf32>
    %c0_83 = arith.constant 0 : index
    %c0_84 = arith.constant 0 : index
    %108 = vector.load %arg8[%c0_83, %c0_84] : memref<256x128xf32, #tpu.memory_space<vmem>>, vector<256x128xf32>
    tpu.vector_store %arg8[%c0_83, %c0_84], %107 {strides = array<i32>} : memref<256x128xf32, #tpu.memory_space<vmem>>, vector<256x128xf32>,
    %c49 = arith.constant 49 : index
    %c0_85 = arith.constant 0 : index
    %109 = vector.load %arg7[%c49, %c0_85] : memref<320x128xbf16, #tpu.memory_space<vmem>>, vector<256x128xbf16>
    %cst_86 = arith.constant 0.000000e+00 : bf16
    %110 = vector.broadcast %cst_86 : bf16 to vector<256x128xbf16>
    %111 = vector.shape_cast %34 : vector<256x1xi1> to vector<256x1xi1>
    %112 = vector.broadcast %111 : vector<256x1xi1> to vector<256x128xi1>
    %113 = arith.select %112, %109, %110 : vector<256x128xi1>, vector<256x128xbf16>
    %c8 = arith.constant 8 : index
    %c0_87 = arith.constant 0 : index
    %c0_88 = arith.constant 0 : index
    %114 = vector.load %arg4[%c8, %c0_87, %c0_88] : memref<9x128x128xbf16, #tpu.memory_space<vmem>>, vector<1x128x128xbf16>
    %115 = vector.shape_cast %114 : vector<1x128x128xbf16> to vector<128x128xbf16>
    %cst_89 = arith.constant dense<0.000000e+00> : vector<256x128xf32>
    %116 = tpu.matmul %113, %115, %cst_89 {dimension_numbers = #tpu.dot_dimension_numbers<[1], [0], [0], [1], [0, 0, 1, 1], [], []>} : vector<256x128xbf16>, vector<128x128xbf16>, vector<256x128xf32> -> vector<256x128xf32>
    %c0_90 = arith.constant 0 : index
    %c0_91 = arith.constant 0 : index
    %117 = vector.load %arg8[%c0_90, %c0_91] : memref<256x128xf32, #tpu.memory_space<vmem>>, vector<256x128xf32>
    %118 = arith.addf %117, %116 : vector<256x128xf32>
    %c0_92 = arith.constant 0 : index
    %c0_93 = arith.constant 0 : index
    %119 = vector.load %arg8[%c0_92, %c0_93] : memref<256x128xf32, #tpu.memory_space<vmem>>, vector<256x128xf32>
    tpu.vector_store %arg8[%c0_92, %c0_93], %118 {strides = array<i32>} : memref<256x128xf32, #tpu.memory_space<vmem>>, vector<256x128xf32>,
    %c0_94 = arith.constant 0 : index
    %c0_95 = arith.constant 0 : index
    %120 = vector.load %arg8[%c0_94, %c0_95] : memref<256x128xf32, #tpu.memory_space<vmem>>, vector<256x128xf32>
    %c0_96 = arith.constant 0 : index
    %c0_97 = arith.constant 0 : index
    %121 = vector.load %arg5[%c0_96, %c0_97] : memref<1x128xf32, #tpu.memory_space<vmem>>, vector<1x128xf32>
    %122 = vector.broadcast %121 : vector<1x128xf32> to vector<256x128xf32>
    %123 = arith.addf %120, %122 : vector<256x128xf32>
    %cst_98 = arith.constant 0.000000e+00 : f32
    %124 = vector.broadcast %cst_98 : f32 to vector<256x128xf32>
    %125 = arith.maximumf %123, %124 : vector<256x128xf32>
    %cst_99 = arith.constant dense<0.000000e+00> : vector<128xf32>
    %126 = vector.multi_reduction <add>, %125, %cst_99 [0] : vector<256x128xf32> to vector<128xf32>
    %127 = vector.shape_cast %126 : vector<128xf32> to vector<1x128xf32>
    %cst_100 = arith.constant 3.906250e-03 : f32
    %128 = vector.broadcast %cst_100 : f32 to vector<1x128xf32>
    %129 = arith.mulf %127, %128 : vector<1x128xf32>
    %130 = vector.shape_cast %129 : vector<1x128xf32> to vector<1x1x128xf32>
    %c0_101 = arith.constant 0 : index
    %c0_102 = arith.constant 0 : index
    %c0_103 = arith.constant 0 : index
    %131 = vector.load %arg6[%c0_101, %c0_102, %c0_103] : memref<1x1x128xf32, #tpu.memory_space<vmem>>, vector<1x1x128xf32>
    tpu.vector_store %arg6[%c0_101, %c0_102, %c0_103], %130 {strides = array<i32>} : memref<1x1x128xf32, #tpu.memory_space<vmem>>, vector<1x1x128xf32>,
    return
  }
  func.func @transform_0(%arg0: i32) -> (i32, i32) {
    %c0_i32 = arith.constant 0 : i32
    %c0_i32_0 = arith.constant 0 : i32
    return %arg0, %c0_i32 : i32, i32
  }
  func.func @transform_1(%arg0: i32) -> (i32, i32) {
    %c0_i32 = arith.constant 0 : i32
    %c0_i32_0 = arith.constant 0 : i32
    %c0_i32_1 = arith.constant 0 : i32
    return %c0_i32, %c0_i32_0 : i32, i32
  }
  func.func @transform_2(%arg0: i32) -> (i32, i32) {
    %c0_i32 = arith.constant 0 : i32
    %c0_i32_0 = arith.constant 0 : i32
    %c0_i32_1 = arith.constant 0 : i32
    return %c0_i32, %c0_i32_0 : i32, i32
  }
  func.func @transform_3(%arg0: i32) -> (i32, i32, i32) {
    %c0_i32 = arith.constant 0 : i32
    %c0_i32_0 = arith.constant 0 : i32
    %c0_i32_1 = arith.constant 0 : i32
    %c0_i32_2 = arith.constant 0 : i32
    return %c0_i32, %c0_i32_0, %c0_i32_1 : i32, i32, i32
  }
  func.func @transform_4(%arg0: i32) -> (i32, i32) {
    %c0_i32 = arith.constant 0 : i32
    %c0_i32_0 = arith.constant 0 : i32
    %c0_i32_1 = arith.constant 0 : i32
    return %c0_i32, %c0_i32_0 : i32, i32
  }
  func.func @transform_5(%arg0: i32) -> (i32, i32, i32) {
    %c0_i32 = arith.constant 0 : i32
    %c0_i32_0 = arith.constant 0 : i32
    %c0_i32_1 = arith.constant 0 : i32
    return %arg0, %c0_i32, %c0_i32_0 : i32, i32, i32
  }
}

</mosaic_0001>

<bundles_post_ra>
// kernel: backbone_forward.1
= control target key start
LH: loop header
LB: loop body
LE: loop exit
PB: predicated region body
PF: predicated region fallthrough
CT: control target
= control target key end

     0   :  { %10 = vsyncpa [#allocation5], 0  ;;  %s9220_s0 = inlined_call_operand.vmem [shape: bf16[512,36], index: 0, kind: input, shape index: {}]   ;;  %s9221_s1 = inlined_call_operand.vmem [shape: bf16[36,128], index: 1, kind: input, shape index: {}]   ;;  %s9222_s2 = inlined_call_operand.vmem [shape: f32[1,128], index: 2, kind: input, shape index: {}]   ;;  %s9223_s3 = inlined_call_operand.vmem [shape: bf16[9,128,128], index: 3, kind: input, shape index: {}]   ;;  %s9224_s4 = inlined_call_operand.vmem [shape: f32[1,128], index: 4, kind: input, shape index: {}]   ;;  %s9225_s5 = inlined_call_operand.hbm [shape: f32[2,1,128], index: 5, kind: output, shape index: {}]  }
   0x1   :  { %12 = vsyncpa [#allocation5 + $0x1], 0  ;;  %s7449_s18 = smov 0   ;;  %s7451_s19 = smov 0  }
   0x2   :  { %s7453_s20 = smov 0   ;;  %s7455_s21 = smov 0  }
   0x3 LB: > { %s7470_s22 = sadd.s32 4294967295, %s7414_s21   ;;  %s5954_s23 = sadd.s32 4294967294, %s7414_s21   ;;  %s7414_s21 = sphi %s7455_s21, %s9426_s21   ;;  %s7410_s20 = sphi %s7453_s20, %s9425_s20   ;;  %s7406_s19 = sphi %s7451_s19, %s9424_s19   ;;  %s7402_s18 = sphi %s7449_s18, %s9423_s18  }
   0x4   : > { %s7474_s24 = sadd.s32 1, %s7414_s21   ;;  %s135_s25 = sadd.s32 1, %s7410_s20 }
   0x5   : > { %s132_s26 = ssub.s32 %s7414_s21, %s7474_s24  ;;  %p145_p0 = scmp.ne.s32.totalorder %s7410_s20, %s7406_s19 }
   0x6   : > { %p133_p1 = scmp.eq.s32.totalorder %s132_s26, 0  ;;  %p146_p2 = scmp.eq.s32.totalorder %s7470_s22, 1 }
   0x7   : > { %p151_p3 = scmp.ne.s32.totalorder %s7406_s19, %s7402_s18  ;;  %p152_p4 = scmp.eq.s32.totalorder %s5954_s23, 1 }
   0x8   : > { %s7485_s27 = scalar_select %p133_p1, %s7410_s20, %s135_s25  }
   0x9   : > { %p7487_p5 = por %p146_p2, %p145_p0  ;;  %p7491_p6 = por %p152_p4, %p151_p3 }
   0xa   : > { %p5957_p7 = scmp.ge.s32.totalorder %s7414_s21, 1  ;;  %p191_p8 = scmp.lt.s32.totalorder %s7414_s21, 3 }
   0xc   : > { %p192_p9 = pnand %p5957_p7, %p191_p8 }
   0xe   : > { %195 = sbr.rel (%p192_p9) target bundleno = 831 (0x33f), region = 40 }
  0x15   : > { %v7251_v0 = vld [vmem:[%s9221_s1] sm:$0xff]   ;;  %v7252_v1 = vld [vmem:[%s9221_s1 + $0x8] sm:$0xff]   ;;  %s5958_s9 = sshll.u32 %s7470_s22, 5  ;;  %v7253_v2 = vld [vmem:[%s9221_s1 + $0x10] ss:$0 sps:$4 sm:$0x33]   ;;  %v648_v27 = vlaneseq }
  0x16   : > { %6467 = vmatprep.subr.bf16.mxu0 %v7251_v0  ;;  %p219_p10 = scmp.lt.s32.totalorder %s5958_s9, 63  ;;  %vm415_vm0 = vcmask 1041408   ;;  %vm366_vm1 = vcmask 293888   ;;  %v7270_v3 = vld [vmem:[%s9223_s3] sm:$0xff]   ;;  %v7271_v8 = vld [vmem:[%s9223_s3 + $0x8] sm:$0xff]   ;;  %v7272_v9 = vld [vmem:[%s9223_s3 + $0x10] sm:$0xff]  }
  0x17   : > { %6468 = vmatpush3.bf16.msra.mxu0 %v7251_v0  ;;  %v417_v4 = vsel %vm415_vm0, %v7253_v2, 0  ;;  %v7273_v12 = vld [vmem:[%s9223_s3 + $0x18] sm:$0xff]   ;;  %v7274_v14 = vld [vmem:[%s9223_s3 + $0x20] sm:$0xff]   ;;  %v7276_v17 = vld [vmem:[%s9223_s3 + $0x108] sm:$0xff]   ;;  %v7565_v28 = vshrl.u32 %v648_v27, 7  ;;  %v7416_v34 = vmov 0  }
  0x18   : > { %6469 = vmatprep.subr.bf16.mxu0 %v7252_v1  ;;  %s9428_s9 = smov (!%p219_p10, %s5958_s9), 63  ;;  %v7275_v16 = vld [vmem:[%s9223_s3 + $0x100] sm:$0xff]   ;;  %v7278_v29 = vld [vmem:[%s9223_s3 + $0x110] sm:$0xff]   ;;  %v7279_v33 = vld [vmem:[%s9223_s3 + $0x118] sm:$0xff]   ;;  %612 = vst [vmem:[#allocation2] sm:$0xff] %v7416_v34  ;;  %vm7417_vm5 = vmmov 1  }
  0x19   : > { %s5959_s12 = sshll.u32 %s9428_s9, 2  ;;  %6937 = vmatprep.subr.bf16.mxu1 %v7275_v16  ;;  %v651_v30 = vadd.s32 16, %v7565_v28  ;;  %v685_v31 = vand.u32 15, %v7565_v28  ;;  %613 = vst [vmem:[#allocation2 + $0x8] sm:$0xff] %v7416_v34  ;;  %vm1211_vm6 = vmpackc.low %vm7417_vm5, %vm7417_vm5  ;;  %v7281_v39 = vld [vmem:[%s9223_s3 + $0x120] sm:$0xff]   ;;  %v7277_v44 = vld [vmem:[%s9223_s3 + $0x28] sm:$0xff]  }
  0x1a   : > { %s7510_s15 = scalar_lea.vmem %s9220_s0, %s5959_s12  ;;  %6945 = vmatpush3.bf16.msra.mxu1 %v7275_v16  ;;  %614 = vst [vmem:[#allocation2 + $0x90] sm:$0xff] %v7416_v34  ;;  %615 = vst [vmem:[#allocation2 + $0x98] sm:$0xff] %v7416_v34  ;;  %v7581_v36 = vsel %vm1211_vm6, 65537, %v7416_v34  ;;  %v7282_v47 = vld [vmem:[%s9223_s3 + $0x128] sm:$0xff]   ;;  %vm1322_vm8 = vsmask.f32 7424 }
  0x1b   : > { %6470 = vmatpush3.bf16.msra.mxu0 %v7252_v1  ;;  %v7254_v5 = vld [vmem:[%s7510_s15] sm:$0xff]   ;;  %v7255_v6 = vld [vmem:[%s7510_s15 + $0x8] sm:$0xff]   ;;  %v7256_v7 = vld [vmem:[%s7510_s15 + $0x10] sm:$0xff]   ;;  %6938 = vmatprep.subr.bf16.mxu1 %v7276_v17  ;;  %v699_v32 = vand.u32 15, %v651_v30  ;;  %vm1065_vm2 = vcmp.ge.s32.totalorder %v685_v31, 1  ;;  %v7620_v59 = vrot.slane %v7416_v34, 7 }
  0x1c   : > { %7209 = vmatprep.subr.msk.bf16.mxu0 %vm415_vm0, %v7253_v2  ;;  %6473 = vmatprep.mubr.msk.bf16.mxu0 %vm366_vm1, %v7254_v5  ;;  %v7257_v10 = vld [vmem:[%s7510_s15 + $0x18] sm:$0xff]   ;;  %v7258_v11 = vld [vmem:[%s7510_s15 + $0x20] sm:$0xff]   ;;  %v7259_v13 = vld [vmem:[%s7510_s15 + $0x28] sm:$0xff]   ;;  %vm1500_vm11 = vsmask.f32 256  ;;  %v653_v0 = vadd.s32 32, %v7565_v28 }
  0x1d   : > { %v7260_v15 = vld [vmem:[%s7510_s15 + $0x30] sm:$0xff]   ;;  %v7261_v18 = vld [vmem:[%s7510_s15 + $0x38] sm:$0xff]   ;;  %v7262_v19 = vld [vmem:[%s7510_s15 + $0x40] sm:$0xff]   ;;  %vm1067_vm3 = vcmp.ge.s32.totalorder %v699_v32, 1  ;;  %v655_v1 = vadd.s32 48, %v7565_v28  ;;  %v657_v2 = vadd.s32 64, %v7565_v28 }
  0x1e   : > { %6946 = vmatpush3.bf16.msra.mxu1 %v7276_v17  ;;  %v7263_v20 = vld [vmem:[%s7510_s15 + $0x48] sm:$0xff]   ;;  %v7264_v21 = vld [vmem:[%s7510_s15 + $0x50] sm:$0xff]   ;;  %v7265_v22 = vld [vmem:[%s7510_s15 + $0x58] sm:$0xff]   ;;  %v650_v16 = vadd.s32 8, %v7565_v28  ;;  %v654_v31 = vadd.s32 40, %v7565_v28  ;;  %s216_s26 = sand.u32 1, %s7406_s19  }
  0x1f   : > { %6472 = vmatpush3.bf16.msra.mxu0 %v417_v4  ;;  %v7266_v23 = vld [vmem:[%s7510_s15 + $0x60] sm:$0xff]   ;;  %v7267_v24 = vld [vmem:[%s7510_s15 + $0x68] sm:$0xff]   ;;  %v7268_v25 = vld [vmem:[%s7510_s15 + $0x70] sm:$0xff]   ;;  %6939 = vmatprep.subr.bf16.mxu1 %v7278_v29  ;;  %v727_v4 = vand.u32 15, %v655_v1  ;;  %v741_v5 = vand.u32 15, %v657_v2  ;;  %v673_v1 = vadd.s32 192, %v7565_v28 }
  0x20   : > { %6505 = vmatprep.subr.bf16.mxu0 %v7270_v3  ;;  %v7269_v26 = vld [vmem:[%s7510_s15 + $0x78] sm:$0xff]   ;;  %vm1210_vm4 = vmpackc.low %vm1065_vm2, %vm1065_vm2  ;;  %v7280_v51 = vld [vmem:[%s9223_s3 + $0x30] sm:$0xff]   ;;  %s6229_s30 = sshll.u32 %s7470_s22, 4  ;;  %s217_s6 = scalar_lea.vmem [#allocation4], %s216_s26 }
  0x21   : > { %v1242_v35 = vsel %vm1210_vm4, 65537, %v7416_v34  ;;  %vm1212_vm7 = vmpackc.low %vm1067_vm3, %vm1067_vm3  ;;  %v7284_v53 = vld [vmem:[%s9223_s3 + $0x130] sm:$0xff]   ;;  %v1129_v54 = vld [vmem:[#allocation2] sm:$0x80]  ;;  %vm1071_vm13 = vcmp.ge.s32.totalorder %v727_v4, 1  ;;  %vm1073_vm15 = vcmp.ge.s32.totalorder %v741_v5, 1  ;;  %s9178_s10 = scalar_lea.hbm %s9225_s5, %s6229_s30 }
  0x22   : > { %6474 = vmatmul.mubr.msk.bf16.vlgmr.msra.gmra.mrb[0].mxu0 %vm366_vm1, %v7255_v6  ;;  %6947 = vmatpush3.bf16.msra.mxu1 %v7278_v29  ;;  %v1244_v37 = vsel %vm1212_vm7, 65537, %v7416_v34  ;;  %v5996_v38 = vcombine.low %v1242_v35, %v7581_v36  ;;  %v7283_v56 = vld [vmem:[%s9223_s3 + $0x38] sm:$0xff]   ;;  %v7627_v62 = vld [vmem:[%s9223_s3 + $0x40] sm:$0xff]   ;;  %v659_v6 = vadd.s32 80, %v7565_v28  ;;  %vm1216_vm0 = vmpackc.low %vm1071_vm13, %vm1071_vm13  ;;  %s5899_s7 = sshll.u32 %s217_s6, 4  ;;  %s5887_s11 = scalar_lea.sflag [#allocation5], %s216_s26  ;;  %s9180_s7 = int_to_ptr.vmem [resolvable:$true] %s5899_s7 }
  0x23   : > { %6477 = vmatprep.mubr.msk.bf16.mxu0 %vm366_vm1, %v7256_v7  ;;  %6506 = vmatpush3.bf16.msra.mxu0 %v7270_v3  ;;  %v5997_v40 = vcombine.low %v1244_v37, %v7581_v36  ;;  %v7285_v58 = vld [vmem:[%s9223_s3 + $0x138] sm:$0xff]   ;;  %v7633_v63 = vld [vmem:[%s9223_s3 + $0x140] sm:$0xff]   ;;  %v713_v3 = vand.u32 15, %v653_v0  ;;  %v667_v37 = vadd.s32 144, %v7565_v28  ;;  %s7352_s12 = scalar_lea.vmem %s9180_s7, 16  ;;  %s7418_s22 = smov [#allocation4]  }
  0x24   : > { %6507 = vmatprep.subr.bf16.mxu0 %v7271_v8  ;;  %6940 = vmatprep.subr.bf16.mxu1 %v7279_v33  ;;  %v1324_v41 = vshll.u32 %v5996_v38, 16  ;;  %v1327_v42 = vshrl.u32 %v5996_v38, 16  ;;  %v755_v7 = vand.u32 15, %v659_v6  ;;  %p7353_p11 = scmp.ne.s32.totalorder %s9180_s7, %s7352_s12  ;;  %s7356_s13 = sshll.u32 %s7418_s22, 4  ;;  %s7357_s13 = int_to_ptr.vmem [resolvable:$false] %s7356_s13 }
  0x25   : > { %v1331_v43 = vshll.u32 %v5997_v40, 16  ;;  %v1335_v46 = vshrl.u32 %v5997_v40, 16  ;;  %vm1069_vm12 = vcmp.ge.s32.totalorder %v713_v3, 1  ;;  %s7358_s14 = scalar_lea.vmem %s7357_s13, 32  ;;  %p7359_p0 = scmp.lt.s32.totalorder %s9180_s7, %s7357_s13 }
  0x26   : > { %6948 = vmatpush3.bf16.msra.mxu1 %v7279_v33  ;;  %v7592_v45 = vrot.slane %v1324_v41, 1  ;;  %vm1214_vm14 = vmpackc.low %vm1069_vm12, %vm1069_vm12  ;;  %vm1075_vm2 = vcmp.ge.s32.totalorder %v755_v7, 1  ;;  %v679_v33 = vadd.s32 240, %v7565_v28  ;;  %p7354_p12 = pnand %p7353_p11, %p7487_p5  ;;  %p7360_p1 = scmp.lt.s32.totalorder %s7358_s14, %s7352_s12 }
  0x27   : > { %6508 = vmatpush3.bf16.msra.mxu0 %v7271_v8  ;;  %6941 = vmatprep.subr.bf16.mxu1 %v7281_v39  ;;  %v1333_v48 = vrot.slane %v1331_v43, 1  ;;  %v661_v8 = vadd.s32 96, %v7565_v28  ;;  %vm1220_vm3 = vmpackc.low %vm1075_vm2, %vm1075_vm2 }
  0x28   : > { %6509 = vmatprep.subr.bf16.mxu0 %v7272_v9  ;;  %v1329_v49 = vor.u32 %v1327_v42, %v7592_v45  ;;  %vm1450_vm10 = vcmp.ne.s16.totalorder %v7592_v45, 0  ;;  %p7355_p13 = pneg %p7354_p12  ;;  %p7361_p2 = por %p7360_p1, %p7359_p0 }
  0x29   : > { %v7598_v50 = vor.u32 %v1335_v46, %v1333_v48  ;;  %v1467_v55 = vsel %vm1450_vm10, %v1129_v54, 0 }
  0x2a   : > { %6478 = vmatmul.mubr.msk.bf16.gmra.mrb[4].mxu0 %vm366_vm1, %v7257_v10  ;;  %6949 = vmatpush3.bf16.msra.mxu1 %v7281_v39  ;;  %v7604_v52 = vsel %vm1322_vm8, %v1329_v49, %v1333_v48  ;;  %v1502_v57 = vshrl.u32 %v1467_v55, 16  ;;  %v1248_v10 = vsel %vm1216_vm0, 65537, %v7416_v34  ;;  %v811_v55 = vand.u32 15, %v667_v37  ;;  %p7362_p3 = pnand %p7361_p2, %p7355_p13 }
  0x2b   : > { %6481 = vmatprep.mubr.msk.bf16.mxu0 %vm366_vm1, %v7258_v11  ;;  %6510 = vmatpush3.bf16.msra.mxu0 %v7272_v9  ;;  %9279 = vst [vmem:[#allocation7_spill] sm:$0xff] %v7604_v52  ;;  %vm1451_vm9 = vcmp.ne.s16.totalorder %v7604_v52, 0  ;;  %v1246_v9 = vsel %vm1214_vm14, 65537, %v7416_v34  ;;  %v769_v11 = vand.u32 15, %v661_v8  ;;  %v656_v8 = vadd.s32 56, %v7565_v28 }
  0x2c   : > { %6511 = vmatprep.subr.bf16.mxu0 %v7273_v12  ;;  %6942 = vmatprep.subr.bf16.mxu1 %v7282_v47  ;;  %v1504_v60 = vrot.slane %v1502_v57, 7 }
  0x2d   : > { %vm7649_vm4 = vcmp.ge.s32.totalorder %v769_v11, 1 }
  0x2e   : > { %6950 = vmatpush3.bf16.msra.mxu1 %v7282_v47  ;;  %v1512_v61 = vsel %vm1500_vm11, %v1504_v60, %v7620_v59  ;;  %vm1222_vm5 = vmpackc.low %vm7649_vm4, %vm7649_vm4  ;;  %vm7708_vm4 = vcmp.ge.s32.totalorder %v811_v55, 1 }
  0x2f   : > { %6512 = vmatpush3.bf16.msra.mxu0 %v7273_v12  ;;  %6943 = vmatprep.subr.bf16.mxu1 %v7284_v53  ;;  %v1254_v41 = vsel %vm1222_vm5, 65537, %v7416_v34 }
  0x30   : > { %6513 = vmatprep.subr.bf16.mxu0 %v7274_v14 }
  0x32   : > { %6482 = vmatmul.mubr.msk.bf16.gmra.mrb[8].mxu0 %vm366_vm1, %v7259_v13  ;;  %6951 = vmatpush3.bf16.msra.mxu1 %v7284_v53  ;;  %v663_v13 = vadd.s32 112, %v7565_v28  ;;  %v6002_v53 = vcombine.low %v1254_v41, %v7581_v36 }
  0x33   : > { %6485 = vmatprep.mubr.msk.bf16.mxu0 %vm366_vm1, %v7260_v15  ;;  %6514 = vmatpush3.bf16.msra.mxu0 %v7274_v14  ;;  %v5998_v14 = vcombine.low %v1246_v9, %v7581_v36  ;;  %v5999_v15 = vcombine.low %v1248_v10, %v7581_v36 }
  0x34   : > { %6515 = vmatprep.subr.bf16.mxu0 %v7277_v44  ;;  %6944 = vmatprep.subr.bf16.mxu1 %v7285_v58  ;;  %v1371_v5 = vshll.u32 %v6002_v53, 16 }
  0x35   : > { %v1343_v32 = vshrl.u32 %v5998_v14, 16  ;;  %v1351_v40 = vshrl.u32 %v5999_v15, 16 }
  0x36   : > { %6952 = vmatpush3.bf16.msra.mxu1 %v7285_v58 }
  0x37   : > { %6516 = vmatpush3.bf16.msra.mxu0 %v7277_v44  ;;  %6745 = vmatprep.subr.bf16.mxu1 %v7633_v63  ;;  %v671_v44 = vadd.s32 176, %v7565_v28 }
  0x38   : > { %6517 = vmatprep.subr.bf16.mxu0 %v7280_v51 }
  0x39   : > { %v839_v0 = vand.u32 15, %v671_v44 }
  0x3a   : > { %6486 = vmatmul.mubr.msk.bf16.gmra.mrb[12].mxu0 %vm366_vm1, %v7261_v18 }
  0x3b   : > { %6489 = vmatprep.mubr.msk.bf16.mxu0 %vm366_vm1, %v7262_v19  ;;  %6518 = vmatpush3.bf16.msra.mxu0 %v7280_v51  ;;  %v652_v19 = vadd.s32 24, %v7565_v28  ;;  %v720_v51 = vand.u32 15, %v654_v31 }
  0x3c   : > { %6519 = vmatprep.subr.bf16.mxu0 %v7283_v56 }
  0x3d   : > { %v706_v30 = vand.u32 15, %v652_v19  ;;  %v1375_v19 = vshrl.u32 %v6002_v53, 16  ;;  %v895_v53 = vand.u32 15, %v679_v33 }
  0x3f   : > { %6520 = vmatpush3.bf16.msra.mxu0 %v7283_v56  ;;  %vm7676_vm13 = vcmp.le.s32.totalorder %v706_v30, 14 }
  0x40   : > { %6553 = vmatprep.subr.bf16.mxu0 %v7627_v62 }
  0x42   : > { %6490 = vmatmul.mubr.msk.bf16.gmra.mrb[16].mxu0 %vm366_vm1, %v7263_v20  ;;  %v1252_v20 = vsel %vm1220_vm3, 65537, %v7416_v34  ;;  %vm7704_vm3 = vcmp.le.s32.totalorder %v720_v51, 14 }
  0x43   : > { %6493 = vmatprep.mubr.msk.bf16.mxu0 %vm366_vm1, %v7264_v21  ;;  %v783_v21 = vand.u32 15, %v663_v13  ;;  %v6001_v29 = vcombine.low %v1252_v20, %v7581_v36 }
  0x45   : > { %vm7662_vm6 = vcmp.ge.s32.totalorder %v783_v21, 1  ;;  %v1363_v48 = vshll.u32 %v6001_v29, 16  ;;  %v1367_v3 = vshrl.u32 %v6001_v29, 16  ;;  %v1373_v21 = vrot.slane %v1371_v5, 1 }
  0x46   : > { %vm1224_vm12 = vmpackc.low %vm7662_vm6, %vm7662_vm6  ;;  %vm7726_vm6 = vcmp.ge.s32.totalorder %v839_v0, 1 }
  0x47   : > { %v1256_v60 = vsel %vm1224_vm12, 65537, %v7416_v34  ;;  %v1365_v2 = vrot.slane %v1363_v48, 1  ;;  %vm1228_vm12 = vmpackc.low %vm7708_vm4, %vm7708_vm4  ;;  %v1377_v44 = vor.u32 %v1375_v19, %v1373_v21  ;;  %v658_v48 = vadd.s32 72, %v7565_v28 }
  0x48   : > { %v6003_v11 = vcombine.low %v1256_v60, %v7581_v36  ;;  %v1260_v30 = vsel %vm1228_vm12, 65537, %v7416_v34 }
  0x49   : > { %v1369_v18 = vor.u32 %v1367_v3, %v1365_v2  ;;  %v748_v5 = vand.u32 15, %v658_v48 }
  0x4a   : > { %6494 = vmatmul.mubr.msk.bf16.gmra.mrb[20].mxu0 %vm366_vm1, %v7265_v22  ;;  %v665_v22 = vadd.s32 128, %v7565_v28  ;;  %v1383_v49 = vshrl.u32 %v6003_v11, 16 }
  0x4b   : > { %6497 = vmatprep.mubr.msk.bf16.mxu0 %vm366_vm1, %v7266_v23  ;;  %v1339_v23 = vshll.u32 %v5998_v14, 16  ;;  %vm7809_vm12 = vcmp.le.s32.totalorder %v748_v5, 14 }
  0x4c   : > { %v797_v35 = vand.u32 15, %v665_v22 }
  0x4d   : > { %v1341_v38 = vrot.slane %v1339_v23, 1  ;;  %v677_v23 = vadd.s32 224, %v7565_v28 }
  0x4e   : > { %vm7681_vm14 = vcmp.ge.s32.totalorder %v797_v35, 1  ;;  %v7758_v35 = vsel %vm1322_vm8, %v1369_v18, %v1373_v21 }
  0x4f   : > { %v7687_v56 = vsel %vm1322_vm8, %v7598_v50, %v1341_v38  ;;  %v1345_v57 = vor.u32 %v1343_v32, %v1341_v38  ;;  %vm1226_vm2 = vmpackc.low %vm7681_vm14, %vm7681_vm14  ;;  %v881_v41 = vand.u32 15, %v677_v23 }
  0x50   : > { %v1258_v13 = vsel %vm1226_vm2, 65537, %v7416_v34 }
  0x52   : > { %6498 = vmatmul.mubr.msk.bf16.gmra.mrb[24].mxu0 %vm366_vm1, %v7267_v24  ;;  %v1347_v24 = vshll.u32 %v5999_v15, 16  ;;  %v853_v15 = vand.u32 15, %v673_v1  ;;  %v662_v1 = vadd.s32 104, %v7565_v28 }
  0x53   : > { %6501 = vmatprep.mubr.msk.bf16.mxu0 %vm366_vm1, %v7268_v25  ;;  %v669_v25 = vadd.s32 160, %v7565_v28 }
  0x54   : > { %v1349_v39 = vrot.slane %v1347_v24, 1  ;;  %v734_v24 = vand.u32 15, %v656_v8  ;;  %vm7752_vm14 = vcmp.ge.s32.totalorder %v853_v15, 1 }
  0x55   : > { %v825_v43 = vand.u32 15, %v669_v25  ;;  %v1379_v25 = vshll.u32 %v6003_v11, 16 }
  0x56   : > { %v1353_v58 = vor.u32 %v1351_v40, %v1349_v39  ;;  %v7715_v9 = vsel %vm1322_vm8, %v1345_v57, %v1349_v39 }
  0x57   : > { %vm7693_vm0 = vcmp.ge.s32.totalorder %v825_v43, 1  ;;  %v1381_v55 = vrot.slane %v1379_v25, 1 }
  0x58   : > { %vm1230_vm5 = vmpackc.low %vm7693_vm0, %vm7693_vm0 }
  0x59   : > { %v1262_v22 = vsel %vm1230_vm5, 65537, %v7416_v34  ;;  %vm1234_vm0 = vmpackc.low %vm7752_vm14, %vm7752_vm14  ;;  %v1385_v6 = vor.u32 %v1383_v49, %v1381_v55  ;;  %vm7792_vm5 = vcmp.ge.s32.totalorder %v895_v53, 1  ;;  %v7814_v25 = vsel %vm1322_vm8, %v1377_v44, %v1381_v55 }
  0x5a   : > { %6502 = vmatmul.mubr.msk.bf16.gmra.mrb[28].mxu0 %vm366_vm1, %v7269_v26  ;;  %vm1218_vm1 = vmpackc.low %vm1073_vm15, %vm1073_vm15  ;;  %v692_v26 = vand.u32 15, %v650_v16  ;;  %v675_v16 = vadd.s32 208, %v7565_v28  ;;  %v6006_v37 = vcombine.low %v1262_v22, %v7581_v36  ;;  %v1266_v0 = vsel %vm1234_vm0, 65537, %v7416_v34 }
  0x5b   : > { %6521 = vmatprep.mubr.bf16.mxu0 %v1512_v61  ;;  %v1250_v12 = vsel %vm1218_vm1, 65537, %v7416_v34  ;;  %vm2312_vm1 = vmpackc.low %vm7676_vm13, %vm7676_vm13  ;;  %v6008_v15 = vcombine.low %v1266_v0, %v7581_v36  ;;  %vm1453_vm14 = vcmp.ne.s16.totalorder %v7715_v9, 0 }
  0x5c   : > { %v6000_v17 = vcombine.low %v1250_v12, %v7581_v36  ;;  %vm7669_vm7 = vcmp.le.s32.totalorder %v692_v26, 14  ;;  %v2344_v12 = vsel %vm2312_vm1, 65537, %v7416_v34  ;;  %v6004_v26 = vcombine.low %v1258_v13, %v7581_v36  ;;  %vm1232_vm13 = vmpackc.low %vm7726_vm6, %vm7726_vm6 }
  0x5d   : > { %vm2310_vm15 = vmpackc.low %vm7669_vm7, %vm7669_vm7  ;;  %v867_v32 = vand.u32 15, %v675_v16  ;;  %v1264_v40 = vsel %vm1232_vm13, 65537, %v7416_v34  ;;  %v1403_v61 = vshll.u32 %v6006_v37, 16  ;;  %v1407_v13 = vshrl.u32 %v6006_v37, 16 }
  0x5e   : > { %v1355_v27 = vshll.u32 %v6000_v17, 16  ;;  %v1359_v42 = vshrl.u32 %v6000_v17, 16  ;;  %v2342_v7 = vsel %vm2310_vm15, 65537, %v7416_v34  ;;  %vm2314_vm7 = vmpackc.low %vm7704_vm3, %vm7704_vm3  ;;  %vm7765_vm15 = vcmp.le.s32.totalorder %v734_v24, 14 }
  0x5f   : > { %v7741_v20 = vcombine.low %v7581_v36, %v2342_v7  ;;  %v2346_v29 = vsel %vm2314_vm7, 65537, %v7416_v34  ;;  %v1387_v46 = vshll.u32 %v6004_v26, 16  ;;  %vm7774_vm1 = vcmp.ge.s32.totalorder %v867_v32, 1  ;;  %vm2316_vm2 = vmpackc.low %vm7765_vm15, %vm7765_vm15 }
  0x60   : > { %v1357_v47 = vrot.slane %v1355_v27, 1  ;;  %v6045_v27 = vcombine.low %v7581_v36, %v2344_v12  ;;  %v1391_v57 = vshrl.u32 %v6004_v26, 16  ;;  %vm7785_vm3 = vcmp.ge.s32.totalorder %v881_v41, 1  ;;  %vm1236_vm4 = vmpackc.low %vm7774_vm1, %vm7774_vm1 }
  0x61   : > { %v2422_v38 = vshrl.u32 %v7741_v20, 16  ;;  %v2425_v39 = vshll.u32 %v7741_v20, 16  ;;  %v2348_v11 = vsel %vm2316_vm2, 65537, %v7416_v34  ;;  %vm1238_vm6 = vmpackc.low %vm7785_vm3, %vm7785_vm3  ;;  %v1405_v16 = vrot.slane %v1403_v61, 1 }
  0x62   : > { %v1361_v50 = vor.u32 %v1359_v42, %v1357_v47  ;;  %v7718_v10 = vsel %vm1322_vm8, %v1353_v58, %v1357_v47  ;;  %v6046_v42 = vcombine.low %v7581_v36, %v2346_v29  ;;  %v6005_v47 = vcombine.low %v1260_v30, %v7581_v36  ;;  %vm1240_vm7 = vmpackc.low %vm7792_vm5, %vm7792_vm5 }
  0x63   : > { %v2429_v54 = vshrl.u32 %v6045_v27, 16  ;;  %v7779_v58 = vcombine.low %v1264_v40, %v7581_v36  ;;  %v2424_v60 = vrot.slane %v2422_v38, 7  ;;  %v2432_v4 = vshll.u32 %v6045_v27, 16  ;;  %vm2318_vm13 = vmpackc.low %vm7809_vm12, %vm7809_vm12 }
  0x64   : > { %v7735_v17 = vsel %vm1322_vm8, %v1361_v50, %v1365_v2  ;;  %v2437_v50 = vshrl.u32 %v6046_v42, 16  ;;  %v1389_v2 = vrot.slane %v1387_v46, 1  ;;  %v1395_v3 = vshll.u32 %v6005_v47, 16  ;;  %v7838_v46 = vld [vmem:[%s9222_s2] ss:$0 sm:$0xff] }
  0x65   : > { %v2431_v8 = vrot.slane %v2429_v54, 7  ;;  %v1399_v12 = vshrl.u32 %v6005_v47, 16  ;;  %v1411_v14 = vshll.u32 %v7779_v58, 16  ;;  %v1268_v18 = vsel %vm1236_vm4, 65537, %v7416_v34 }
  0x66   : > { %v7803_v19 = vrot.slane %v2437_v50, 7  ;;  %v2440_v20 = vshll.u32 %v6046_v42, 16  ;;  %v1393_v21 = vor.u32 %v1391_v57, %v1389_v2  ;;  %v1397_v22 = vrot.slane %v1395_v3, 1 }
  0x67   : > { %v6047_v23 = vcombine.low %v7581_v36, %v2348_v11  ;;  %v1270_v26 = vsel %vm1238_vm6, 65537, %v7416_v34  ;;  %v2434_v27 = vor.u32 %v2432_v4, %v2431_v8  ;;  %v660_v29 = vadd.s32 88, %v7565_v28 }
  0x68   : > { %v1413_v30 = vrot.slane %v1411_v14, 1  ;;  %v1419_v31 = vshll.u32 %v6008_v15, 16  ;;  %v7819_v32 = vcombine.low %v1268_v18, %v7581_v36  ;;  %v7821_v33 = vor.u32 %v2425_v39, %v2424_v60 }
  0x69   : > { %v1401_v37 = vor.u32 %v1399_v12, %v1397_v22  ;;  %v1409_v38 = vor.u32 %v1407_v13, %v1405_v16  ;;  %v1272_v40 = vsel %vm1240_vm7, 65537, %v7416_v34  ;;  %v2442_v41 = vor.u32 %v2440_v20, %v7803_v19 }
  0x6a   : > { %v7829_v42 = vsel %vm1322_vm8, %v1385_v6, %v1389_v2  ;;  %v7832_v43 = vsel %vm1322_vm8, %v1393_v21, %v1397_v22  ;;  %v6010_v44 = vcombine.low %v1270_v26, %v7581_v36  ;;  %v2445_v39 = vshrl.u32 %v6047_v23, 16 }
  0x6b   : > { %v1415_v47 = vshrl.u32 %v7779_v58, 16  ;;  %v1423_v48 = vshrl.u32 %v6008_v15, 16  ;;  %v7843_v49 = vsel %vm1500_vm11, %v2424_v60, %v2434_v27  ;;  %v762_v51 = vand.u32 15, %v660_v29 }
  0x6c   : > { %vm1452_vm15 = vcmp.ne.s16.totalorder %v7687_v56, 0  ;;  %v1421_v53 = vrot.slane %v1419_v31, 1  ;;  %v1427_v54 = vshll.u32 %v7819_v32, 16  ;;  %v7848_v55 = vcombine.low %v1272_v40, %v7581_v36 }
  0x6d   : > { %v2350_v57 = vsel %vm2318_vm13, 65537, %v7416_v34  ;;  %v7852_v0 = vsel %vm1322_vm8, %v1401_v37, %v1405_v16  ;;  %v7855_v58 = vsel %vm1322_vm8, %v1409_v38, %v1413_v30  ;;  %v7858_v60 = vsel %vm1500_vm11, %v2431_v8, %v2442_v41 }
  0x6e   : > { %9310 = vst [vmem:[#allocation8_spill] sm:$0xff] %v7852_v0  ;;  %9311 = vst [vmem:[#allocation9_spill] sm:$0xff] %v7855_v58  ;;  %v1435_v3 = vshll.u32 %v6010_v44, 16  ;;  %v7862_v4 = vrot.slane %v2445_v39, 7  ;;  %v2448_v5 = vshll.u32 %v6047_v23, 16  ;;  %v1417_v11 = vor.u32 %v1415_v47, %v1413_v30 }
  0x6f   : > { %v7866_v12 = vcombine.low %v7581_v36, %v2350_v57  ;;  %vm7868_vm0 = vcmp.le.s32.totalorder %v762_v51, 14  ;;  %v1425_v15 = vor.u32 %v1423_v48, %v1421_v53  ;;  %v1429_v16 = vrot.slane %v1427_v54, 1 }
  0x70   : > { %v1443_v18 = vshll.u32 %v7848_v55, 16  ;;  %v1431_v21 = vshrl.u32 %v7819_v32, 16  ;;  %v1439_v22 = vshrl.u32 %v6010_v44, 16  ;;  %v776_v23 = vand.u32 15, %v662_v1  ;;  %vm2320_vm1 = vmpackc.low %vm7868_vm0, %vm7868_vm0 }
  0x71   : > { %v1437_v27 = vrot.slane %v1435_v3, 1  ;;  %v2450_v29 = vor.u32 %v2448_v5, %v7862_v4  ;;  %vm9232_vm2 = vcmp.ne.s16.totalorder %v7735_v17, 0  ;;  %v7882_v37 = vsel %vm1322_vm8, %v1417_v11, %v1421_v53 }
  0x72   : > { %9314 = vst [vmem:[#allocation10_spill] sm:$0xff] %v7882_v37  ;;  %v2453_v32 = vshrl.u32 %v7866_v12, 16  ;;  %vm9233_vm3 = vcmp.ne.s16.totalorder %v7718_v10, 0  ;;  %v7887_v40 = vsel %vm1322_vm8, %v1425_v15, %v1429_v16  ;;  %v7889_v41 = vrot.slane %v1443_v18, 1 }
  0x73   : > { %9315 = vst [vmem:[#allocation11_spill] sm:$0xff] %v7887_v40  ;;  %v2456_v44 = vshll.u32 %v7866_v12, 16  ;;  %v1433_v48 = vor.u32 %v1431_v21, %v1429_v16  ;;  %v2352_v51 = vsel %vm2320_vm1, 65537, %v7416_v34  ;;  %vm7893_vm4 = vcmp.le.s32.totalorder %v776_v23, 14 }
  0x74   : > { %v1441_v1 = vor.u32 %v1439_v22, %v1437_v27  ;;  %vm2322_vm5 = vmpackc.low %vm7893_vm4, %vm7893_vm4  ;;  %vm9228_vm6 = vcmp.ne.s16.totalorder %v7814_v25, 0  ;;  %vm9229_vm7 = vcmp.ne.s16.totalorder %v7758_v35, 0  ;;  %vm9226_vm12 = vcmp.ne.s16.totalorder %v7832_v43, 0 }
  0x75   : > { %v7923_v18 = vsel %vm1322_vm8, %v1433_v48, %v1437_v27  ;;  %vm9227_vm0 = vcmp.ne.s16.totalorder %v7829_v42, 0  ;;  %vm9230_vm4 = vcmp.ne.s16.totalorder %v7855_v58, 0 }
  0x76   : > { %9319 = vst [vmem:[#allocation13_spill] sm:$0xff] %v7923_v18  ;;  %v7931_v27 = vsel %vm1322_vm8, %v1441_v1, %v7889_v41 }
  0x77   : > { %9320 = vst [vmem:[#allocation14_spill] sm:$0xff] %v7931_v27 }
  0xf5   : > { %v6475_v61 = vpop.f32.mrb[0].mxu0 }
  0xf6   : > { %v462_v50 = vadd.f32 %v6475_v61, %v7838_v46  ;;  %v453_v2 = vpop.f32.mrb[1].mxu0 }
  0xf7   : > { %v454_v6 = vadd.f32 %v7838_v46, %v453_v2  ;;  %v6476_v7 = vpop.f32.mrb[2].mxu0 }
  0xf8   : > { %v465_v8 = vadd.f32 %v6476_v7, %v7838_v46  ;;  %v456_v14 = vpop.f32.mrb[3].mxu0  ;;  %v582_v24 = vmax.f32 %v462_v50, 0.0  ;;  %v7902_v50 = vsel %vm1500_vm11, %v7803_v19, %v2450_v29  ;;  %v7907_v7 = vrot.slane %v2453_v32, 7 }
  0xf9   : > { %v457_v20 = vadd.f32 %v7838_v46, %v456_v14  ;;  %v580_v30 = vmax.f32 %v454_v6, 0.0  ;;  %9318 = vst [vmem:[#allocation12_spill] sm:$0xff] %v7902_v50  ;;  %v7917_v19 = vadd.s32 120, %v7565_v28 }
  0xfa   : > { %v583_v26 = vmax.f32 %v465_v8, 0.0  ;;  %v7911_v8 = vcombine.low %v7581_v36, %v2352_v51  ;;  %v7287_v51 = vld [vmem:[%s9223_s3 + $0x48] sm:$0xff]  }
  0xfb   : > { %v581_v31 = vmax.f32 %v457_v20, 0.0 }
  0xfc   : > { %v617_v38 = vpack.c.bf16 %v583_v26, %v582_v24  ;;  %v2461_v53 = vshrl.u32 %v7911_v8, 16 }
  0xfd   : > { %v616_v39 = vpack.c.bf16 %v581_v31, %v580_v30  ;;  %v6479_v47 = vpop.f32.mrb[4].mxu0  ;;  %v2354_v30 = vsel %vm2322_vm5, 65537, %v7416_v34 }
  0xfe   : > { %633 = vst [vmem:[#allocation2 + $0x18] sm:$0xff] %v617_v38  ;;  %v478_v54 = vadd.f32 %v6479_v47, %v7838_v46  ;;  %v469_v57 = vpop.f32.mrb[5].mxu0  ;;  %v1470_v61 = vsel %vm1453_vm14, %v617_v38, 0  ;;  %v2458_v38 = vor.u32 %v2456_v44, %v7907_v7 }
  0xff   : > { %632 = vst [vmem:[#allocation2 + $0x10] sm:$0xff] %v616_v39  ;;  %v470_v2 = vadd.f32 %v7838_v46, %v469_v57  ;;  %v6480_v3 = vpop.f32.mrb[6].mxu0  ;;  %v1469_v5 = vsel %vm1452_vm15, %v616_v39, 0  ;;  %v1522_v6 = vshrl.u32 %v1470_v61, 16  ;;  %v1525_v16 = vshll.u32 %v1470_v61, 16 }
 0x100   : > { %v481_v11 = vadd.f32 %v6480_v3, %v7838_v46  ;;  %v472_v12 = vpop.f32.mrb[7].mxu0  ;;  %v1514_v13 = vshrl.u32 %v1469_v5, 16  ;;  %v586_v20 = vmax.f32 %v478_v54, 0.0  ;;  %v1517_v23 = vshll.u32 %v1469_v5, 16 }
 0x101   : > { %v473_v14 = vadd.f32 %v7838_v46, %v472_v12  ;;  %v7920_v15 = vrot.slane %v1522_v6, 7  ;;  %v584_v24 = vmax.f32 %v470_v2, 0.0  ;;  %v2464_v54 = vshll.u32 %v7911_v8, 16 }
 0x102   : > { %v587_v21 = vmax.f32 %v481_v11, 0.0  ;;  %v1516_v22 = vrot.slane %v1514_v13, 7  ;;  %v7946_v2 = vcombine.low %v7581_v36, %v2354_v30  ;;  %v790_v12 = vand.u32 15, %v7917_v19 }
 0x103   : > { %v585_v26 = vmax.f32 %v473_v14, 0.0  ;;  %v1527_v29 = vor.u32 %v1525_v16, %v7920_v15  ;;  %v7959_v16 = vsel %vm1500_vm11, %v7862_v4, %v2458_v38 }
 0x104   : > { %v619_v31 = vpack.c.bf16 %v587_v21, %v586_v20  ;;  %v1519_v32 = vor.u32 %v1517_v23, %v1516_v22  ;;  %9321 = vst [vmem:[#allocation15_spill] sm:$0xff] %v7959_v16  ;;  %v7962_v20 = vadd.s32 136, %v7565_v28  ;;  %v7970_v23 = vrot.slane %v2461_v53, 7 }
 0x105   : > { %v618_v39 = vpack.c.bf16 %v585_v26, %v584_v24  ;;  %v6483_v47 = vpop.f32.mrb[8].mxu0  ;;  %v1528_v48 = vsel %vm1500_vm11, %v1516_v22, %v1527_v29  ;;  %vm7975_vm13 = vcmp.le.s32.totalorder %v790_v12, 14  ;;  %v7292_v12 = vld [vmem:[%s9223_s3 + $0x58] sm:$0xff]  }
 0x106   : > { %635 = vst [vmem:[#allocation2 + $0x28] sm:$0xff] %v619_v31  ;;  %v494_v57 = vadd.f32 %v6483_v47, %v7838_v46  ;;  %v485_v61 = vpop.f32.mrb[9].mxu0  ;;  %v1520_v1 = vsel %vm1500_vm11, %v7620_v59, %v1519_v32  ;;  %v1472_v44 = vsel %vm9232_vm2, %v619_v31, 0  ;;  %v7289_v59 = vld [vmem:[%s9223_s3 + $0x148] sm:$0xff]   ;;  %vm2324_vm1 = vmpackc.low %vm7975_vm13, %vm7975_vm13  ;;  %vm9231_vm13 = vcmp.ne.s16.totalorder %v7852_v0, 0 }
 0x107   : > { %634 = vst [vmem:[#allocation2 + $0x20] sm:$0xff] %v618_v39  ;;  %v486_v3 = vadd.f32 %v7838_v46, %v485_v61  ;;  %v6484_v5 = vpop.f32.mrb[10].mxu0  ;;  %6522 = vmatmul.mubr.bf16.vlgmr.msra.gmra.mrb[32].mxu0 %v1520_v1  ;;  %6717 = vmatprep.mubr.bf16.mxu1 %v618_v39  ;;  %v1471_v6 = vsel %vm9233_vm3, %v618_v39, 0  ;;  %v1538_v11 = vshrl.u32 %v1472_v44, 16  ;;  %v1541_v19 = vshll.u32 %v1472_v44, 16  ;;  %v7291_v1 = vld [vmem:[%s9223_s3 + $0x150] sm:$0xff]  }
 0x108   : > { %v497_v13 = vadd.f32 %v6484_v5, %v7838_v46  ;;  %v488_v8 = vpop.f32.mrb[11].mxu0  ;;  %6554 = vmatpush3.bf16.msra.mxu0 %v7627_v62  ;;  %6525 = vmatprep.mubr.bf16.mxu0 %v1528_v48  ;;  %v1530_v14 = vshrl.u32 %v1471_v6, 16  ;;  %v7290_v62 = vld [vmem:[%s9223_s3 + $0x50] sm:$0xff]   ;;  %v590_v24 = vmax.f32 %v494_v57, 0.0  ;;  %v1533_v29 = vshll.u32 %v1471_v6, 16 }
 0x109   : > { %v489_v21 = vadd.f32 %v7838_v46, %v488_v8  ;;  %6718 = vmatmul.mubr.bf16.vlgmr.msra.gmra.mrb[0].mxu1 %v619_v31  ;;  %6555 = vmatprep.subr.bf16.mxu0 %v7287_v51  ;;  %v7965_v22 = vrot.slane %v1538_v11, 7  ;;  %v588_v30 = vmax.f32 %v486_v3, 0.0  ;;  %v7981_v48 = vadd.s32 152, %v7565_v28 }
 0x10a   : > { %v591_v26 = vmax.f32 %v497_v13, 0.0  ;;  %v1532_v4 = vrot.slane %v1530_v14, 7  ;;  %6746 = vmatpush3.bf16.msra.mxu1 %v7633_v63  ;;  %v7984_v63 = vadd.s32 168, %v7565_v28  ;;  %v2469_v44 = vshrl.u32 %v7946_v2, 16 }
 0x10b   : > { %v589_v32 = vmax.f32 %v489_v21, 0.0  ;;  %v1543_v31 = vor.u32 %v1541_v19, %v7965_v22  ;;  %6747 = vmatprep.subr.bf16.mxu1 %v7289_v59  ;;  %v2466_v13 = vor.u32 %v2464_v54, %v7970_v23  ;;  %v7293_v21 = vld [vmem:[%s9223_s3 + $0x158] sm:$0xff]   ;;  %v804_v54 = vand.u32 15, %v7962_v20  ;;  %v7294_v20 = vld [vmem:[%s9223_s3 + $0x60] sm:$0xff]  }
 0x10c   : > { %v621_v39 = vpack.c.bf16 %v591_v26, %v590_v24  ;;  %v1535_v47 = vor.u32 %v1533_v29, %v1532_v4  ;;  %6556 = vmatpush3.bf16.msra.mxu0 %v7287_v51  ;;  %v2472_v51 = vshll.u32 %v7946_v2, 16  ;;  %v832_v29 = vand.u32 15, %v7984_v63  ;;  %v7299_v63 = vld [vmem:[%s9223_s3 + $0x170] sm:$0xff]  }
 0x10d   : > { %v620_v53 = vpack.c.bf16 %v589_v32, %v588_v30  ;;  %v6487_v57 = vpop.f32.mrb[12].mxu0  ;;  %v1544_v61 = vsel %vm1500_vm11, %v1532_v4, %v1543_v31  ;;  %6557 = vmatprep.subr.bf16.mxu0 %v7290_v62  ;;  %v818_v4 = vand.u32 15, %v7981_v48  ;;  %vm8028_vm5 = vcmp.le.s32.totalorder %v804_v54, 14 }
 0x10e   : > { %637 = vst [vmem:[#allocation2 + $0x38] sm:$0xff] %v621_v39  ;;  %v510_v3 = vadd.f32 %v6487_v57, %v7838_v46  ;;  %v501_v5 = vpop.f32.mrb[13].mxu0  ;;  %v1536_v6 = vsel %vm1500_vm11, %v7920_v15, %v1535_v47  ;;  %6748 = vmatpush3.bf16.msra.mxu1 %v7289_v59  ;;  %v1474_v11 = vsel %vm9228_vm6, %v621_v39, 0  ;;  %v8044_v54 = vsel %vm1500_vm11, %v7907_v7, %v2466_v13 }
 0x10f   : > { %636 = vst [vmem:[#allocation2 + $0x30] sm:$0xff] %v620_v53  ;;  %v502_v8 = vadd.f32 %v7838_v46, %v501_v5  ;;  %v6488_v14 = vpop.f32.mrb[14].mxu0  ;;  %6526 = vmatmul.mubr.bf16.gmra.mrb[36].mxu0 %v1536_v6  ;;  %6721 = vmatprep.mubr.bf16.mxu1 %v620_v53  ;;  %v1473_v15 = vsel %vm9229_vm7, %v620_v53, 0  ;;  %v1554_v59 = vshrl.u32 %v1474_v11, 16  ;;  %v1557_v31 = vshll.u32 %v1474_v11, 16  ;;  %9326 = vst [vmem:[#allocation16_spill] sm:$0xff] %v8044_v54 }
 0x110   : > { %v513_v19 = vadd.f32 %v6488_v14, %v7838_v46  ;;  %v504_v24 = vpop.f32.mrb[15].mxu0  ;;  %6529 = vmatprep.mubr.bf16.mxu0 %v1544_v61  ;;  %v1546_v26 = vshrl.u32 %v1473_v15, 16  ;;  %6558 = vmatpush3.bf16.msra.mxu0 %v7290_v62  ;;  %v2356_v62 = vsel %vm2324_vm1, 65537, %v7416_v34  ;;  %v594_v47 = vmax.f32 %v510_v3, 0.0  ;;  %vm2326_vm1 = vmpackc.low %vm8028_vm5, %vm8028_vm5 }
 0x111   : > { %v505_v30 = vadd.f32 %v7838_v46, %v504_v24  ;;  %6722 = vmatmul.mubr.bf16.gmra.mrb[4].mxu1 %v621_v39  ;;  %v8015_v32 = vrot.slane %v1554_v59, 7  ;;  %6749 = vmatprep.subr.bf16.mxu1 %v7291_v1  ;;  %v1549_v57 = vshll.u32 %v1473_v15, 16  ;;  %v592_v39 = vmax.f32 %v502_v8, 0.0  ;;  %v7295_v59 = vld [vmem:[%s9223_s3 + $0x160] sm:$0xff]  }
 0x112   : > { %v595_v48 = vmax.f32 %v513_v19, 0.0  ;;  %v1548_v53 = vrot.slane %v1546_v26, 7  ;;  %6750 = vmatpush3.bf16.msra.mxu1 %v7291_v1  ;;  %6559 = vmatprep.subr.bf16.mxu0 %v7292_v12  ;;  %v8033_v3 = vrot.slane %v2469_v44, 7  ;;  %v8036_v1 = vadd.s32 184, %v7565_v28 }
 0x113   : > { %v593_v61 = vmax.f32 %v505_v30, 0.0  ;;  %v1559_v5 = vor.u32 %v1557_v31, %v8015_v32  ;;  %6751 = vmatprep.subr.bf16.mxu1 %v7293_v21  ;;  %v7296_v30 = vld [vmem:[%s9223_s3 + $0x68] sm:$0xff]   ;;  %v8058_v7 = vcombine.low %v7581_v36, %v2356_v62  ;;  %v2358_v2 = vsel %vm2326_vm1, 65537, %v7416_v34 }
 0x114   : > { %v623_v38 = vpack.c.bf16 %v595_v48, %v594_v47  ;;  %v1551_v11 = vor.u32 %v1549_v57, %v1548_v53  ;;  %6560 = vmatpush3.bf16.msra.mxu0 %v7292_v12  ;;  %v8047_v12 = vadd.s32 200, %v7565_v28  ;;  %v7297_v47 = vld [vmem:[%s9223_s3 + $0x168] sm:$0xff]   ;;  %vm8094_vm6 = vcmp.le.s32.totalorder %v832_v29, 14 }
 0x115   : > { %v622_v8 = vpack.c.bf16 %v593_v61, %v592_v39  ;;  %v6491_v14 = vpop.f32.mrb[16].mxu0  ;;  %v1560_v15 = vsel %vm1500_vm11, %v1548_v53, %v1559_v5  ;;  %6561 = vmatprep.subr.bf16.mxu0 %v7294_v20  ;;  %v2474_v39 = vor.u32 %v2472_v51, %v8033_v3  ;;  %v846_v61 = vand.u32 15, %v8036_v1 }
 0x116   : > { %639 = vst [vmem:[#allocation2 + $0x48] sm:$0xff] %v623_v38  ;;  %v526_v44 = vadd.f32 %v6491_v14, %v7838_v46  ;;  %v517_v19 = vpop.f32.mrb[17].mxu0  ;;  %v1552_v24 = vsel %vm1500_vm11, %v7965_v22, %v1551_v11  ;;  %v1476_v26 = vsel %vm9226_vm12, %v623_v38, 0  ;;  %6752 = vmatpush3.bf16.msra.mxu1 %v7293_v21  ;;  %vm8069_vm12 = vcmp.le.s32.totalorder %v818_v4, 14 }
 0x117   : > { %638 = vst [vmem:[#allocation2 + $0x40] sm:$0xff] %v622_v8  ;;  %v518_v13 = vadd.f32 %v7838_v46, %v517_v19  ;;  %v6492_v31 = vpop.f32.mrb[18].mxu0  ;;  %6530 = vmatmul.mubr.bf16.gmra.mrb[40].mxu0 %v1552_v24  ;;  %6725 = vmatprep.mubr.bf16.mxu1 %v622_v8  ;;  %v1475_v22 = vsel %vm9227_vm0, %v622_v8, 0  ;;  %v1570_v21 = vshrl.u32 %v1476_v26, 16  ;;  %v1573_v4 = vshll.u32 %v1476_v26, 16  ;;  %v7298_v8 = vld [vmem:[%s9223_s3 + $0x70] sm:$0xff]   ;;  %vm2328_vm1 = vmpackc.low %vm8069_vm12, %vm8069_vm12 }
 0x118   : > { %v529_v48 = vadd.f32 %v6492_v31, %v7838_v46  ;;  %v520_v53 = vpop.f32.mrb[19].mxu0  ;;  %6533 = vmatprep.mubr.bf16.mxu0 %v1560_v15  ;;  %v1562_v57 = vshrl.u32 %v1475_v22, 16  ;;  %6562 = vmatpush3.bf16.msra.mxu0 %v7294_v20  ;;  %v598_v51 = vmax.f32 %v526_v44, 0.0  ;;  %v1565_v14 = vshll.u32 %v1475_v22, 16 }
 0x119   : > { %v521_v5 = vadd.f32 %v7838_v46, %v520_v53  ;;  %6726 = vmatmul.mubr.bf16.gmra.mrb[8].mxu1 %v623_v38  ;;  %v8079_v11 = vrot.slane %v1570_v21, 7  ;;  %6753 = vmatprep.subr.bf16.mxu1 %v7295_v59  ;;  %v596_v38 = vmax.f32 %v518_v13, 0.0  ;;  %vm9249_vm0 = vcmp.ne.s16.totalorder %v7887_v40, 0 }
 0x11a   : > { %v599_v20 = vmax.f32 %v529_v48, 0.0  ;;  %v1564_v1 = vrot.slane %v1562_v57, 7  ;;  %6754 = vmatpush3.bf16.msra.mxu1 %v7295_v59  ;;  %6563 = vmatprep.subr.bf16.mxu0 %v7296_v30  ;;  %vm9250_vm5 = vcmp.ne.s16.totalorder %v7882_v37, 0  ;;  %v2477_v59 = vshrl.u32 %v8058_v7, 16  ;;  %v7301_v57 = vld [vmem:[%s9223_s3 + $0x78] sm:$0xff]  }
 0x11b   : > { %v597_v15 = vmax.f32 %v521_v5, 0.0  ;;  %v1575_v19 = vor.u32 %v1573_v4, %v8079_v11  ;;  %6755 = vmatprep.subr.bf16.mxu1 %v7297_v47  ;;  %v2480_v44 = vshll.u32 %v8058_v7, 16  ;;  %v8107_v29 = vsel %vm1500_vm11, %v7970_v23, %v2474_v39  ;;  %v7300_v4 = vld [vmem:[%s9223_s3 + $0x178] sm:$0xff]  }
 0x11c   : > { %v625_v34 = vpack.c.bf16 %v599_v20, %v598_v51  ;;  %v1567_v6 = vor.u32 %v1565_v14, %v1564_v1  ;;  %6564 = vmatpush3.bf16.msra.mxu0 %v7296_v30  ;;  %9331 = vst [vmem:[#allocation17_spill] sm:$0xff] %v8107_v29  ;;  %v8110_v22 = vcombine.low %v7581_v36, %v2358_v2  ;;  %vm8123_vm7 = vcmp.le.s32.totalorder %v846_v61, 14 }
 0x11d   : > { %v624_v26 = vpack.c.bf16 %v597_v15, %v596_v38  ;;  %v6495_v13 = vpop.f32.mrb[20].mxu0  ;;  %v1576_v31 = vsel %vm1500_vm11, %v1564_v1, %v1575_v19  ;;  %6565 = vmatprep.subr.bf16.mxu0 %v7298_v8  ;;  %v1447_v1 = vshrl.u32 %v7848_v55, 16  ;;  %v8137_v14 = vrot.slane %v2477_v59, 7  ;;  %vm2332_vm3 = vmpackc.low %vm8123_vm7, %vm8123_vm7 }
 0x11e   : > { %641 = vst [vmem:[#allocation2 + $0x58] sm:$0xff] %v625_v34  ;;  %v542_v30 = vadd.f32 %v6495_v13, %v7838_v46  ;;  %v533_v21 = vpop.f32.mrb[21].mxu0  ;;  %v1568_v48 = vsel %vm1500_vm11, %v8015_v32, %v1567_v6  ;;  %v1478_v53 = vsel %vm9230_vm4, %v625_v34, 0  ;;  %6756 = vmatpush3.bf16.msra.mxu1 %v7297_v47  ;;  %vm2548_vm4 = vcmp.ne.s16.totalorder %v7821_v33, 0  ;;  %v8145_v6 = vld [vmem:[%s9223_s3 + $0x80] sm:$0xff]  }
 0x11f   : > { %640 = vst [vmem:[#allocation2 + $0x50] sm:$0xff] %v624_v26  ;;  %v534_v39 = vadd.f32 %v7838_v46, %v533_v21  ;;  %v6496_v32 = vpop.f32.mrb[22].mxu0  ;;  %6534 = vmatmul.mubr.bf16.gmra.mrb[44].mxu0 %v1568_v48  ;;  %6729 = vmatprep.mubr.bf16.mxu1 %v624_v26  ;;  %v1477_v47 = vsel %vm9231_vm13, %v624_v26, 0  ;;  %v1586_v5 = vshrl.u32 %v1478_v53, 16  ;;  %v1589_v19 = vshll.u32 %v1478_v53, 16  ;;  %v8147_v26 = vld [vmem:[#allocation2] sm:$0xff]  ;;  %vm2330_vm13 = vmpackc.low %vm8094_vm6, %vm8094_vm6 }
 0x120   : > { %v545_v61 = vadd.f32 %v6496_v32, %v7838_v46  ;;  %v536_v51 = vpop.f32.mrb[23].mxu0  ;;  %6537 = vmatprep.mubr.bf16.mxu0 %v1576_v31  ;;  %v1578_v20 = vshrl.u32 %v1477_v47, 16  ;;  %6566 = vmatpush3.bf16.msra.mxu0 %v7298_v8  ;;  %v2360_v55 = vsel %vm2328_vm1, 65537, %v8147_v26  ;;  %v602_v8 = vmax.f32 %v542_v30, 0.0 }
 0x121   : > { %v537_v38 = vadd.f32 %v7838_v46, %v536_v51  ;;  %6730 = vmatmul.mubr.bf16.gmra.mrb[12].mxu1 %v625_v34  ;;  %v8140_v15 = vrot.slane %v1586_v5, 7  ;;  %6757 = vmatprep.subr.bf16.mxu1 %v7299_v63  ;;  %v1581_v13 = vshll.u32 %v1477_v47, 16  ;;  %v600_v31 = vmax.f32 %v534_v39, 0.0 }
 0x122   : > { %v603_v34 = vmax.f32 %v545_v61, 0.0  ;;  %v1580_v59 = vrot.slane %v1578_v20, 7  ;;  %6758 = vmatpush3.bf16.msra.mxu1 %v7299_v63  ;;  %6567 = vmatprep.subr.bf16.mxu0 %v7301_v57  ;;  %vm9236_vm2 = vcmp.ne.s16.totalorder %v7931_v27, 0  ;;  %v2485_v62 = vshrl.u32 %v8110_v22, 16  ;;  %v8166_v63 = vld [vmem:[%s9223_s3 + $0x180] sm:$0xff]  }
 0x123   : > { %v601_v21 = vmax.f32 %v537_v38, 0.0  ;;  %v1591_v48 = vor.u32 %v1589_v19, %v8140_v15  ;;  %6759 = vmatprep.subr.bf16.mxu1 %v7300_v4  ;;  %vm9237_vm12 = vcmp.ne.s16.totalorder %v7923_v18, 0  ;;  %vm9252_vm1 = vcmp.ne.s16.totalorder %v7843_v49, 0 }
 0x124   : > { %v627_v53 = vpack.c.bf16 %v603_v34, %v602_v8  ;;  %v1583_v32 = vor.u32 %v1581_v13, %v1580_v59  ;;  %6568 = vmatpush3.bf16.msra.mxu0 %v7301_v57  ;;  %v2362_v39 = vsel %vm2330_vm13, 65537, %v8147_v26  ;;  %v8177_v57 = vor.u32 %v1447_v1, %v7889_v41  ;;  %v8191_v1 = vld [vmem:[#allocation2 + $0x10] sm:$0xff] }
 0x125   : > { %v626_v47 = vpack.c.bf16 %v601_v21, %v600_v31  ;;  %v6499_v5 = vpop.f32.mrb[24].mxu0  ;;  %v1592_v61 = vsel %vm1500_vm11, %v1580_v59, %v1591_v48  ;;  %6601 = vmatprep.subr.bf16.mxu0 %v8145_v6  ;;  %v8181_v51 = vcombine.low %v7581_v36, %v2360_v55  ;;  %v8196_v19 = vor.u32 %v2480_v44, %v8137_v14 }
 0x126   : > { %9334 = vst [vmem:[#allocation18_spill] sm:$0xff] %v8177_v57  ;;  %643 = vst [vmem:[#allocation2 + $0x68] sm:$0xff] %v627_v53  ;;  %v558_v24 = vadd.f32 %v6499_v5, %v7838_v46  ;;  %v549_v20 = vpop.f32.mrb[25].mxu0  ;;  %v1584_v38 = vsel %vm1500_vm11, %v8079_v11, %v1583_v32  ;;  %v1480_v41 = vsel %vm9249_vm0, %v627_v53, 0  ;;  %6760 = vmatpush3.bf16.msra.mxu1 %v7300_v4  ;;  %vm9251_vm6 = vcmp.ne.s16.totalorder %v7858_v60, 0 }
 0x127   : > { %642 = vst [vmem:[#allocation2 + $0x60] sm:$0xff] %v626_v47  ;;  %v550_v55 = vadd.f32 %v7838_v46, %v549_v20  ;;  %v6500_v8 = vpop.f32.mrb[26].mxu0  ;;  %6538 = vmatmul.mubr.bf16.gmra.mrb[48].mxu0 %v1584_v38  ;;  %6733 = vmatprep.mubr.bf16.mxu1 %v626_v47  ;;  %v1479_v11 = vsel %vm9250_vm5, %v626_v47, 0  ;;  %v1602_v34 = vshrl.u32 %v1480_v41, 16  ;;  %v8202_v59 = vcombine.low %v7581_v36, %v2362_v39 }
 0x128   : > { %v561_v4 = vadd.f32 %v6500_v8, %v7838_v46  ;;  %v552_v13 = vpop.f32.mrb[27].mxu0  ;;  %6541 = vmatprep.mubr.bf16.mxu0 %v1592_v61  ;;  %v1594_v7 = vshrl.u32 %v1479_v11, 16  ;;  %6793 = vmatprep.subr.bf16.mxu1 %v8166_v63  ;;  %v8207_v44 = vrot.slane %v2485_v62, 7  ;;  %v8215_v31 = vsel %vm2332_vm3, 65537, %v8147_v26 }
 0x129   : > { %v553_v21 = vadd.f32 %v7838_v46, %v552_v13  ;;  %6734 = vmatmul.mubr.bf16.gmra.mrb[16].mxu1 %v627_v53  ;;  %v8218_v48 = vrot.slane %v1602_v34, 7  ;;  %v1605_v32 = vshll.u32 %v1480_v41, 16  ;;  %v8223_v39 = vsel %vm2548_vm4, %v8191_v1, 0  ;;  %v8227_v34 = vld [vmem:[#allocation2 + $0x18] sm:$0xff] }
 0x12a   : > { %v606_v62 = vmax.f32 %v558_v24, 0.0  ;;  %v607_v47 = vmax.f32 %v561_v4, 0.0  ;;  %v1596_v5 = vrot.slane %v1594_v7, 7  ;;  %v1597_v61 = vshll.u32 %v1479_v11, 16 }
 0x12b   : > { %v604_v20 = vmax.f32 %v550_v55, 0.0  ;;  %v605_v23 = vmax.f32 %v553_v21, 0.0  ;;  %v1607_v38 = vor.u32 %v1605_v32, %v8218_v48  ;;  %v3948_v41 = vshll.u32 %v8223_v39, 16 }
 0x12c   : > { %v629_v13 = vpack.c.bf16 %v607_v47, %v606_v62  ;;  %v1599_v53 = vor.u32 %v1597_v61, %v1596_v5  ;;  %vm9248_vm3 = vcmp.ne.s16.totalorder %v8177_v57, 0  ;;  %vm2551_vm7 = vcmp.ne.s16.totalorder %v7902_v50, 0  ;;  %v8247_v47 = vld [vmem:[#allocation2 + $0x20] sm:$0xff] }
 0x12d   : > { %v628_v30 = vpack.c.bf16 %v605_v23, %v604_v20  ;;  %v6503_v2 = vpop.f32.mrb[28].mxu0  ;;  %v1608_v24 = vsel %vm1500_vm11, %v1596_v5, %v1607_v38  ;;  %v9335_v55 = vand.u32 15, %v8047_v12  ;;  %v8240_v4 = vadd.s32 216, %v7565_v28 }
 0x12e   : > { %645 = vst [vmem:[#allocation2 + $0x78] sm:$0xff] %v629_v13  ;;  %v574_v7 = vadd.f32 %v6503_v2, %v7838_v46  ;;  %v565_v21 = vpop.f32.mrb[29].mxu0  ;;  %v1600_v32 = vsel %vm1500_vm11, %v8140_v15, %v1599_v53  ;;  %v1482_v62 = vsel %vm9236_vm2, %v629_v13, 0  ;;  %v8250_v12 = vadd.s32 232, %v7565_v28 }
 0x12f   : > { %vm8235_vm13 = vcmp.le.s32.totalorder %v9335_v55, 14  ;;  %644 = vst [vmem:[#allocation2 + $0x70] sm:$0xff] %v628_v30  ;;  %v566_v5 = vadd.f32 %v7838_v46, %v565_v21  ;;  %v6504_v61 = vpop.f32.mrb[30].mxu0  ;;  %6542 = vmatmul.mubr.bf16.gmra.mrb[52].mxu0 %v1600_v32  ;;  %6737 = vmatprep.mubr.bf16.mxu1 %v628_v30  ;;  %v1481_v2 = vsel %vm9237_vm12, %v628_v30, 0  ;;  %v1618_v20 = vshrl.u32 %v1482_v62, 16 }
 0x130   : > { %v8258_v15 = vsel %vm9252_vm1, %v8227_v34, 0  ;;  %v577_v23 = vadd.f32 %v6504_v61, %v7838_v46  ;;  %v568_v38 = vpop.f32.mrb[31].mxu0  ;;  %6545 = vmatprep.mubr.bf16.mxu0 %v1608_v24  ;;  %v1610_v53 = vshrl.u32 %v1481_v2, 16  ;;  %v3946_v55 = vshrl.u32 %v8223_v39, 16  ;;  %vm2334_vm12 = vmpackc.low %vm8235_vm13, %vm8235_vm13 }
 0x131   : > { %v3950_v21 = vrot.slane %v3948_v41, 1  ;;  %v569_v32 = vadd.f32 %v7838_v46, %v568_v38  ;;  %6738 = vmatmul.mubr.bf16.gmra.mrb[20].mxu1 %v629_v13  ;;  %v8263_v8 = vrot.slane %v1618_v20, 7  ;;  %v1621_v30 = vshll.u32 %v1482_v62, 16 }
 0x132   : > { %v3913_v27 = vsel %vm9251_vm6, %v8247_v47, 0  ;;  %vm2552_vm2 = vcmp.ne.s16.totalorder %v7959_v16, 0  ;;  %v610_v24 = vmax.f32 %v574_v7, 0.0  ;;  %v611_v61 = vmax.f32 %v577_v23, 0.0  ;;  %v8277_v23 = vld [vmem:[#allocation2 + $0x28] sm:$0xff]  ;;  %v8484_v16 = vld [vmem:[#allocation2 + $0x60] sm:$0xff] }
 0x133   : > { %v1612_v39 = vrot.slane %v1610_v53, 7  ;;  %v1613_v41 = vshll.u32 %v1481_v2, 16  ;;  %v608_v18 = vmax.f32 %v566_v5, 0.0  ;;  %v609_v46 = vmax.f32 %v569_v32, 0.0 }
 0x134   : > { %v1623_v13 = vor.u32 %v1621_v30, %v8263_v8  ;;  %v3953_v62 = vshll.u32 %v8258_v15, 16  ;;  %v631_v20 = vpack.c.bf16 %v611_v61, %v610_v24  ;;  %v2366_v40 = vsel %vm2334_vm12, 65537, %v8147_v26 }
 0x135   : > { %v1615_v38 = vor.u32 %v1613_v41, %v1612_v39  ;;  %v874_v37 = vand.u32 15, %v8240_v4  ;;  %v630_v58 = vpack.c.bf16 %v609_v46, %v608_v18  ;;  %v3951_v0 = vor.u32 %v3950_v21, %v3946_v55  ;;  %v8290_v21 = vld [vmem:[#allocation2 + $0x30] sm:$0xff] }
 0x136   : > { %v1624_v11 = vsel %vm1500_vm11, %v1612_v39, %v1623_v13  ;;  %v3961_v7 = vshll.u32 %v3913_v27, 16  ;;  %vm9256_vm13 = vcmp.ne.s16.totalorder %v8044_v54, 0  ;;  %647 = vst [vmem:[#allocation2 + $0x88] sm:$0xff] %v631_v20  ;;  %v2496_v2 = vshll.u32 %v8181_v51, 16 }
 0x137   : > { %v1616_v5 = vsel %vm1500_vm11, %v8218_v48, %v1615_v38  ;;  %v2501_v53 = vshrl.u32 %v8202_v59, 16  ;;  %v8286_v4 = vcombine.low %v7581_v36, %v8215_v31  ;;  %646 = vst [vmem:[#allocation2 + $0x80] sm:$0xff] %v630_v58  ;;  %6741 = vmatprep.mubr.bf16.mxu1 %v630_v58  ;;  %v3955_v18 = vrot.slane %v3953_v62, 1 }
 0x138   : > { %6546 = vmatmul.mubr.bf16.gmra.mrb[56].mxu0 %v1616_v5  ;;  %v1483_v55 = vsel %vm9248_vm3, %v630_v58, 0  ;;  %v2504_v32 = vshll.u32 %v8202_v59, 16  ;;  %v8294_v48 = vcombine.low %v7581_v36, %v2366_v40  ;;  %v8299_v31 = vsel %vm2551_vm7, %v8277_v23, 0 }
 0x139   : > { %6549 = vmatprep.mubr.bf16.mxu0 %v1624_v11  ;;  %v1626_v30 = vshrl.u32 %v1483_v55, 16  ;;  %vm8301_vm12 = vcmp.le.s32.totalorder %v874_v37, 14  ;;  %v888_v58 = vand.u32 15, %v8250_v12  ;;  %6742 = vmatmul.mubr.bf16.gmra.mrb[24].mxu1 %v631_v20  ;;  %v3956_v61 = vsel %vm1322_vm8, %v3951_v0, %v3955_v18 }
 0x13a   : > { %v3963_v59 = vrot.slane %v3961_v7, 1  ;;  %vm2554_vm3 = vcmp.ne.s16.totalorder %v8107_v29, 0  ;;  %v9340_v40 = vshll.u32 %v8110_v22, 16  ;;  %v680_v41 = vadd.s32 248, %v7565_v28  ;;  %6761 = vmatprep.mubr.bf16.mxu1 %v3956_v61  ;;  %vm2336_vm0 = vmpackc.low %vm8301_vm12, %vm8301_vm12 }
 0x13b   : > { %v1628_v46 = vrot.slane %v1626_v30, 7  ;;  %v1629_v37 = vshll.u32 %v1483_v55, 16  ;;  %v3915_v13 = vsel %vm2552_vm2, %v8290_v21, 0  ;;  %v2509_v12 = vshrl.u32 %v8286_v4, 16  ;;  %v8328_v30 = vld [vmem:[#allocation2 + $0x38] sm:$0xff] }
 0x13c   : > { %v2490_v39 = vor.u32 %v9340_v40, %v8207_v44  ;;  %v3965_v62 = vshrl.u32 %v3913_v27, 16  ;;  %v3969_v0 = vshll.u32 %v8299_v31, 16  ;;  %v9341_v20 = vshrl.u32 %v8181_v51, 16 }
 0x13d   : > { %v2503_v11 = vrot.slane %v2501_v53, 7  ;;  %v3957_v28 = vshrl.u32 %v8258_v15, 16  ;;  %v1631_v22 = vor.u32 %v1629_v37, %v1628_v46  ;;  %v2517_v7 = vshrl.u32 %v8294_v48, 16  ;;  %v8337_v37 = vld [vmem:[#allocation2 + $0x40] sm:$0xff] }
 0x13e   : > { %v2495_v38 = vrot.slane %v9341_v20, 7  ;;  %vm8324_vm5 = vcmp.le.s32.totalorder %v888_v58, 14  ;;  %v3967_v27 = vor.u32 %v3965_v62, %v3963_v59  ;;  %v3977_v55 = vshll.u32 %v3915_v13, 16  ;;  %v7305_v58 = vld [vmem:[%s9223_s3 + $0x188] sm:$0xff]  }
 0x13f   : > { %v2512_v51 = vshll.u32 %v8286_v4, 16  ;;  %v902_v53 = vand.u32 15, %v680_v41  ;;  %v3959_v61 = vor.u32 %v3957_v28, %v3955_v18  ;;  %v1632_v24 = vsel %vm1500_vm11, %v8263_v8, %v1631_v22 }
 0x140   : > { %v2511_v40 = vrot.slane %v2509_v12, 7  ;;  %v2368_v15 = vsel %vm2336_vm0, 65537, %v8147_v26  ;;  %6550 = vmatmul.mubr.bf16.gmra.mrb[60].mxu0 %v1632_v24  ;;  %v3971_v46 = vrot.slane %v3969_v0, 1  ;;  %v8342_v4 = vsel %vm1500_vm11, %v8033_v3, %v8196_v19  ;;  %vm2338_vm0 = vmpackc.low %vm8324_vm5, %vm8324_vm5 }
 0x141   : > { %9344 = vst [vmem:[#allocation19_spill] sm:$0xff] %v8342_v4  ;;  %v8346_v18 = vsel %vm1500_vm11, %v8137_v14, %v2490_v39  ;;  %v2498_v8 = vor.u32 %v2496_v2, %v2495_v38  ;;  %v3964_v41 = vsel %vm1322_vm8, %v3959_v61, %v3963_v59  ;;  %6569 = vmatprep.mubr.bf16.mxu0 %v8147_v26  ;;  %v8356_v12 = vsel %vm9256_vm13, %v8328_v30, 0 }
 0x142   : > { %9345 = vst [vmem:[#allocation20_spill] sm:$0xff] %v8346_v18  ;;  %v8358_v3 = vrot.slane %v2517_v7, 7  ;;  %v2520_v19 = vshll.u32 %v8294_v48, 16  ;;  %6762 = vmatmul.mubr.bf16.vlgmr.msra.gmra.mrb[28].mxu1 %v3964_v41  ;;  %v3972_v14 = vsel %vm1322_vm8, %v3967_v27, %v3971_v46  ;;  %v3979_v2 = vrot.slane %v3977_v55, 1  ;;  %v7304_v27 = vld [vmem:[%s9223_s3 + $0x88] sm:$0xff]   ;;  %v7309_v41 = vld [vmem:[%s9223_s3 + $0x198] sm:$0xff]  }
 0x143   : > { %v8363_v39 = vcombine.low %v7581_v36, %v2368_v15  ;;  %vm8365_vm12 = vcmp.le.s32.totalorder %v902_v53, 14  ;;  %6765 = vmatprep.mubr.bf16.mxu1 %v3972_v14  ;;  %6794 = vmatpush3.bf16.msra.mxu1 %v8166_v63  ;;  %v8373_v62 = vsel %vm2554_vm3, %v8337_v37, 0  ;;  %v2506_v48 = vor.u32 %v2504_v32, %v2503_v11  ;;  %v7307_v63 = vld [vmem:[%s9223_s3 + $0x190] sm:$0xff]   ;;  %v8400_v55 = vld [vmem:[#allocation2 + $0x48] sm:$0xff] }
 0x144   : > { %v2514_v0 = vor.u32 %v2512_v51, %v2511_v40  ;;  %v2370_v20 = vsel %vm2338_vm0, 65537, %v8147_v26  ;;  %v3981_v28 = vshrl.u32 %v3915_v13, 16  ;;  %v3985_v22 = vshll.u32 %v8356_v12, 16  ;;  %6795 = vmatprep.subr.bf16.mxu1 %v7305_v58  ;;  %vm2340_vm5 = vmpackc.low %vm8365_vm12, %vm8365_vm12 }
 0x145   : > { %v8387_v7 = vsel %vm1500_vm11, %v8207_v44, %v2498_v8  ;;  %v3973_v32 = vshrl.u32 %v8299_v31, 16  ;;  %vm2555_vm6 = vcmp.ne.s16.totalorder %v8342_v4, 0  ;;  %vm9261_vm1 = vcmp.ne.s16.totalorder %v8346_v18, 0  ;;  %v8414_v8 = vld [vmem:[#allocation2 + $0x50] sm:$0xff] }
 0x146   : > { %9348 = vst [vmem:[#allocation21_spill] sm:$0xff] %v8387_v7  ;;  %v2522_v5 = vor.u32 %v2520_v19, %v8358_v3  ;;  %v3983_v13 = vor.u32 %v3981_v28, %v3979_v2  ;;  %v3993_v44 = vshll.u32 %v8373_v62, 16  ;;  %v2525_v31 = vshrl.u32 %v8363_v39, 16 }
 0x147   : > { %v8404_v51 = vcombine.low %v7581_v36, %v2370_v20  ;;  %v3975_v53 = vor.u32 %v3973_v32, %v3971_v46  ;;  %6796 = vmatpush3.bf16.msra.mxu1 %v7305_v58  ;;  %vm2557_vm0 = vcmp.ne.s16.totalorder %v8387_v7, 0  ;;  %v8408_v61 = vsel %vm1500_vm11, %v2495_v38, %v2506_v48  ;;  %v8592_v7 = vld [vmem:[#allocation2 + $0x78] sm:$0xff] }
 0x148   : > { %9349 = vst [vmem:[#allocation22_spill] sm:$0xff] %v8408_v61  ;;  %v8411_v24 = vsel %vm1500_vm11, %v2503_v11, %v2514_v0  ;;  %6570 = vmatmul.mubr.bf16.vlgmr.msra.gmra.mrb[32].mxu0 %v8191_v1  ;;  %v3987_v15 = vrot.slane %v3985_v22, 1  ;;  %6797 = vmatprep.subr.bf16.mxu1 %v7307_v63  ;;  %v2528_v46 = vshll.u32 %v8363_v39, 16  ;;  %v2372_v38 = vsel %vm2340_vm5, 65537, %v8147_v26 }
 0x149   : > { %9350 = vst [vmem:[#allocation23_spill] sm:$0xff] %v8411_v24  ;;  %v2568_v11 = vsel %vm2551_vm7, %v8247_v47, 0  ;;  %6602 = vmatpush3.bf16.msra.mxu0 %v8145_v6  ;;  %6573 = vmatprep.mubr.bf16.mxu0 %v8227_v34  ;;  %v3980_v58 = vsel %vm1322_vm8, %v3975_v53, %v3979_v2  ;;  %v8435_v19 = vsel %vm2555_vm6, %v8400_v55, 0  ;;  %v8438_v14 = vsel %vm1500_vm11, %v2511_v40, %v2522_v5  ;;  %v7306_v6 = vld [vmem:[%s9223_s3 + $0x90] sm:$0xff]  }
 0x14a   : > { %9351 = vst [vmem:[#allocation24_spill] sm:$0xff] %v8438_v14  ;;  %v2623_v39 = vshll.u32 %v2568_v11, 16  ;;  %6766 = vmatmul.mubr.bf16.gmra.mrb[0].mxu1 %v3980_v58  ;;  %v3988_v59 = vsel %vm1322_vm8, %v3983_v13, %v3987_v15  ;;  %6603 = vmatprep.subr.bf16.mxu0 %v7304_v27  ;;  %v3995_v48 = vrot.slane %v3993_v44, 1  ;;  %vm9265_vm12 = vcmp.ne.s16.totalorder %v8408_v61, 0  ;;  %v8472_v58 = vld [vmem:[#allocation2 + $0x58] sm:$0xff] }
 0x14b   : > { %v8445_v2 = vrot.slane %v2525_v31, 7  ;;  %v2533_v0 = vshrl.u32 %v8404_v51, 16  ;;  %6769 = vmatprep.mubr.bf16.mxu1 %v3988_v59  ;;  %v3989_v40 = vshrl.u32 %v8356_v12, 16  ;;  %6798 = vmatpush3.bf16.msra.mxu1 %v7307_v63  ;;  %v8452_v20 = vsel %vm9261_vm1, %v8414_v8, 0  ;;  %v7311_v12 = vld [vmem:[%s9223_s3 + $0x1a0] sm:$0xff]  }
 0x14c   : > { %v8455_v28 = vcombine.low %v7581_v36, %v2372_v38  ;;  %v8457_v22 = vrot.slane %v2623_v39, 1  ;;  %v3997_v32 = vshrl.u32 %v8373_v62, 16  ;;  %v4001_v5 = vshll.u32 %v8435_v19, 16  ;;  %6799 = vmatprep.subr.bf16.mxu1 %v7309_v41  ;;  %v7308_v39 = vld [vmem:[%s9223_s3 + $0x98] sm:$0xff]  }
 0x14d   : > { %v2569_v63 = vsel %vm2552_vm2, %v8277_v23, 0  ;;  %v2627_v13 = vshrl.u32 %v2568_v11, 16  ;;  %6604 = vmatpush3.bf16.msra.mxu0 %v7304_v27  ;;  %v3991_v44 = vor.u32 %v3989_v40, %v3987_v15  ;;  %v2570_v62 = vsel %vm9256_vm13, %v8290_v21, 0 }
 0x14e   : > { %v2631_v31 = vshll.u32 %v2569_v63, 16  ;;  %v3999_v53 = vor.u32 %v3997_v32, %v3995_v48  ;;  %6605 = vmatprep.subr.bf16.mxu0 %v7306_v6  ;;  %v4009_v38 = vshll.u32 %v8452_v20, 16  ;;  %vm9264_vm5 = vcmp.ne.s16.totalorder %v8411_v24, 0 }
 0x14f   : > { %v2629_v27 = vor.u32 %v2627_v13, %v8457_v22  ;;  %v2639_v15 = vshll.u32 %v2570_v62, 16  ;;  %6800 = vmatpush3.bf16.msra.mxu1 %v7309_v41  ;;  %v2530_v11 = vor.u32 %v2528_v46, %v8445_v2  ;;  %v8480_v59 = vrot.slane %v2533_v0, 7  ;;  %v7313_v13 = vld [vmem:[%s9223_s3 + $0x1a8] sm:$0xff]  }
 0x150   : > { %v2633_v40 = vrot.slane %v2631_v31, 1  ;;  %v2635_v32 = vshrl.u32 %v2569_v63, 16  ;;  %6574 = vmatmul.mubr.bf16.gmra.mrb[36].mxu0 %v8247_v47  ;;  %v3996_v36 = vsel %vm1322_vm8, %v3991_v44, %v3995_v48  ;;  %v4003_v54 = vrot.slane %v4001_v5, 1  ;;  %6801 = vmatprep.subr.bf16.mxu1 %v7311_v12 }
 0x151   : > { %v2541_v41 = vshrl.u32 %v8455_v28, 16  ;;  %v2641_v50 = vrot.slane %v2639_v15, 1  ;;  %6577 = vmatprep.mubr.bf16.mxu0 %v8277_v23  ;;  %6606 = vmatpush3.bf16.msra.mxu0 %v7306_v6  ;;  %v4005_v46 = vshrl.u32 %v8435_v19, 16  ;;  %v8495_v48 = vsel %vm2557_vm0, %v8472_v58, 0  ;;  %v7310_v6 = vld [vmem:[%s9223_s3 + $0xa0] sm:$0xff]  }
 0x152   : > { %v8498_v0 = vsel %vm1322_vm8, %v2629_v27, %v2633_v40  ;;  %v2637_v5 = vor.u32 %v2635_v32, %v2633_v40  ;;  %6770 = vmatmul.mubr.bf16.gmra.mrb[4].mxu1 %v3996_v36  ;;  %v4004_v63 = vsel %vm1322_vm8, %v3999_v53, %v4003_v54  ;;  %v4011_v44 = vrot.slane %v4009_v38, 1  ;;  %6607 = vmatprep.subr.bf16.mxu0 %v7308_v39 }
 0x153   : > { %9352 = vst [vmem:[#allocation25_spill] sm:$0xff] %v8498_v0  ;;  %vm9276_vm13 = vcmp.ne.s16.totalorder %v8438_v14, 0  ;;  %v2571_v19 = vsel %vm2554_vm3, %v8328_v30, 0  ;;  %v2643_v31 = vshrl.u32 %v2570_v62, 16  ;;  %6773 = vmatprep.mubr.bf16.mxu1 %v4004_v63  ;;  %v8511_v36 = vsel %vm9265_vm12, %v8484_v16, 0  ;;  %6802 = vmatpush3.bf16.msra.mxu1 %v7311_v12  ;;  %v7315_v62 = vld [vmem:[%s9223_s3 + $0x1b0] sm:$0xff]  }
 0x154   : > { %v8514_v53 = vsel %vm1322_vm8, %v2637_v5, %v2641_v50  ;;  %v2647_v38 = vshll.u32 %v2571_v19, 16  ;;  %v2572_v27 = vsel %vm2555_vm6, %v8337_v37, 0  ;;  %v4013_v15 = vshrl.u32 %v8452_v20, 16  ;;  %6803 = vmatprep.subr.bf16.mxu1 %v7313_v13  ;;  %v8530_v0 = vld [vmem:[#allocation2 + $0x68] sm:$0xff] }
 0x155   : > { %9353 = vst [vmem:[#allocation26_spill] sm:$0xff] %v8514_v53  ;;  %v4017_v40 = vshll.u32 %v8495_v48, 16  ;;  %v2645_v32 = vor.u32 %v2643_v31, %v2641_v50  ;;  %v2655_v63 = vshll.u32 %v2572_v27, 16  ;;  %6608 = vmatpush3.bf16.msra.mxu0 %v7308_v39  ;;  %v8526_v12 = vsel %vm1500_vm11, %v8358_v3, %v2530_v11  ;;  %v7312_v50 = vld [vmem:[%s9223_s3 + $0xa8] sm:$0xff]  }
 0x156   : > { %9354 = vst [vmem:[#allocation27_spill] sm:$0xff] %v8526_v12  ;;  %v2544_v5 = vshll.u32 %v8455_v28, 16  ;;  %v2649_v4 = vrot.slane %v2647_v38, 1  ;;  %v2651_v29 = vshrl.u32 %v2571_v19, 16  ;;  %v4007_v57 = vor.u32 %v4005_v46, %v4003_v54  ;;  %6609 = vmatprep.subr.bf16.mxu0 %v7310_v6  ;;  %v8545_v38 = vld [vmem:[#allocation2 + $0x70] sm:$0xff] }
 0x157   : > { %v4015_v20 = vor.u32 %v4013_v15, %v4011_v44  ;;  %v4025_v53 = vshll.u32 %v8511_v36, 16  ;;  %v2657_v39 = vrot.slane %v2655_v63, 1  ;;  %6804 = vmatpush3.bf16.msra.mxu1 %v7313_v13  ;;  %v9355_v3 = vshll.u32 %v8404_v51, 16  ;;  %v7316_v13 = vld [vmem:[%s9223_s3 + $0x1b8] sm:$0xff]  }
 0x158   : > { %v8538_v28 = vrot.slane %v2541_v41, 7  ;;  %v8541_v54 = vsel %vm1322_vm8, %v2645_v32, %v2649_v4  ;;  %v2653_v46 = vor.u32 %v2651_v29, %v2649_v4  ;;  %6578 = vmatmul.mubr.bf16.gmra.mrb[40].mxu0 %v8290_v21  ;;  %v4012_v19 = vsel %vm1322_vm8, %v4007_v57, %v4011_v44  ;;  %6805 = vmatprep.subr.bf16.mxu1 %v7315_v62 }
 0x159   : > { %v2538_v11 = vor.u32 %v9355_v3, %v8480_v59  ;;  %v4019_v31 = vrot.slane %v4017_v40, 1  ;;  %v2573_v51 = vsel %vm9261_vm1, %v8400_v55, 0  ;;  %v2659_v41 = vshrl.u32 %v2572_v27, 16  ;;  %6581 = vmatprep.mubr.bf16.mxu0 %v8328_v30  ;;  %6610 = vmatpush3.bf16.msra.mxu0 %v7310_v6  ;;  %v7314_v40 = vld [vmem:[%s9223_s3 + $0xb0] sm:$0xff]  }
 0x15a   : > { %v8557_v29 = vsel %vm9264_vm5, %v8530_v0, 0  ;;  %v8560_v57 = vsel %vm1322_vm8, %v2653_v46, %v2657_v39  ;;  %v2663_v4 = vshll.u32 %v2573_v51, 16  ;;  %v2574_v44 = vsel %vm2557_vm0, %v8414_v8, 0  ;;  %6774 = vmatmul.mubr.bf16.gmra.mrb[8].mxu1 %v4012_v19  ;;  %6611 = vmatprep.subr.bf16.mxu0 %v7312_v50 }
 0x15b   : > { %v4020_v15 = vsel %vm1322_vm8, %v4015_v20, %v4019_v31  ;;  %v4027_v27 = vrot.slane %v4025_v53, 1  ;;  %v2661_v32 = vor.u32 %v2659_v41, %v2657_v39  ;;  %v2671_v63 = vshll.u32 %v2574_v44, 16  ;;  %6806 = vmatpush3.bf16.msra.mxu1 %v7315_v62  ;;  %v8581_v39 = vld [vmem:[%s9223_s3 + $0x1c0] sm:$0xff]  }
 0x15c   : > { %6777 = vmatprep.mubr.bf16.mxu1 %v4020_v15  ;;  %v8572_v6 = vsel %vm9276_vm13, %v8545_v38, 0  ;;  %vm9275_vm1 = vcmp.ne.s16.totalorder %v8526_v12, 0  ;;  %v2665_v3 = vrot.slane %v2663_v4, 1  ;;  %v2667_v46 = vshrl.u32 %v2573_v51, 16  ;;  %6807 = vmatprep.subr.bf16.mxu1 %v7316_v13 }
 0x15d   : > { %v4029_v53 = vshrl.u32 %v8511_v36, 16  ;;  %v4033_v20 = vshll.u32 %v8557_v29, 16  ;;  %v2546_v19 = vor.u32 %v2544_v5, %v8538_v28  ;;  %v2673_v41 = vrot.slane %v2671_v63, 1  ;;  %6612 = vmatpush3.bf16.msra.mxu0 %v7312_v50  ;;  %v7317_v63 = vld [vmem:[%s9223_s3 + $0xb8] sm:$0xff]  }
 0x15e   : > { %v4021_v15 = vshrl.u32 %v8495_v48, 16  ;;  %v8586_v62 = vsel %vm1500_vm11, %v8445_v2, %v2538_v11  ;;  %v8589_v36 = vsel %vm1322_vm8, %v2661_v32, %v2665_v3  ;;  %v2669_v51 = vor.u32 %v2667_v46, %v2665_v3  ;;  %6613 = vmatprep.subr.bf16.mxu0 %v7314_v40 }
 0x15f   : > { %9356 = vst [vmem:[#allocation28_spill] sm:$0xff] %v8586_v62  ;;  %v4031_v4 = vor.u32 %v4029_v53, %v4027_v27  ;;  %v4041_v5 = vshll.u32 %v8572_v6, 16  ;;  %v2575_v48 = vsel %vm9265_vm12, %v8472_v58, 0  ;;  %v2675_v2 = vshrl.u32 %v2574_v44, 16  ;;  %6808 = vmatpush3.bf16.msra.mxu1 %v7316_v13  ;;  %v8607_v53 = vld [vmem:[#allocation2 + $0x80] sm:$0xff] }
 0x160   : > { %v4023_v50 = vor.u32 %v4021_v15, %v4019_v31  ;;  %v8601_v11 = vsel %vm1322_vm8, %v2669_v51, %v2673_v41  ;;  %v2679_v32 = vshll.u32 %v2575_v48, 16  ;;  %v2576_v3 = vsel %vm9264_vm5, %v8484_v16, 0  ;;  %6582 = vmatmul.mubr.bf16.gmra.mrb[44].mxu0 %v8337_v37  ;;  %6841 = vmatprep.subr.bf16.mxu1 %v8581_v39 }
 0x161   : > { %v4035_v46 = vrot.slane %v4033_v20, 1  ;;  %v8611_v61 = vsel %vm1500_vm11, %v8480_v59, %v2546_v19  ;;  %v2677_v31 = vor.u32 %v2675_v2, %v2673_v41  ;;  %v2687_v13 = vshll.u32 %v2576_v3, 16  ;;  %6585 = vmatprep.mubr.bf16.mxu0 %v8400_v55  ;;  %6614 = vmatpush3.bf16.msra.mxu0 %v7314_v40  ;;  %v8626_v41 = vld [vmem:[%s9223_s3 + $0xc0] sm:$0xff]  }
 0x162   : > { %9357 = vst [vmem:[#allocation29_spill] sm:$0xff] %v8611_v61  ;;  %v4028_v44 = vsel %vm1322_vm8, %v4023_v50, %v4027_v27  ;;  %v8619_v15 = vsel %vm9275_vm1, %v8592_v7, 0  ;;  %v2681_v20 = vrot.slane %v2679_v32, 1  ;;  %v2683_v51 = vshrl.u32 %v2575_v48, 16  ;;  %6615 = vmatprep.subr.bf16.mxu0 %v7317_v63 }
 0x163   : > { %6778 = vmatmul.mubr.bf16.gmra.mrb[12].mxu1 %v4028_v44  ;;  %v4036_v59 = vsel %vm1322_vm8, %v4031_v4, %v4035_v46  ;;  %v4043_v19 = vrot.slane %v4041_v5, 1  ;;  %vm9270_vm5 = vcmp.ne.s16.totalorder %v8586_v62, 0  ;;  %v2689_v27 = vrot.slane %v2687_v13, 1 }
 0x164   : > { %6781 = vmatprep.mubr.bf16.mxu1 %v4036_v59  ;;  %v3925_v40 = vsel %vm9270_vm5, %v8607_v53, 0  ;;  %vm9274_vm12 = vcmp.ne.s16.totalorder %v8611_v61, 0  ;;  %v8633_v48 = vsel %vm1322_vm8, %v2677_v31, %v2681_v20  ;;  %v2685_v4 = vor.u32 %v2683_v51, %v2681_v20  ;;  %v8647_v51 = vld [vmem:[#allocation2 + $0x88] sm:$0xff] }
 0x165   : > { %v4045_v5 = vshrl.u32 %v8572_v6, 16  ;;  %v4049_v2 = vshll.u32 %v8619_v15, 16  ;;  %v2577_v50 = vsel %vm9276_vm13, %v8530_v0, 0  ;;  %v2691_v32 = vshrl.u32 %v2576_v3, 16  ;;  %6616 = vmatpush3.bf16.msra.mxu0 %v7317_v63 }
 0x166   : > { %v4037_v13 = vshrl.u32 %v8557_v29, 16  ;;  %v8642_v44 = vsel %vm1322_vm8, %v2685_v4, %v2689_v27  ;;  %v2695_v59 = vshll.u32 %v2577_v50, 16  ;;  %v2578_v31 = vsel %vm9275_vm1, %v8545_v38, 0  ;;  %6649 = vmatprep.subr.bf16.mxu0 %v8626_v41 }
 0x167   : > { %9358 = vst [vmem:[#allocation30_spill] sm:$0xff] %v8642_v44  ;;  %v4047_v20 = vor.u32 %v4045_v5, %v4043_v19  ;;  %v4057_v6 = vshll.u32 %v3925_v40, 16  ;;  %v2693_v14 = vor.u32 %v2691_v32, %v2689_v27  ;;  %v2703_v24 = vshll.u32 %v2578_v31, 16  ;;  %v3910_v32 = vld [vmem:[#allocation2 + $0x90] sm:$0x1] }
 0x168   : > { %v4039_v3 = vor.u32 %v4037_v13, %v4035_v46  ;;  %v2697_v18 = vrot.slane %v2695_v59, 1  ;;  %v2699_v29 = vshrl.u32 %v2577_v50, 16  ;;  %6586 = vmatmul.mubr.bf16.gmra.mrb[48].mxu0 %v8414_v8  ;;  %v4051_v63 = vrot.slane %v4049_v2, 1 }
 0x169   : > { %v2705_v4 = vrot.slane %v2703_v24, 1  ;;  %6589 = vmatprep.mubr.bf16.mxu0 %v8472_v58  ;;  %v3926_v5 = vsel %vm9274_vm12, %v8647_v51, 0  ;;  %v4059_v50 = vrot.slane %v4057_v6, 1  ;;  %v2579_v24 = vsel %vm9270_vm5, %v8592_v7, 0 }
 0x16a   : > { %v4044_v12 = vsel %vm1322_vm8, %v4039_v3, %v4043_v19  ;;  %v8657_v44 = vsel %vm1322_vm8, %v2693_v14, %v2697_v18  ;;  %v2701_v27 = vor.u32 %v2699_v29, %v2697_v18  ;;  %v4052_v46 = vsel %vm1322_vm8, %v4047_v20, %v4051_v63  ;;  %v4398_v20 = vld [vmem:[#allocation2 + $0x10] sm:$0x80] }
 0x16b   : > { %6782 = vmatmul.mubr.bf16.gmra.mrb[16].mxu1 %v4044_v12  ;;  %v2707_v2 = vshrl.u32 %v2578_v31, 16  ;;  %v4416_v19 = vsel %vm1451_vm9, %v8227_v34, 0  ;;  %v2711_v14 = vshll.u32 %v2579_v24, 16  ;;  %v8672_v18 = vsel %vm9274_vm12, %v8607_v53, 0 }
 0x16c   : > { %6785 = vmatprep.mubr.bf16.mxu1 %v4052_v46  ;;  %v8667_v13 = vsel %vm1322_vm8, %v2701_v27, %v2705_v4  ;;  %v4061_v12 = vshrl.u32 %v3925_v40, 16  ;;  %v4065_v59 = vshll.u32 %v3926_v5, 16  ;;  %v2719_v31 = vshll.u32 %v8672_v18, 16 }
 0x16d   : > { %9359 = vst [vmem:[#allocation31_spill] sm:$0xff] %v8667_v13  ;;  %v2709_v6 = vor.u32 %v2707_v2, %v2705_v4  ;;  %v4053_v3 = vshrl.u32 %v8619_v15, 16  ;;  %vm2564_vm5 = vcmp.ne.s16.totalorder %v8538_v28, 0  ;;  %v2713_v29 = vrot.slane %v2711_v14, 1 }
 0x16e   : > { %v2715_v46 = vshrl.u32 %v2579_v24, 16  ;;  %v4063_v27 = vor.u32 %v4061_v12, %v4059_v50  ;;  %v3927_v62 = vsel %vm2564_vm5, %v3910_v32, 0  ;;  %v4454_v52 = vshrl.u32 %v4416_v19, 16 }
 0x16f   : > { %v8679_v61 = vrot.slane %v2719_v31, 1  ;;  %v4055_v13 = vor.u32 %v4053_v3, %v4051_v63  ;;  %v4415_v40 = vsel %vm1450_vm10, %v4398_v20, 0  ;;  %v8684_v4 = vsel %vm1322_vm8, %v2709_v6, %v2713_v29 }
 0x170   : > { %v2717_v2 = vor.u32 %v2715_v46, %v2713_v29  ;;  %6590 = vmatmul.mubr.bf16.gmra.mrb[52].mxu0 %v8484_v16  ;;  %v4067_v15 = vrot.slane %v4065_v59, 1  ;;  %v4073_v14 = vshll.u32 %v3927_v62, 16  ;;  %v2565_v32 = vsel %vm2548_vm4, %v8147_v26, 0 }
 0x171   : > { %6593 = vmatprep.mubr.bf16.mxu0 %v8530_v0  ;;  %v4060_v24 = vsel %vm1322_vm8, %v4055_v13, %v4059_v50  ;;  %v4450_v20 = vshrl.u32 %v4415_v40, 16  ;;  %v4456_v6 = vrot.slane %v4454_v52, 7  ;;  %v4417_v59 = vsel %vm1452_vm15, %v8247_v47, 0 }
 0x172   : > { %v8694_v63 = vsel %vm1322_vm8, %v2717_v2, %v8679_v61  ;;  %v4068_v12 = vsel %vm1322_vm8, %v4063_v27, %v4067_v15  ;;  %v4069_v50 = vshrl.u32 %v3926_v5, 16  ;;  %v4418_v62 = vsel %vm1453_vm14, %v8277_v23, 0 }
 0x173   : > { %6786 = vmatmul.mubr.bf16.gmra.mrb[20].mxu1 %v4060_v24  ;;  %v4457_v26 = vshll.u32 %v4416_v19, 16  ;;  %v2602_v13 = vshll.u32 %v2565_v32, 16  ;;  %v4075_v3 = vrot.slane %v4073_v14, 1  ;;  %vm9360_vm12 = vcmp.ne.s16.totalorder %v7843_v49, 0 }
 0x174   : > { %6789 = vmatprep.mubr.bf16.mxu1 %v4068_v12  ;;  %v4071_v31 = vor.u32 %v4069_v50, %v4067_v15  ;;  %v2566_v29 = vsel %vm9360_vm12, %v8191_v1, 0  ;;  %v4462_v46 = vshrl.u32 %v4417_v59, 16  ;;  %v4452_v52 = vrot.slane %v4450_v20, 7 }
 0x175   : > { %v4459_v27 = vor.u32 %v4457_v26, %v4456_v6  ;;  %v4470_v40 = vshrl.u32 %v4418_v62, 16  ;;  %v2600_v47 = vshrl.u32 %v2565_v32, 16  ;;  %v2604_v5 = vrot.slane %v2602_v13, 1 }
 0x176   : > { %v2607_v2 = vshll.u32 %v2566_v29, 16  ;;  %v4076_v23 = vsel %vm1322_vm8, %v4071_v31, %v4075_v3  ;;  %v4464_v19 = vrot.slane %v4462_v46, 7  ;;  %vm9361_vm12 = vcmp.ne.s16.totalorder %v7718_v10, 0 }
 0x177   : > { %v4460_v15 = vsel %vm1500_vm11, %v4452_v52, %v4459_v27  ;;  %v4472_v24 = vrot.slane %v4470_v40, 7  ;;  %v4419_v1 = vsel %vm9361_vm12, %v8290_v21, 0  ;;  %v4465_v14 = vshll.u32 %v4417_v59, 16 }
 0x178   : > { %6594 = vmatmul.mubr.bf16.gmra.mrb[56].mxu0 %v8545_v38  ;;  %vm9362_vm1 = vcmp.ne.s16.totalorder %v7858_v60, 0  ;;  %vm9363_vm13 = vcmp.ne.s16.totalorder %v7735_v17, 0  ;;  %v2605_v20 = vor.u32 %v2604_v5, %v2600_v47  ;;  %v2609_v50 = vrot.slane %v2607_v2, 1 }
 0x179   : > { %6597 = vmatprep.mubr.bf16.mxu0 %v8592_v7  ;;  %v2567_v32 = vsel %vm9362_vm1, %v8227_v34, 0  ;;  %v4420_v12 = vsel %vm9363_vm13, %v8328_v30, 0  ;;  %v4473_v26 = vshll.u32 %v4418_v62, 16  ;;  %v4467_v13 = vor.u32 %v4465_v14, %v4464_v19  ;;  %v7321_v34 = vld [vmem:[%s9223_s3 + $0x1c8] sm:$0xff]  }
 0x17a   : > { %v4478_v31 = vshrl.u32 %v4419_v1, 16  ;;  %v2615_v46 = vshll.u32 %v2567_v32, 16  ;;  %v4486_v52 = vshrl.u32 %v4420_v12, 16  ;;  %v2610_v21 = vsel %vm1322_vm8, %v2605_v20, %v2609_v50 }
 0x17b   : > { %6790 = vmatmul.mubr.bf16.gmra.mrb[24].mxu1 %v4076_v23  ;;  %v4475_v3 = vor.u32 %v4473_v26, %v4472_v24  ;;  %v2611_v59 = vshrl.u32 %v2566_v29, 16  ;;  %v4468_v30 = vsel %vm1500_vm11, %v4456_v6, %v4467_v13  ;;  %vm9364_vm1 = vcmp.ne.s16.totalorder %v7758_v35, 0 }
 0x17c   : > { %6809 = vmatprep.mubr.bf16.mxu1 %v4460_v15  ;;  %v4480_v27 = vrot.slane %v4478_v31, 7  ;;  %v2617_v40 = vrot.slane %v2615_v46, 1  ;;  %v4488_v47 = vrot.slane %v4486_v52, 7  ;;  %v4421_v5 = vsel %vm9364_vm1, %v8337_v37, 0 }
 0x17d   : > { %v4476_v62 = vsel %vm1500_vm11, %v4464_v19, %v4475_v3  ;;  %v2613_v2 = vor.u32 %v2611_v59, %v2609_v50  ;;  %v4481_v23 = vshll.u32 %v4419_v1, 16  ;;  %vm9365_vm13 = vcmp.ne.s16.totalorder %v7814_v25, 0  ;;  %v7323_v19 = vld [vmem:[%s9223_s3 + $0x1d0] sm:$0xff]  }
 0x17e   : > { %v4422_v29 = vsel %vm9365_vm13, %v8400_v55, 0  ;;  %v2619_v6 = vshrl.u32 %v2567_v32, 16  ;;  %v4489_v15 = vshll.u32 %v4420_v12, 16  ;;  %v4494_v20 = vshrl.u32 %v4421_v5, 16  ;;  %v7325_v32 = vld [vmem:[%s9223_s3 + $0x1d8] sm:$0xff]  }
 0x17f   : > { %v4483_v14 = vor.u32 %v4481_v23, %v4480_v27  ;;  %v4502_v1 = vshrl.u32 %v4422_v29, 16  ;;  %v2618_v50 = vsel %vm1322_vm8, %v2613_v2, %v2617_v40  ;;  %vm9366_vm12 = vcmp.ne.s16.totalorder %v7829_v42, 0 }
 0x180   : > { %6598 = vmatmul.mubr.bf16.gmra.mrb[60].mxu0 %v8607_v53  ;;  %v2621_v26 = vor.u32 %v2619_v6, %v2617_v40  ;;  %v4491_v37 = vor.u32 %v4489_v15, %v4488_v47  ;;  %v4496_v13 = vrot.slane %v4494_v20, 7  ;;  %v4423_v46 = vsel %vm9366_vm12, %v8414_v8, 0  ;;  %v7324_v8 = vld [vmem:[%s9223_s3 + $0xd8] sm:$0xff]   ;;  %v9370_v6 = vld [vmem:[#allocation8_spill] sm:$0xff] }
 0x181   : > { %6617 = vmatprep.mubr.bf16.mxu0 %v2610_v21  ;;  %v4484_v12 = vsel %vm1500_vm11, %v4472_v24, %v4483_v14  ;;  %v4504_v3 = vrot.slane %v4502_v1, 7  ;;  %v4497_v52 = vshll.u32 %v4421_v5, 16  ;;  %vm9367_vm1 = vcmp.ne.s16.totalorder %v7832_v43, 0  ;;  %v7327_v21 = vld [vmem:[%s9223_s3 + $0x1e0] sm:$0xff]   ;;  %v9372_v20 = vld [vmem:[#allocation9_spill] sm:$0xff] }
 0x182   : > { %v2626_v55 = vsel %vm1322_vm8, %v2621_v26, %v8457_v22  ;;  %v4492_v31 = vsel %vm1500_vm11, %v4480_v27, %v4491_v37  ;;  %v7322_v22 = vld [vmem:[%s9223_s3 + $0xd0] sm:$0xff]   ;;  %v4505_v24 = vshll.u32 %v4422_v29, 16  ;;  %v4510_v59 = vshrl.u32 %v4423_v46, 16  ;;  %v9369_v40 = vld [vmem:[#allocation26_spill] sm:$0xff] }
 0x183   : > { %6810 = vmatmul.mubr.bf16.vlgmr.msra.gmra.mrb[28].mxu1 %v4468_v30  ;;  %vm9371_vm13 = vcmp.ne.s16.totalorder %v9370_v6, 0  ;;  %v4513_v14 = vshll.u32 %v4423_v46, 16  ;;  %vm9373_vm12 = vcmp.ne.s16.totalorder %v9372_v20, 0  ;;  %v7331_v37 = vld [vmem:[%s9223_s3 + $0x1f0] sm:$0xff]   ;;  %v2723_v45 = vshrl.u32 %v8672_v18, 16 }
 0x184   : > { %6813 = vmatprep.mubr.bf16.mxu1 %v4476_v62  ;;  %6842 = vmatpush3.bf16.msra.mxu1 %v8581_v39  ;;  %v7320_v39 = vld [vmem:[%s9223_s3 + $0xc8] sm:$0xff]   ;;  %v4507_v30 = vor.u32 %v4505_v24, %v4504_v3  ;;  %v9368_v62 = vld [vmem:[#allocation25_spill] sm:$0xff]  ;;  %v4512_v2 = vrot.slane %v4510_v59, 7  ;;  %v4425_v15 = vsel %vm9371_vm13, %v8484_v16, 0  ;;  %v8804_v24 = vld [vmem:[%s9223_s3 + $0x200] sm:$0xff]  }
 0x185   : > { %6843 = vmatprep.subr.bf16.mxu1 %v7321_v34  ;;  %v4526_v16 = vshrl.u32 %v4425_v15, 16 }
 0x186   : > { %v4508_v23 = vsel %vm1500_vm11, %v4496_v13, %v4507_v30  ;;  %v7333_v30 = vld [vmem:[%s9223_s3 + $0xf8] sm:$0xff]  }
 0x188   : > { %6844 = vmatpush3.bf16.msra.mxu1 %v7321_v34  ;;  %6618 = vmatmul.mubr.bf16.vlgmr.msra.gmra.mrb[32].mxu0 %v2618_v50  ;;  %v4499_v34 = vor.u32 %v4497_v52, %v4496_v13  ;;  %v4529_v52 = vshll.u32 %v4425_v15, 16 }
 0x189   : > { %6845 = vmatprep.subr.bf16.mxu1 %v7323_v19  ;;  %6650 = vmatpush3.bf16.msra.mxu0 %v8626_v41  ;;  %v4424_v41 = vsel %vm9367_vm1, %v8472_v58, 0  ;;  %v7329_v58 = vld [vmem:[%s9223_s3 + $0x1e8] sm:$0xff]  }
 0x18a   : > { %6621 = vmatprep.mubr.bf16.mxu0 %v2626_v55  ;;  %6651 = vmatprep.subr.bf16.mxu0 %v7320_v39  ;;  %v4518_v27 = vshrl.u32 %v4424_v41, 16  ;;  %v4500_v5 = vsel %vm1500_vm11, %v4488_v47, %v4499_v34  ;;  %v4426_v47 = vsel %vm9373_vm12, %v8530_v0, 0  ;;  %v4521_v26 = vshll.u32 %v4424_v41, 16  ;;  %v7328_v55 = vld [vmem:[%s9223_s3 + $0xe8] sm:$0xff]   ;;  %v7332_v0 = vld [vmem:[%s9223_s3 + $0x1f8] sm:$0xff]  }
 0x18b   : > { %6814 = vmatmul.mubr.bf16.gmra.mrb[0].mxu1 %v4484_v12  ;;  %v4534_v50 = vshrl.u32 %v4426_v47, 16  ;;  %v4528_v12 = vrot.slane %v4526_v16, 7  ;;  %v4537_v41 = vshll.u32 %v4426_v47, 16  ;;  %v9383_v16 = vld [vmem:[#allocation18_spill] sm:$0xff] }
 0x18c   : > { %6817 = vmatprep.mubr.bf16.mxu1 %v4492_v31  ;;  %6846 = vmatpush3.bf16.msra.mxu1 %v7323_v19  ;;  %v4520_v29 = vrot.slane %v4518_v27, 7  ;;  %v7326_v19 = vld [vmem:[%s9223_s3 + $0xe0] sm:$0xff]  }
 0x18d   : > { %6847 = vmatprep.subr.bf16.mxu1 %v7325_v32  ;;  %6652 = vmatpush3.bf16.msra.mxu0 %v7320_v39  ;;  %v4515_v39 = vor.u32 %v4513_v14, %v4512_v2  ;;  %v4536_v31 = vrot.slane %v4534_v50, 7  ;;  %v8823_v14 = vld [vmem:[%s9223_s3 + $0x100] sm:$0xff]  }
 0x18e   : > { %6653 = vmatprep.subr.bf16.mxu0 %v7322_v22  ;;  %v4523_v1 = vor.u32 %v4521_v26, %v4520_v29 }
 0x18f   : > { %v4539_v34 = vor.u32 %v4537_v41, %v4536_v31 }
 0x190   : > { %6848 = vmatpush3.bf16.msra.mxu1 %v7325_v32  ;;  %6622 = vmatmul.mubr.bf16.gmra.mrb[36].mxu0 %v9368_v62  ;;  %v4516_v32 = vsel %vm1500_vm11, %v4504_v3, %v4515_v39  ;;  %v4524_v13 = vsel %vm1500_vm11, %v4512_v2, %v4523_v1  ;;  %v8830_v39 = vld [vmem:[#allocation2] sm:$0xff] }
 0x191   : > { %6849 = vmatprep.subr.bf16.mxu1 %v7327_v21  ;;  %6625 = vmatprep.mubr.bf16.mxu0 %v9369_v40 }
 0x192   : > { %6654 = vmatpush3.bf16.msra.mxu0 %v7322_v22  ;;  %v9374_v22 = vld [vmem:[#allocation10_spill] sm:$0xff] }
 0x193   : > { %6818 = vmatmul.mubr.bf16.gmra.mrb[4].mxu1 %v4500_v5  ;;  %6655 = vmatprep.subr.bf16.mxu0 %v7324_v8  ;;  %vm9375_vm1 = vcmp.ne.s16.totalorder %v9374_v22, 0 }
 0x194   : > { %6821 = vmatprep.mubr.bf16.mxu1 %v4508_v23  ;;  %6850 = vmatpush3.bf16.msra.mxu1 %v7327_v21  ;;  %v4427_v46 = vsel %vm9375_vm1, %v8545_v38, 0  ;;  %v4531_v38 = vor.u32 %v4529_v52, %v4528_v12 }
 0x195   : > { %6851 = vmatprep.subr.bf16.mxu1 %v7329_v58  ;;  %v4542_v21 = vshrl.u32 %v4427_v46, 16  ;;  %v4545_v5 = vshll.u32 %v4427_v46, 16 }
 0x196   : > { %6656 = vmatpush3.bf16.msra.mxu0 %v7324_v8  ;;  %v4540_v8 = vsel %vm1500_vm11, %v4528_v12, %v4539_v34  ;;  %v8835_v12 = vld [vmem:[#allocation2 + $0x10] sm:$0xff] }
 0x197   : > { %6657 = vmatprep.subr.bf16.mxu0 %v7326_v19  ;;  %v4544_v27 = vrot.slane %v4542_v21, 7  ;;  %v2244_v21 = vld [vmem:[#allocation2 + $0x88] sm:$0x1] }
 0x198   : > { %6852 = vmatpush3.bf16.msra.mxu1 %v7329_v58  ;;  %6626 = vmatmul.mubr.bf16.gmra.mrb[40].mxu0 %v8541_v54  ;;  %v7330_v54 = vld [vmem:[%s9223_s3 + $0xf0] sm:$0xff]  }
 0x199   : > { %6853 = vmatprep.subr.bf16.mxu1 %v7331_v37  ;;  %6629 = vmatprep.mubr.bf16.mxu0 %v8560_v57  ;;  %v9376_v57 = vld [vmem:[#allocation11_spill] sm:$0xff]  ;;  %v9378_v58 = vld [vmem:[#allocation13_spill] sm:$0xff]  ;;  %v4547_v23 = vor.u32 %v4545_v5, %v4544_v27 }
 0x19a   : > { %6658 = vmatpush3.bf16.msra.mxu0 %v7326_v19  ;;  %vm9377_vm13 = vcmp.ne.s16.totalorder %v9376_v57, 0  ;;  %vm9379_vm12 = vcmp.ne.s16.totalorder %v9378_v58, 0 }
 0x19b   : > { %6822 = vmatmul.mubr.bf16.gmra.mrb[8].mxu1 %v4516_v32  ;;  %6659 = vmatprep.subr.bf16.mxu0 %v7328_v55  ;;  %v4428_v3 = vsel %vm9377_vm13, %v8592_v7, 0  ;;  %v4532_v7 = vsel %vm1500_vm11, %v4520_v29, %v4531_v38  ;;  %v4429_v40 = vsel %vm9379_vm12, %v8607_v53, 0  ;;  %v9382_v53 = vld [vmem:[#allocation30_spill] sm:$0xff]  ;;  %v4548_v47 = vsel %vm1500_vm11, %v4536_v31, %v4547_v23  ;;  %v3052_v38 = vld [vmem:[#allocation2 + $0x8] sm:$0x80] }
 0x19c   : > { %6825 = vmatprep.mubr.bf16.mxu1 %v4524_v13  ;;  %6854 = vmatpush3.bf16.msra.mxu1 %v7331_v37  ;;  %v4550_v59 = vshrl.u32 %v4428_v3, 16  ;;  %v4558_v29 = vshrl.u32 %v4429_v40, 16  ;;  %vm9384_vm13 = vcmp.ne.s16.totalorder %v9383_v16, 0  ;;  %v4561_v50 = vshll.u32 %v4429_v40, 16  ;;  %v9385_v13 = vld [vmem:[#allocation31_spill] sm:$0xff] }
 0x19d   : > { %6855 = vmatprep.subr.bf16.mxu1 %v7332_v0  ;;  %v4431_v1 = vsel %vm9384_vm13, %v8830_v39, 0  ;;  %vm9391_vm12 = vcmp.ne.s16.totalorder %v7829_v42, 0  ;;  %v7347_v42 = vld [vmem:[%s9223_s3 + $0x118] sm:$0xff]   ;;  %vm9393_vm13 = vcmp.ne.s16.totalorder %v9370_v6, 0  ;;  %v7349_v6 = vld [vmem:[%s9223_s3 + $0x128] sm:$0xff]  }
 0x19e   : > { %6660 = vmatpush3.bf16.msra.mxu0 %v7328_v55  ;;  %v4552_v62 = vrot.slane %v4550_v59, 7 }
 0x19f   : > { %6661 = vmatprep.subr.bf16.mxu0 %v7330_v54 }
 0x1a0   : > { %6856 = vmatpush3.bf16.msra.mxu1 %v7332_v0  ;;  %6630 = vmatmul.mubr.bf16.gmra.mrb[44].mxu0 %v8589_v36  ;;  %v9380_v36 = vld [vmem:[#allocation14_spill] sm:$0xff] }
 0x1a1   : > { %6889 = vmatprep.subr.bf16.mxu1 %v8804_v24  ;;  %6633 = vmatprep.mubr.bf16.mxu0 %v8601_v11  ;;  %vm9381_vm1 = vcmp.ne.s16.totalorder %v9380_v36, 0  ;;  %v4553_v11 = vshll.u32 %v4428_v3, 16  ;;  %v3070_v3 = vsel %vm1451_vm9, %v8835_v12, 0  ;;  %vm9387_vm9 = vcmp.ne.s16.totalorder %v7718_v10, 0  ;;  %v7336_v10 = vld [vmem:[%s9223_s3 + $0x210] sm:$0xff]  }
 0x1a2   : > { %6662 = vmatpush3.bf16.msra.mxu0 %v7330_v54  ;;  %v4430_v2 = vsel %vm9381_vm1, %v8647_v51, 0  ;;  %v4560_v51 = vrot.slane %v4558_v29, 7  ;;  %v4577_v54 = vshll.u32 %v4431_v1, 16  ;;  %v3108_v34 = vshrl.u32 %v3070_v3, 16 }
 0x1a3   : > { %6826 = vmatmul.mubr.bf16.gmra.mrb[12].mxu1 %v4532_v7  ;;  %6663 = vmatprep.subr.bf16.mxu0 %v7333_v30  ;;  %v4555_v15 = vor.u32 %v4553_v11, %v4552_v62  ;;  %v4566_v19 = vshrl.u32 %v4430_v2, 16  ;;  %v4569_v55 = vshll.u32 %v4430_v2, 16  ;;  %v2581_v7 = vsel %vm2564_vm5, %v2244_v21, 0 }
 0x1a4   : > { %6829 = vmatprep.mubr.bf16.mxu1 %v4540_v8  ;;  %v4563_v0 = vor.u32 %v4561_v50, %v4560_v51  ;;  %v2727_v2 = vshll.u32 %v2581_v7, 16  ;;  %v3111_v23 = vshll.u32 %v3070_v3, 16  ;;  %vm9392_vm1 = vcmp.ne.s16.totalorder %v7832_v43, 0  ;;  %v7340_v43 = vld [vmem:[%s9223_s3 + $0x230] sm:$0xff]  }
 0x1a5   : > { %v4556_v26 = vsel %vm1500_vm11, %v4544_v27, %v4555_v15  ;;  %v4568_v37 = vrot.slane %v4566_v19, 7  ;;  %v8850_v27 = vld [vmem:[#allocation2 + $0x20] sm:$0xff] }
 0x1a6   : > { %6664 = vmatpush3.bf16.msra.mxu0 %v7333_v30  ;;  %v4564_v31 = vsel %vm1500_vm11, %v4552_v62, %v4563_v0  ;;  %v8844_v30 = vld [vmem:[#allocation2 + $0x18] sm:$0xff]  ;;  %v3110_v62 = vrot.slane %v3108_v34, 7  ;;  %v3072_v11 = vsel %vm1453_vm14, %v8850_v27, 0  ;;  %vm9389_vm14 = vcmp.ne.s16.totalorder %v7758_v35, 0  ;;  %v7345_v34 = vld [vmem:[%s9223_s3 + $0x108] sm:$0xff]  }
 0x1a7   : > { %6697 = vmatprep.subr.bf16.mxu0 %v8823_v14  ;;  %v4571_v32 = vor.u32 %v4569_v55, %v4568_v37  ;;  %v3071_v40 = vsel %vm1452_vm15, %v8844_v30, 0  ;;  %v3124_v19 = vshrl.u32 %v3072_v11, 16  ;;  %v3127_v55 = vshll.u32 %v3072_v11, 16 }
 0x1a8   : > { %6634 = vmatmul.mubr.bf16.gmra.mrb[48].mxu0 %v8633_v48  ;;  %v4574_v48 = vshrl.u32 %v4431_v1, 16  ;;  %v3116_v29 = vshrl.u32 %v3071_v40, 16  ;;  %v3113_v15 = vor.u32 %v3111_v23, %v3110_v62  ;;  %v3119_v1 = vshll.u32 %v3071_v40, 16  ;;  %v8914_v40 = vld [vmem:[#allocation2 + $0x50] sm:$0xff] }
 0x1a9   : > { %6637 = vmatprep.mubr.bf16.mxu0 %v9382_v53  ;;  %v4572_v41 = vsel %vm1500_vm11, %v4560_v51, %v4571_v32  ;;  %v8864_v53 = vld [vmem:[#allocation2 + $0x28] sm:$0xff]  ;;  %vm9390_vm15 = vcmp.ne.s16.totalorder %v7814_v25, 0  ;;  %v7338_v25 = vld [vmem:[%s9223_s3 + $0x220] sm:$0xff]  }
 0x1aa   : > { %v4576_v46 = vrot.slane %v4574_v48, 7  ;;  %v3118_v51 = vrot.slane %v3116_v29, 7 }
 0x1ab   : > { %6830 = vmatmul.mubr.bf16.gmra.mrb[16].mxu1 %v4548_v47  ;;  %v8866_v47 = vld [vmem:[#allocation2 + $0x30] sm:$0xff] }
 0x1ac   : > { %6833 = vmatprep.mubr.bf16.mxu1 %v4556_v26  ;;  %v4579_v59 = vor.u32 %v4577_v54, %v4576_v46  ;;  %v3126_v26 = vrot.slane %v3124_v19, 7  ;;  %v3121_v0 = vor.u32 %v3119_v1, %v3118_v51 }
 0x1ae   : > { %v4580_v5 = vsel %vm1500_vm11, %v4568_v37, %v4579_v59  ;;  %v3073_v37 = vsel %vm9387_vm9, %v8864_v53, 0  ;;  %v3129_v32 = vor.u32 %v3127_v55, %v3126_v26  ;;  %v3122_v46 = vsel %vm1500_vm11, %v3110_v62, %v3121_v0  ;;  %v7346_v62 = vld [vmem:[%s9223_s3 + $0x110] sm:$0xff]  }
 0x1af   : > { %v3132_v48 = vshrl.u32 %v3073_v37, 16  ;;  %vm9394_vm9 = vcmp.ne.s16.totalorder %v9372_v20, 0  ;;  %v8960_v20 = vld [vmem:[#allocation2 + $0x70] sm:$0xff] }
 0x1b0   : > { %6638 = vmatmul.mubr.bf16.gmra.mrb[52].mxu0 %v8657_v44  ;;  %v3069_v44 = vsel %vm1450_vm10, %v3052_v38, 0  ;;  %vm9388_vm10 = vcmp.ne.s16.totalorder %v7735_v17, 0  ;;  %v8887_v17 = vld [vmem:[#allocation2 + $0x40] sm:$0xff]  ;;  %v3130_v52 = vsel %vm1500_vm11, %v3118_v51, %v3129_v32  ;;  %v3135_v38 = vshll.u32 %v3073_v37, 16 }
 0x1b1   : > { %6641 = vmatprep.mubr.bf16.mxu0 %v9385_v13  ;;  %v3104_v8 = vshrl.u32 %v3069_v44, 16  ;;  %v3074_v50 = vsel %vm9388_vm10, %v8866_v47, 0  ;;  %v3134_v54 = vrot.slane %v3132_v48, 7  ;;  %v3076_v21 = vsel %vm9390_vm15, %v8887_v17, 0  ;;  %v7341_v48 = vld [vmem:[%s9223_s3 + $0x238] sm:$0xff]  }
 0x1b2   : > { %v3140_v13 = vshrl.u32 %v3074_v50, 16  ;;  %v3143_v35 = vshll.u32 %v3074_v50, 16  ;;  %v3156_v7 = vshrl.u32 %v3076_v21, 16  ;;  %vm9395_vm10 = vcmp.ne.s16.totalorder %v9374_v22, 0 }
 0x1b3   : > { %6834 = vmatmul.mubr.bf16.gmra.mrb[20].mxu1 %v4564_v31  ;;  %v3106_v56 = vrot.slane %v3104_v8, 7  ;;  %v8885_v31 = vld [vmem:[#allocation2 + $0x38] sm:$0xff]  ;;  %v3137_v59 = vor.u32 %v3135_v38, %v3134_v54  ;;  %v8909_v8 = vld [vmem:[#allocation2 + $0x48] sm:$0xff]  ;;  %vm9397_vm15 = vcmp.ne.s16.totalorder %v9378_v58, 0  ;;  %v5257_v58 = vsel %vm2548_vm4, %v8844_v30, 0 }
 0x1b4   : > { %6837 = vmatprep.mubr.bf16.mxu1 %v4572_v41  ;;  %v3075_v3 = vsel %vm9389_vm14, %v8885_v31, 0  ;;  %v7337_v41 = vld [vmem:[%s9223_s3 + $0x218] sm:$0xff]   ;;  %v3158_v11 = vrot.slane %v3156_v7, 7  ;;  %v3077_v23 = vsel %vm9391_vm12, %v8909_v8, 0  ;;  %vm9396_vm14 = vcmp.ne.s16.totalorder %v9376_v57, 0  ;;  %v8980_v57 = vld [vmem:[#allocation2 + $0x80] sm:$0xff] }
 0x1b5   : > { %v3114_v9 = vsel %vm1500_vm11, %v3106_v56, %v3113_v15  ;;  %v3148_v44 = vshrl.u32 %v3075_v3, 16  ;;  %v3151_v29 = vshll.u32 %v3075_v3, 16  ;;  %v3078_v56 = vsel %vm9392_vm1, %v8914_v40, 0  ;;  %v8958_v3 = vld [vmem:[#allocation2 + $0x68] sm:$0xff] }
 0x1b6   : > { %v3159_v15 = vshll.u32 %v3076_v21, 16  ;;  %v3172_v51 = vshrl.u32 %v3078_v56, 16  ;;  %v3167_v32 = vshll.u32 %v3077_v23, 16  ;;  %vm9398_vm12 = vcmp.ne.s16.totalorder %v9380_v36, 0 }
 0x1b7   : > { %vm9399_vm1 = vcmp.ne.s16.totalorder %v7843_v49, 0  ;;  %vm9401_vm4 = vcmp.ne.s16.totalorder %v7858_v60, 0 }
 0x1b8   : > { %6642 = vmatmul.mubr.bf16.gmra.mrb[56].mxu0 %v8684_v4  ;;  %v2725_v4 = vor.u32 %v2723_v45, %v8679_v61  ;;  %v7335_v61 = vld [vmem:[%s9223_s3 + $0x208] sm:$0xff]   ;;  %v3150_v45 = vrot.slane %v3148_v44, 7  ;;  %v3174_v55 = vrot.slane %v3172_v51, 7  ;;  %v5258_v36 = vsel %vm9399_vm1, %v8850_v27, 0 }
 0x1b9   : > { %6645 = vmatprep.mubr.bf16.mxu0 %v8694_v63  ;;  %v2729_v63 = vrot.slane %v2727_v2, 1 }
 0x1ba   : > { %v3153_v19 = vor.u32 %v3151_v29, %v3150_v45 }
 0x1bb   : > { %6838 = vmatmul.mubr.bf16.gmra.mrb[24].mxu1 %v4580_v5  ;;  %v2730_v18 = vsel %vm1322_vm8, %v2725_v4, %v2729_v63  ;;  %v3138_v5 = vsel %vm1500_vm11, %v3126_v26, %v3137_v59  ;;  %v7339_v4 = vld [vmem:[%s9223_s3 + $0x228] sm:$0xff]   ;;  %v3164_v63 = vshrl.u32 %v3077_v23, 16  ;;  %v8937_v26 = vld [vmem:[#allocation2 + $0x60] sm:$0xff]  ;;  %v3081_v59 = vsel %vm9395_vm10, %v8958_v3, 0 }
 0x1bc   : > { %6857 = vmatprep.mubr.bf16.mxu1 %v8844_v30  ;;  %v3196_v22 = vshrl.u32 %v3081_v59, 16 }
 0x1bd   : > { %v3166_v1 = vrot.slane %v3164_v63, 7 }
 0x1be   : > { %v3198_v23 = vrot.slane %v3196_v22, 7 }
 0x1c0   : > { %6646 = vmatmul.mubr.bf16.gmra.mrb[60].mxu0 %v2730_v18  ;;  %v3161_v18 = vor.u32 %v3159_v15, %v3158_v11  ;;  %v3199_v15 = vshll.u32 %v3081_v59, 16 }
 0x1c1   : > { %6665 = vmatprep.mubr.bf16.mxu0 %v3114_v9  ;;  %v8935_v9 = vld [vmem:[#allocation2 + $0x58] sm:$0xff] }
 0x1c2   : > { %v3162_v50 = vsel %vm1500_vm11, %v3150_v45, %v3161_v18  ;;  %v3079_v0 = vsel %vm9393_vm13, %v8935_v9, 0  ;;  %v3201_v63 = vor.u32 %v3199_v15, %v3198_v23  ;;  %vm9400_vm13 = vcmp.ne.s16.totalorder %v9383_v16, 0 }
 0x1c3   : > { %6858 = vmatmul.mubr.bf16.vlgmr.msra.gmra.mrb[28].mxu1 %v8850_v27  ;;  %v3183_v44 = vshll.u32 %v3079_v0, 16 }
 0x1c4   : > { %6861 = vmatprep.mubr.bf16.mxu1 %v8864_v53  ;;  %6890 = vmatpush3.bf16.msra.mxu1 %v8804_v24  ;;  %v3142_v24 = vrot.slane %v3140_v13, 7  ;;  %v3080_v13 = vsel %vm9394_vm9, %v8937_v26, 0 }
 0x1c5   : > { %6891 = vmatprep.subr.bf16.mxu1 %v7335_v61  ;;  %v3191_v7 = vshll.u32 %v3080_v13, 16 }
 0x1c6   : > { %v3154_v37 = vsel %vm1500_vm11, %v3142_v24, %v3153_v19 }
 0x1c8   : > { %6892 = vmatpush3.bf16.msra.mxu1 %v7335_v61  ;;  %6666 = vmatmul.mubr.bf16.vlgmr.msra.gmra.mrb[32].mxu0 %v3122_v46  ;;  %v7348_v61 = vld [vmem:[%s9223_s3 + $0x120] sm:$0xff]   ;;  %v3169_v46 = vor.u32 %v3167_v32, %v3166_v1 }
 0x1c9   : > { %6893 = vmatprep.subr.bf16.mxu1 %v7336_v10  ;;  %6698 = vmatpush3.bf16.msra.mxu0 %v8823_v14  ;;  %v3145_v14 = vor.u32 %v3143_v35, %v3142_v24  ;;  %v3188_v24 = vshrl.u32 %v3080_v13, 16  ;;  %v5299_v13 = vshll.u32 %v5258_v36, 16 }
 0x1ca   : > { %6669 = vmatprep.mubr.bf16.mxu0 %v3130_v52  ;;  %6699 = vmatprep.subr.bf16.mxu0 %v7345_v34  ;;  %v3170_v38 = vsel %vm1500_vm11, %v3158_v11, %v3169_v46  ;;  %v5259_v46 = vsel %vm9401_vm4, %v8864_v53, 0 }
 0x1cb   : > { %6862 = vmatmul.mubr.bf16.gmra.mrb[0].mxu1 %v8866_v47  ;;  %v3146_v2 = vsel %vm1500_vm11, %v3134_v54, %v3145_v14  ;;  %v3180_v54 = vshrl.u32 %v3079_v0, 16  ;;  %v3190_v35 = vrot.slane %v3188_v24, 7  ;;  %v3082_v14 = vsel %vm9396_vm14, %v8960_v20, 0 }
 0x1cc   : > { %6865 = vmatprep.mubr.bf16.mxu1 %v8885_v31  ;;  %6894 = vmatpush3.bf16.msra.mxu1 %v7336_v10  ;;  %v3175_v10 = vshll.u32 %v3078_v56, 16  ;;  %v3204_v45 = vshrl.u32 %v3082_v14, 16  ;;  %v3207_v19 = vshll.u32 %v3082_v14, 16  ;;  %v5294_v0 = vshll.u32 %v5257_v58, 16 }
 0x1cd   : > { %6895 = vmatprep.subr.bf16.mxu1 %v7337_v41  ;;  %6700 = vmatpush3.bf16.msra.mxu0 %v7345_v34  ;;  %v3182_v21 = vrot.slane %v3180_v54, 7  ;;  %v5292_v54 = vshrl.u32 %v5257_v58, 16  ;;  %v5311_v22 = vshrl.u32 %v5259_v46, 16  ;;  %v5256_v58 = vld [vmem:[#allocation2 + $0x98] sm:$0x1] }
 0x1ce   : > { %6701 = vmatprep.subr.bf16.mxu0 %v7346_v62  ;;  %v3177_v52 = vor.u32 %v3175_v10, %v3174_v55  ;;  %v3206_v29 = vrot.slane %v3204_v45, 7 }
 0x1d0   : > { %6896 = vmatpush3.bf16.msra.mxu1 %v7337_v41  ;;  %6670 = vmatmul.mubr.bf16.gmra.mrb[36].mxu0 %v3138_v5  ;;  %v7350_v41 = vld [vmem:[%s9223_s3 + $0x130] sm:$0xff]   ;;  %v3178_v34 = vsel %vm1500_vm11, %v3166_v1, %v3177_v52  ;;  %v3193_v5 = vor.u32 %v3191_v7, %v3190_v35  ;;  %v3209_v51 = vor.u32 %v3207_v19, %v3206_v29  ;;  %v5301_v52 = vrot.slane %v5299_v13, 1 }
 0x1d1   : > { %6897 = vmatprep.subr.bf16.mxu1 %v7338_v25  ;;  %6673 = vmatprep.mubr.bf16.mxu0 %v3146_v2  ;;  %v8978_v2 = vld [vmem:[#allocation2 + $0x78] sm:$0xff] }
 0x1d2   : > { %6702 = vmatpush3.bf16.msra.mxu0 %v7346_v62  ;;  %v3185_v62 = vor.u32 %v3183_v44, %v3182_v21  ;;  %v3083_v56 = vsel %vm9397_vm15, %v8978_v2, 0  ;;  %v5303_v44 = vshrl.u32 %v5258_v36, 16 }
 0x1d3   : > { %6866 = vmatmul.mubr.bf16.gmra.mrb[4].mxu1 %v8887_v17  ;;  %6703 = vmatprep.subr.bf16.mxu0 %v7347_v42  ;;  %v3212_v18 = vshrl.u32 %v3083_v56, 16  ;;  %v3215_v32 = vshll.u32 %v3083_v56, 16 }
 0x1d4   : > { %6869 = vmatprep.mubr.bf16.mxu1 %v8909_v8  ;;  %6898 = vmatpush3.bf16.msra.mxu1 %v7338_v25  ;;  %v7351_v25 = vld [vmem:[%s9223_s3 + $0x138] sm:$0xff]   ;;  %v3186_v11 = vsel %vm1500_vm11, %v3174_v55, %v3185_v62 }
 0x1d5   : > { %6899 = vmatprep.subr.bf16.mxu1 %v7339_v4  ;;  %v3214_v1 = vrot.slane %v3212_v18, 7 }
 0x1d6   : > { %6704 = vmatpush3.bf16.msra.mxu0 %v7347_v42  ;;  %v3084_v42 = vsel %vm9398_vm12, %v8980_v57, 0 }
 0x1d7   : > { %6705 = vmatprep.subr.bf16.mxu0 %v7348_v61  ;;  %v3223_v33 = vshll.u32 %v3084_v42, 16  ;;  %v3217_v10 = vor.u32 %v3215_v32, %v3214_v1  ;;  %v9408_v32 = vld [vmem:[#allocation20_spill] sm:$0xff] }
 0x1d8   : > { %6900 = vmatpush3.bf16.msra.mxu1 %v7339_v4  ;;  %6674 = vmatmul.mubr.bf16.gmra.mrb[40].mxu0 %v3154_v37  ;;  %v3194_v4 = vsel %vm1500_vm11, %v3182_v21, %v3193_v5  ;;  %v3202_v37 = vsel %vm1500_vm11, %v3190_v35, %v3201_v63  ;;  %v5307_v35 = vshll.u32 %v5259_v46, 16 }
 0x1d9   : > { %6901 = vmatprep.subr.bf16.mxu1 %v7340_v43  ;;  %6677 = vmatprep.mubr.bf16.mxu0 %v3162_v50  ;;  %v3210_v50 = vsel %vm1500_vm11, %v3198_v23, %v3209_v51  ;;  %v3218_v16 = vsel %vm1500_vm11, %v3206_v29, %v3217_v10  ;;  %v5263_v51 = vsel %vm2554_vm3, %v8909_v8, 0  ;;  %v5266_v10 = vsel %vm2557_vm0, %v8937_v26, 0 }
 0x1da   : > { %6706 = vmatpush3.bf16.msra.mxu0 %v7348_v61  ;;  %v8992_v61 = vld [vmem:[#allocation2 + $0x88] sm:$0xff]  ;;  %v5309_v7 = vrot.slane %v5307_v35, 1  ;;  %v5343_v13 = vshrl.u32 %v5263_v51, 16 }
 0x1db   : > { %6870 = vmatmul.mubr.bf16.gmra.mrb[8].mxu1 %v8914_v40  ;;  %6707 = vmatprep.subr.bf16.mxu0 %v7349_v6 }
 0x1dc   : > { %6873 = vmatprep.mubr.bf16.mxu1 %v8935_v9  ;;  %6902 = vmatpush3.bf16.msra.mxu1 %v7340_v43  ;;  %v3220_v43 = vshrl.u32 %v3084_v42, 16 }
 0x1dd   : > { %6903 = vmatprep.subr.bf16.mxu1 %v7341_v48 }
 0x1de   : > { %6708 = vmatpush3.bf16.msra.mxu0 %v7349_v6  ;;  %v3222_v55 = vrot.slane %v3220_v43, 7  ;;  %v5296_v6 = vrot.slane %v5294_v0, 1 }
 0x1df   : > { %6709 = vmatprep.subr.bf16.mxu0 %v7350_v41 }
 0x1e0   : > { %6904 = vmatpush3.bf16.msra.mxu1 %v7341_v48  ;;  %6678 = vmatmul.mubr.bf16.gmra.mrb[44].mxu0 %v3170_v38  ;;  %v3085_v48 = vsel %vm9400_vm13, %v8992_v61, 0  ;;  %v3225_v27 = vor.u32 %v3223_v33, %v3222_v55  ;;  %v5260_v38 = vsel %vm2551_vm7, %v8866_v47, 0  ;;  %v5261_v47 = vsel %vm2552_vm2, %v8885_v31, 0 }
 0x1e1   : > { %6681 = vmatprep.mubr.bf16.mxu0 %v3178_v34  ;;  %v3228_v49 = vshrl.u32 %v3085_v48, 16  ;;  %v5297_v34 = vor.u32 %v5296_v6, %v5292_v54  ;;  %v3231_v59 = vshll.u32 %v3085_v48, 16  ;;  %v5315_v53 = vshll.u32 %v5260_v38, 16 }
 0x1e2   : > { %6710 = vmatpush3.bf16.msra.mxu0 %v7350_v41  ;;  %v3226_v21 = vsel %vm1500_vm11, %v3214_v1, %v3225_v27  ;;  %v5323_v29 = vshll.u32 %v5261_v47, 16  ;;  %v5319_v31 = vshrl.u32 %v5260_v38, 16  ;;  %v5339_v1 = vshll.u32 %v5263_v51, 16 }
 0x1e3   : > { %6874 = vmatmul.mubr.bf16.gmra.mrb[12].mxu1 %v8937_v26  ;;  %6711 = vmatprep.subr.bf16.mxu0 %v7351_v25  ;;  %v3230_v24 = vrot.slane %v3228_v49, 7  ;;  %v5302_v60 = vsel %vm1322_vm8, %v5297_v34, %v5301_v52  ;;  %v5317_v5 = vrot.slane %v5315_v53, 1  ;;  %v5363_v54 = vshll.u32 %v5266_v10, 16  ;;  %v9413_v26 = vld [vmem:[#allocation23_spill] sm:$0xff] }
 0x1e4   : > { %6877 = vmatprep.mubr.bf16.mxu1 %v8958_v3  ;;  %v5325_v19 = vrot.slane %v5323_v29, 1  ;;  %v5341_v48 = vrot.slane %v5339_v1, 1 }
 0x1e5   : > { %v3233_v14 = vor.u32 %v3231_v59, %v3230_v24  ;;  %v5321_v63 = vor.u32 %v5319_v31, %v5317_v5 }
 0x1e6   : > { %6712 = vmatpush3.bf16.msra.mxu0 %v7351_v25  ;;  %v5305_v25 = vor.u32 %v5303_v44, %v5301_v52  ;;  %v5345_v49 = vor.u32 %v5343_v13, %v5341_v48 }
 0x1e7   : > { %v3234_v45 = vsel %vm1500_vm11, %v3222_v55, %v3233_v14  ;;  %v5326_v36 = vsel %vm1322_vm8, %v5321_v63, %v5325_v19  ;;  %vm9409_vm11 = vcmp.ne.s16.totalorder %v9408_v32, 0  ;;  %v5367_v14 = vshrl.u32 %v5266_v10, 16 }
 0x1e8   : > { %6682 = vmatmul.mubr.bf16.gmra.mrb[48].mxu0 %v3186_v11  ;;  %v9404_v11 = vld [vmem:[#allocation16_spill] sm:$0xff]  ;;  %v5310_v56 = vsel %vm1322_vm8, %v5305_v25, %v5309_v7  ;;  %v5265_v33 = vsel %vm9409_vm11, %v8935_v9, 0  ;;  %v9411_v9 = vld [vmem:[#allocation22_spill] sm:$0xff] }
 0x1e9   : > { %6685 = vmatprep.mubr.bf16.mxu0 %v3194_v4  ;;  %vm9405_vm7 = vcmp.ne.s16.totalorder %v9404_v11, 0  ;;  %v5313_v4 = vor.u32 %v5311_v22, %v5309_v7  ;;  %v5355_v27 = vshll.u32 %v5265_v33, 16  ;;  %vm9412_vm2 = vcmp.ne.s16.totalorder %v9411_v9, 0 }
 0x1ea   : > { %v5262_v23 = vsel %vm9405_vm7, %v8887_v17, 0  ;;  %v5327_v17 = vshrl.u32 %v5261_v47, 16  ;;  %v5267_v41 = vsel %vm9412_vm2, %v8958_v3, 0  ;;  %v5359_v38 = vshrl.u32 %v5265_v33, 16  ;;  %v9415_v3 = vld [vmem:[#allocation24_spill] sm:$0xff] }
 0x1eb   : > { %6878 = vmatmul.mubr.bf16.gmra.mrb[16].mxu1 %v8960_v20  ;;  %v5318_v15 = vsel %vm1322_vm8, %v5313_v4, %v5317_v5  ;;  %v5331_v42 = vshll.u32 %v5262_v23, 16  ;;  %v5335_v0 = vshrl.u32 %v5262_v23, 16  ;;  %v5371_v59 = vshll.u32 %v5267_v41, 16 }
 0x1ec   : > { %6881 = vmatprep.mubr.bf16.mxu1 %v8978_v2  ;;  %vm9416_vm3 = vcmp.ne.s16.totalorder %v9415_v3, 0  ;;  %v5375_v47 = vshrl.u32 %v5267_v41, 16 }
 0x1ed   : > { %v5333_v43 = vrot.slane %v5331_v42, 1  ;;  %v5373_v7 = vrot.slane %v5371_v59, 1  ;;  %v5269_v62 = vsel %vm9416_vm3, %v8978_v2, 0 }
 0x1ee   : > { %v5387_v11 = vshll.u32 %v5269_v62, 16 }
 0x1ef   : > { %v5337_v8 = vor.u32 %v5335_v0, %v5333_v43 }
 0x1f0   : > { %6686 = vmatmul.mubr.bf16.gmra.mrb[52].mxu0 %v3202_v37  ;;  %v5329_v37 = vor.u32 %v5327_v17, %v5325_v19  ;;  %v5389_v42 = vrot.slane %v5387_v11, 1  ;;  %v5391_v19 = vshrl.u32 %v5269_v62, 16 }
 0x1f1   : > { %6689 = vmatprep.mubr.bf16.mxu0 %v3210_v50  ;;  %v5342_v6 = vsel %vm1322_vm8, %v5337_v8, %v5341_v48 }
 0x1f2   : > { %v5334_v50 = vsel %vm1322_vm8, %v5329_v37, %v5333_v43  ;;  %v5393_v17 = vor.u32 %v5391_v19, %v5389_v42 }
 0x1f3   : > { %6882 = vmatmul.mubr.bf16.gmra.mrb[20].mxu1 %v8980_v57 }
 0x1f4   : > { %6885 = vmatprep.mubr.bf16.mxu1 %v8992_v61 }
 0x1f8   : > { %6690 = vmatmul.mubr.bf16.gmra.mrb[56].mxu0 %v3218_v16  ;;  %v5357_v16 = vrot.slane %v5355_v27, 1 }
 0x1f9   : > { %6693 = vmatprep.mubr.bf16.mxu0 %v3226_v21  ;;  %v5365_v21 = vrot.slane %v5363_v54, 1 }
 0x1fa   : > { %v5361_v35 = vor.u32 %v5359_v38, %v5357_v16 }
 0x1fb   : > { %6886 = vmatmul.mubr.bf16.gmra.mrb[24].mxu1 %v8830_v39  ;;  %v5369_v25 = vor.u32 %v5367_v14, %v5365_v21 }
 0x1fc   : > { %6905 = vmatprep.mubr.bf16.mxu1 %v5302_v60  ;;  %v5366_v53 = vsel %vm1322_vm8, %v5361_v35, %v5365_v21 }
 0x1fd   : > { %v5374_v23 = vsel %vm1322_vm8, %v5369_v25, %v5373_v7 }
 0x200   : > { %6694 = vmatmul.mubr.bf16.gmra.mrb[60].mxu0 %v3234_v45  ;;  %v5377_v45 = vor.u32 %v5375_v47, %v5373_v7 }
 0x201   : > { %6713 = vmatprep.mubr.bf16.mxu0 %v8835_v12  ;;  %v5264_v12 = vsel %vm2555_vm6, %v8914_v40, 0  ;;  %vm9414_vm6 = vcmp.ne.s16.totalorder %v9413_v26, 0 }
 0x202   : > { %v5347_v55 = vshll.u32 %v5264_v12, 16  ;;  %v5351_v52 = vshrl.u32 %v5264_v12, 16  ;;  %v5268_v34 = vsel %vm9414_vm6, %v8960_v20, 0  ;;  %v9417_v20 = vld [vmem:[#allocation27_spill] sm:$0xff] }
 0x203   : > { %6906 = vmatmul.mubr.bf16.vlgmr.msra.gmra.mrb[28].mxu1 %v5310_v56  ;;  %v5379_v44 = vshll.u32 %v5268_v34, 16  ;;  %vm9418_vm0 = vcmp.ne.s16.totalorder %v9417_v20, 0  ;;  %v5383_v56 = vshrl.u32 %v5268_v34, 16 }
 0x204   : > { %6909 = vmatprep.mubr.bf16.mxu1 %v5318_v15  ;;  %v5349_v40 = vrot.slane %v5347_v55, 1  ;;  %v5270_v5 = vsel %vm9418_vm0, %v8980_v57, 0  ;;  %v9419_v15 = vld [vmem:[#allocation28_spill] sm:$0xff]  ;;  %v9421_v57 = vld [vmem:[#allocation29_spill] sm:$0xff] }
 0x205   : > { %v5381_v22 = vrot.slane %v5379_v44, 1  ;;  %v5395_v29 = vshll.u32 %v5270_v5, 16  ;;  %vm9420_vm9 = vcmp.ne.s16.totalorder %v9419_v15, 0  ;;  %vm9422_vm10 = vcmp.ne.s16.totalorder %v9421_v57, 0 }
 0x206   : > { %v5350_v46 = vsel %vm1322_vm8, %v5345_v49, %v5349_v40  ;;  %v5353_v24 = vor.u32 %v5351_v52, %v5349_v40  ;;  %v5271_v2 = vsel %vm9420_vm9, %v8992_v61, 0  ;;  %v5272_v51 = vsel %vm9422_vm10, %v8830_v39, 0 }
 0x207   : > { %v5382_v4 = vsel %vm1322_vm8, %v5377_v45, %v5381_v22  ;;  %v5385_v31 = vor.u32 %v5383_v56, %v5381_v22  ;;  %v5397_v63 = vrot.slane %v5395_v29, 1  ;;  %v5403_v18 = vshll.u32 %v5271_v2, 16  ;;  %v9118_v29 = vld [vmem:[%s9224_s4] ss:$0 sm:$0xff] }
 0x208   : > { %6714 = vmatmul.mubr.bf16.vlgmr.msra.gmra.mrb[32].mxu0 %v8844_v30  ;;  %v5358_v60 = vsel %vm1322_vm8, %v5353_v24, %v5357_v16  ;;  %v5411_v1 = vshll.u32 %v5272_v51, 16  ;;  %v5399_v61 = vshrl.u32 %v5270_v5, 16  ;;  %v5415_v8 = vshrl.u32 %v5272_v51, 16 }
 0x209   : > { %v5390_v43 = vsel %vm1322_vm8, %v5385_v31, %v5389_v42  ;;  %v5398_v12 = vsel %vm1322_vm8, %v5393_v17, %v5397_v63  ;;  %v5405_v37 = vrot.slane %v5403_v18, 1 }
 0x20a   : > { %v5401_v55 = vor.u32 %v5399_v61, %v5397_v63  ;;  %v5413_v48 = vrot.slane %v5411_v1, 1 }
 0x20b   : > { %6910 = vmatmul.mubr.bf16.gmra.mrb[0].mxu1 %v5326_v36  ;;  %v5407_v36 = vshrl.u32 %v5271_v2, 16 }
 0x20c   : > { %6913 = vmatprep.mubr.bf16.mxu1 %v5334_v50  ;;  %v5273_v50 = vsel %vm2564_vm5, %v5256_v58, 0  ;;  %v5406_v32 = vsel %vm1322_vm8, %v5401_v55, %v5405_v37  ;;  %v5417_v13 = vor.u32 %v5415_v8, %v5413_v48 }
 0x20d   : > { %v5409_v0 = vor.u32 %v5407_v36, %v5405_v37  ;;  %v5419_v39 = vshll.u32 %v5273_v50, 16 }
 0x20f   : > { %v5414_v33 = vsel %vm1322_vm8, %v5409_v0, %v5413_v48  ;;  %v5421_v40 = vrot.slane %v5419_v39, 1 }
 0x211   : > { %v5422_v30 = vsel %vm1322_vm8, %v5417_v13, %v5421_v40 }
 0x213   : > { %6914 = vmatmul.mubr.bf16.gmra.mrb[4].mxu1 %v5342_v6 }
 0x214   : > { %6917 = vmatprep.mubr.bf16.mxu1 %v5350_v46 }
 0x21b   : > { %6918 = vmatmul.mubr.bf16.gmra.mrb[8].mxu1 %v5358_v60 }
 0x21c   : > { %6921 = vmatprep.mubr.bf16.mxu1 %v5366_v53 }
 0x223   : > { %6922 = vmatmul.mubr.bf16.gmra.mrb[12].mxu1 %v5374_v23 }
 0x224   : > { %6925 = vmatprep.mubr.bf16.mxu1 %v5382_v4 }
 0x22b   : > { %6926 = vmatmul.mubr.bf16.gmra.mrb[16].mxu1 %v5390_v43 }
 0x22c   : > { %6929 = vmatprep.mubr.bf16.mxu1 %v5398_v12 }
 0x233   : > { %6930 = vmatmul.mubr.bf16.gmra.mrb[20].mxu1 %v5406_v32 }
 0x234   : > { %6933 = vmatprep.mubr.bf16.mxu1 %v5414_v33 }
 0x23b   : > { %6934 = vmatmul.mubr.bf16.gmra.mrb[24].mxu1 %v5422_v30 }
 0x2a3   : > { %v6671_v10 = vpop.f32.mrb[36].mxu0 }
 0x2a4   : > { %v3349_v49 = vpop.f32.mrb[37].mxu0 }
 0x2a5   : > { %v6672_v28 = vpop.f32.mrb[38].mxu0 }
 0x2a6   : > { %v3352_v27 = vpop.f32.mrb[39].mxu0 }
 0x2ab   : > { %v6675_v6 = vpop.f32.mrb[40].mxu0 }
 0x2ac   : > { %v3365_v46 = vpop.f32.mrb[41].mxu0 }
 0x2ad   : > { %v6676_v54 = vpop.f32.mrb[42].mxu0 }
 0x2ae   : > { %v9073_v52 = vpop.f32.mrb[43].mxu0 }
 0x2b3   : > { %v9075_v16 = vpop.f32.mrb[44].mxu0 }
 0x2b4   : > { %v9077_v24 = vpop.f32.mrb[45].mxu0 }
 0x2b5   : > { %v9079_v9 = vpop.f32.mrb[46].mxu0 }
 0x2b6   : > { %v9081_v41 = vpop.f32.mrb[47].mxu0 }
 0x2bb   : > { %v9083_v38 = vpop.f32.mrb[48].mxu0 }
 0x2bc   : > { %v9085_v21 = vpop.f32.mrb[49].mxu0 }
 0x2bd   : > { %v9087_v26 = vpop.f32.mrb[50].mxu0 }
 0x2be   : > { %v9089_v34 = vpop.f32.mrb[51].mxu0 }
 0x2c3   : > { %v9091_v35 = vpop.f32.mrb[52].mxu0 }
 0x2c4   : > { %v9093_v59 = vpop.f32.mrb[53].mxu0 }
 0x2c5   : > { %v9095_v60 = vpop.f32.mrb[54].mxu0 }
 0x2c6   : > { %v9097_v53 = vpop.f32.mrb[55].mxu0 }
 0x2cb   : > { %v9099_v44 = vpop.f32.mrb[56].mxu0 }
 0x2cc   : > { %v9101_v14 = vpop.f32.mrb[57].mxu0 }
 0x2cd   : > { %v9103_v7 = vpop.f32.mrb[58].mxu0 }
 0x2ce   : > { %v9105_v25 = vpop.f32.mrb[59].mxu0 }
 0x2d3   : > { %v9107_v3 = vpop.f32.mrb[60].mxu0 }
 0x2d4   : > { %v9109_v62 = vpop.f32.mrb[61].mxu0 }
 0x2d5   : > { %v9111_v22 = vpop.f32.mrb[62].mxu0 }
 0x2d6   : > { %v6907_v47 = vpop.f32.mrb[28].mxu1  ;;  %v9113_v5 = vpop.f32.mrb[63].mxu0 }
 0x2d7   : > { %v5521_v20 = vpop.f32.mrb[29].mxu1 }
 0x2d8   : > { %v6908_v45 = vpop.f32.mrb[30].mxu1 }
 0x2d9   : > { %v5524_v11 = vpop.f32.mrb[31].mxu1 }
 0x2db   : > { %v6715_v23 = vpop.f32.mrb[32].mxu0 }
 0x2dc   : > { %v6953_v4 = vadd.f32 %v6907_v47, %v6715_v23  ;;  %v3671_v56 = vpop.f32.mrb[33].mxu0 }
 0x2dd   : > { %v6954_v15 = vadd.f32 %v5521_v20, %v3671_v56  ;;  %v6716_v42 = vpop.f32.mrb[34].mxu0 }
 0x2de   : > { %v6911_v2 = vpop.f32.mrb[0].mxu1  ;;  %v6955_v19 = vadd.f32 %v6908_v45, %v6716_v42  ;;  %v3674_v18 = vpop.f32.mrb[35].mxu0  ;;  %v5785_v37 = vadd.f32 %v6953_v4, %v9118_v29 }
 0x2df   : > { %v6957_v31 = vadd.f32 %v6911_v2, %v6671_v10  ;;  %v5537_v63 = vpop.f32.mrb[1].mxu1  ;;  %v5783_v57 = vadd.f32 %v6954_v15, %v9118_v29  ;;  %v6956_v17 = vadd.f32 %v5524_v11, %v3674_v18 }
 0x2e0   : > { %v6958_v51 = vadd.f32 %v5537_v63, %v3349_v49  ;;  %v6912_v43 = vpop.f32.mrb[2].mxu1  ;;  %v5786_v50 = vadd.f32 %v6955_v19, %v9118_v29  ;;  %v5817_v0 = vmax.f32 %v5785_v37, 0.0 }
 0x2e1   : > { %v6959_v58 = vadd.f32 %v6912_v43, %v6672_v28  ;;  %v5540_v12 = vpop.f32.mrb[3].mxu1  ;;  %v5784_v1 = vadd.f32 %v6956_v17, %v9118_v29  ;;  %v5815_v36 = vmax.f32 %v5783_v57, 0.0 }
 0x2e2   : > { %v6960_v61 = vadd.f32 %v5540_v12, %v3352_v27  ;;  %v5787_v48 = vadd.f32 %v6958_v51, %v9118_v29  ;;  %v5818_v13 = vmax.f32 %v5786_v50, 0.0  ;;  %v5789_v27 = vadd.f32 %v6957_v31, %v9118_v29 }
 0x2e3   : > { %v5816_v55 = vmax.f32 %v5784_v1, 0.0  ;;  %v5790_v23 = vadd.f32 %v6959_v58, %v9118_v29 }
 0x2e4   : > { %v5788_v30 = vadd.f32 %v6960_v61, %v9118_v29  ;;  %v5819_v20 = vmax.f32 %v5787_v48, 0.0 }
 0x2e5   : > { %v5847_v8 = vadd.f32 %v5816_v55, %v5815_v36 }
 0x2e6   : > { %v6915_v39 = vpop.f32.mrb[4].mxu1  ;;  %v5820_v4 = vmax.f32 %v5788_v30, 0.0 }
 0x2e7   : > { %v6961_v32 = vadd.f32 %v6915_v39, %v6675_v6  ;;  %v5553_v33 = vpop.f32.mrb[5].mxu1  ;;  %v5848_v40 = vadd.f32 %v5847_v8, %v5817_v0  ;;  %v5821_v6 = vmax.f32 %v5789_v27, 0.0 }
 0x2e8   : > { %v6962_v10 = vadd.f32 %v5553_v33, %v3365_v46  ;;  %v6916_v49 = vpop.f32.mrb[6].mxu1 }
 0x2e9   : > { %v6963_v28 = vadd.f32 %v6916_v49, %v6676_v54  ;;  %v5556_v47 = vpop.f32.mrb[7].mxu1  ;;  %v5849_v45 = vadd.f32 %v5848_v40, %v5818_v13  ;;  %v5822_v54 = vmax.f32 %v5790_v23, 0.0  ;;  %v5793_v17 = vadd.f32 %v6961_v32, %v9118_v29 }
 0x2ea   : > { %v6964_v11 = vadd.f32 %v5556_v47, %v9073_v52  ;;  %v5791_v2 = vadd.f32 %v6962_v10, %v9118_v29 }
 0x2eb   : > { %v5850_v56 = vadd.f32 %v5849_v45, %v5819_v20  ;;  %v5825_v61 = vmax.f32 %v5793_v17, 0.0 }
 0x2ec   : > { %v5792_v31 = vadd.f32 %v6964_v11, %v9118_v29  ;;  %v5823_v43 = vmax.f32 %v5791_v2, 0.0 }
 0x2ed   : > { %v5851_v15 = vadd.f32 %v5850_v56, %v5820_v4 }
 0x2ee   : > { %v6919_v42 = vpop.f32.mrb[8].mxu1  ;;  %v5824_v1 = vmax.f32 %v5792_v31, 0.0 }
 0x2ef   : > { %v6965_v46 = vadd.f32 %v6919_v42, %v9075_v16  ;;  %v5569_v19 = vpop.f32.mrb[9].mxu1  ;;  %v5852_v63 = vadd.f32 %v5851_v15, %v5821_v6  ;;  %v5794_v16 = vadd.f32 %v6963_v28, %v9118_v29 }
 0x2f0   : > { %v6966_v18 = vadd.f32 %v5569_v19, %v9077_v24  ;;  %v6920_v57 = vpop.f32.mrb[10].mxu1 }
 0x2f1   : > { %v6967_v52 = vadd.f32 %v6920_v57, %v9079_v9  ;;  %v5572_v51 = vpop.f32.mrb[11].mxu1  ;;  %v5853_v58 = vadd.f32 %v5852_v63, %v5822_v54  ;;  %v5826_v9 = vmax.f32 %v5794_v16, 0.0  ;;  %v5797_v13 = vadd.f32 %v6965_v46, %v9118_v29 }
 0x2f2   : > { %v6968_v12 = vadd.f32 %v5572_v51, %v9081_v41  ;;  %v5795_v50 = vadd.f32 %v6966_v18, %v9118_v29 }
 0x2f3   : > { %v5854_v37 = vadd.f32 %v5853_v58, %v5823_v43  ;;  %v5829_v47 = vmax.f32 %v5797_v13, 0.0 }
 0x2f4   : > { %v5796_v8 = vadd.f32 %v6968_v12, %v9118_v29  ;;  %v5827_v40 = vmax.f32 %v5795_v50, 0.0 }
 0x2f5   : > { %v5855_v36 = vadd.f32 %v5854_v37, %v5824_v1 }
 0x2f6   : > { %v6923_v55 = vpop.f32.mrb[12].mxu1  ;;  %v5828_v28 = vmax.f32 %v5796_v8, 0.0 }
 0x2f7   : > { %v6969_v24 = vadd.f32 %v6923_v55, %v9083_v38  ;;  %v5585_v0 = vpop.f32.mrb[13].mxu1  ;;  %v5856_v48 = vadd.f32 %v5855_v36, %v5825_v61  ;;  %v5798_v38 = vadd.f32 %v6967_v52, %v9118_v29 }
 0x2f8   : > { %v6970_v39 = vadd.f32 %v5585_v0, %v9085_v21  ;;  %v6924_v32 = vpop.f32.mrb[14].mxu1 }
 0x2f9   : > { %v6971_v41 = vadd.f32 %v6924_v32, %v9087_v26  ;;  %v5588_v33 = vpop.f32.mrb[15].mxu1  ;;  %v5857_v30 = vadd.f32 %v5856_v48, %v5826_v9  ;;  %v5830_v26 = vmax.f32 %v5798_v38, 0.0  ;;  %v5801_v2 = vadd.f32 %v6969_v24, %v9118_v29 }
 0x2fa   : > { %v6972_v10 = vadd.f32 %v5588_v33, %v9089_v34  ;;  %v5799_v20 = vadd.f32 %v6970_v39, %v9118_v29 }
 0x2fb   : > { %v5858_v49 = vadd.f32 %v5857_v30, %v5827_v40  ;;  %v5833_v31 = vmax.f32 %v5801_v2, 0.0 }
 0x2fc   : > { %v5800_v4 = vadd.f32 %v6972_v10, %v9118_v29  ;;  %v5831_v42 = vmax.f32 %v5799_v20, 0.0 }
 0x2fd   : > { %v5859_v27 = vadd.f32 %v5858_v49, %v5828_v28 }
 0x2fe   : > { %v6927_v45 = vpop.f32.mrb[16].mxu1  ;;  %v5832_v63 = vmax.f32 %v5800_v4, 0.0 }
 0x2ff   : > { %v6973_v21 = vadd.f32 %v6927_v45, %v9091_v35  ;;  %v5601_v11 = vpop.f32.mrb[17].mxu1  ;;  %v5860_v23 = vadd.f32 %v5859_v27, %v5829_v47  ;;  %v5802_v35 = vadd.f32 %v6971_v41, %v9118_v29 }
 0x300   : > { %v6974_v56 = vadd.f32 %v5601_v11, %v9093_v59  ;;  %v6928_v6 = vpop.f32.mrb[18].mxu1 }
 0x301   : > { %v6975_v34 = vadd.f32 %v6928_v6, %v9095_v60  ;;  %v5604_v15 = vpop.f32.mrb[19].mxu1  ;;  %v5861_v46 = vadd.f32 %v5860_v23, %v5830_v26  ;;  %v5834_v60 = vmax.f32 %v5802_v35, 0.0  ;;  %v5805_v16 = vadd.f32 %v6973_v21, %v9118_v29 }
 0x302   : > { %v6976_v19 = vadd.f32 %v5604_v15, %v9097_v53  ;;  %v5803_v57 = vadd.f32 %v6974_v56, %v9118_v29 }
 0x303   : > { %v5862_v54 = vadd.f32 %v5861_v46, %v5831_v42  ;;  %v5837_v24 = vmax.f32 %v5805_v16, 0.0 }
 0x304   : > { %v5804_v43 = vadd.f32 %v6976_v19, %v9118_v29  ;;  %v5835_v1 = vmax.f32 %v5803_v57, 0.0 }
 0x305   : > { %v5863_v18 = vadd.f32 %v5862_v54, %v5832_v63 }
 0x306   : > { %v6931_v52 = vpop.f32.mrb[20].mxu1  ;;  %v5836_v55 = vmax.f32 %v5804_v43, 0.0 }
 0x307   : > { %v6977_v59 = vadd.f32 %v6931_v52, %v9099_v44  ;;  %v5617_v51 = vpop.f32.mrb[21].mxu1  ;;  %v5864_v17 = vadd.f32 %v5863_v18, %v5833_v31  ;;  %v5806_v44 = vadd.f32 %v6975_v34, %v9118_v29 }
 0x308   : > { %v6978_v58 = vadd.f32 %v5617_v51, %v9101_v14  ;;  %v6932_v12 = vpop.f32.mrb[22].mxu1 }
 0x309   : > { %v6979_v53 = vadd.f32 %v6932_v12, %v9103_v7  ;;  %v5620_v37 = vpop.f32.mrb[23].mxu1  ;;  %v5865_v61 = vadd.f32 %v5864_v17, %v5834_v60  ;;  %v5838_v7 = vmax.f32 %v5806_v44, 0.0  ;;  %v5809_v40 = vadd.f32 %v6977_v59, %v9118_v29 }
 0x30a   : > { %v6980_v36 = vadd.f32 %v5620_v37, %v9105_v25  ;;  %v5807_v9 = vadd.f32 %v6978_v58, %v9118_v29 }
 0x30b   : > { %v5866_v50 = vadd.f32 %v5865_v61, %v5835_v1  ;;  %v5841_v47 = vmax.f32 %v5809_v40, 0.0 }
 0x30c   : > { %v5808_v32 = vadd.f32 %v6980_v36, %v9118_v29  ;;  %v5839_v30 = vmax.f32 %v5807_v9, 0.0 }
 0x30d   : > { %v5867_v0 = vadd.f32 %v5866_v50, %v5836_v55 }
 0x30e   : > { %v6935_v48 = vpop.f32.mrb[24].mxu1  ;;  %v5840_v28 = vmax.f32 %v5808_v32, 0.0 }
 0x30f   : > { %v6981_v14 = vadd.f32 %v6935_v48, %v9107_v3  ;;  %v5633_v8 = vpop.f32.mrb[25].mxu1  ;;  %v5868_v39 = vadd.f32 %v5867_v0, %v5837_v24  ;;  %v5810_v3 = vadd.f32 %v6979_v53, %v9118_v29 }
 0x310   : > { %v6982_v41 = vadd.f32 %v5633_v8, %v9109_v62  ;;  %v6936_v33 = vpop.f32.mrb[26].mxu1 }
 0x311   : > { %v6983_v25 = vadd.f32 %v6936_v33, %v9111_v22  ;;  %v5636_v13 = vpop.f32.mrb[27].mxu1  ;;  %v5869_v10 = vadd.f32 %v5868_v39, %v5838_v7  ;;  %v5842_v45 = vmax.f32 %v5810_v3, 0.0  ;;  %v5813_v21 = vadd.f32 %v6981_v14, %v9118_v29 }
 0x312   : > { %v6984_v49 = vadd.f32 %v5636_v13, %v9113_v5  ;;  %v5811_v20 = vadd.f32 %v6982_v41, %v9118_v29 }
 0x313   : > { %v5870_v38 = vadd.f32 %v5869_v10, %v5839_v30  ;;  %v5814_v5 = vadd.f32 %v6983_v25, %v9118_v29  ;;  %v5845_v56 = vmax.f32 %v5813_v21, 0.0 }
 0x314   : > { %v5812_v22 = vadd.f32 %v6984_v49, %v9118_v29  ;;  %v5843_v11 = vmax.f32 %v5811_v20, 0.0 }
 0x315   : > { %v5871_v27 = vadd.f32 %v5870_v38, %v5840_v28  ;;  %v5846_v34 = vmax.f32 %v5814_v5, 0.0 }
 0x316   : > { %v5844_v4 = vmax.f32 %v5812_v22, 0.0 }
 0x317   : > { %v5872_v62 = vadd.f32 %v5871_v27, %v5841_v47 }
 0x319   : > { %v5873_v26 = vadd.f32 %v5872_v62, %v5842_v45 }
 0x31b   : > { %v5874_v23 = vadd.f32 %v5873_v26, %v5843_v11 }
 0x31d   : > { %v5875_v6 = vadd.f32 %v5874_v23, %v5844_v4 }
 0x31f   : > { %v5876_v15 = vadd.f32 %v5875_v6, %v5845_v56 }
 0x321   : > { %v5877_v2 = vadd.f32 %v5876_v15, %v5846_v34 }
 0x323   : > { %v5878_v42 = vrot.slane %v5877_v2, 4 }
 0x325   : > { %v5879_v46 = vadd.f32 %v5878_v42, %v5877_v2 }
 0x327   : > { %v5880_v19 = vrot.slane %v5879_v46, 2 }
 0x329   : > { %v5881_v54 = vadd.f32 %v5880_v19, %v5879_v46 }
 0x32b   : > { %v5882_v35 = vrot.slane %v5881_v54, 1 }
 0x32d   : > { %v5883_v63 = vadd.f32 %v5882_v35, %v5881_v54 }
 0x32f   : > { %v5884_v31 = vmul.f32 0.00390625, %v5883_v63 }
 0x331   : > { %5885 = vst [vmem:[%s217_s6] sm:$0x1] %v5884_v31 }
 0x332   : > { %7365 = shalt.err (!%p7362_p3)
}
 0x333   : > { %s7366_s16 = scalar_lea.hbm %s9178_s10, 16  ;;  %s7370_s15 = scalar_lea.hbm %s9225_s5, 32 }
 0x334   : > { %p7367_p4 = scmp.ne.s32.totalorder %s9178_s10, %s7366_s16  ;;  %p7371_p9 = scmp.lt.u32.totalorder %s9178_s10, %s9225_s5 }
 0x335   : > { %p7372_p10 = scmp.lt.u32.totalorder %s7370_s15, %s7366_s16  ;;  %p7374_p12 = scmp.lt.u32.totalorder %s7366_s16, %s9178_s10 }
 0x336   : > { %p7368_p7 = pnand %p7367_p4, %p7487_p5 }
 0x337   : > { %p7373_p11 = por %p7372_p10, %p7371_p9 }
 0x338   : > { %p7369_p8 = pneg %p7368_p7 }
 0x339   : > { %p7375_p13 = por %p7374_p12, %p7373_p11 }
 0x33b   : > { %p7376_p0 = pnand %p7375_p13, %p7369_p8 }
 0x33d   : > { %7379 = shalt.err (!%p7376_p0)
}
 0x33e   : > { %7210 = dma.vmem_to_hbm [thread:$0]  (%p7487_p5), %s9180_s7, 16, %s9178_s10, %s5887_s11  }
 0x33f PF: > { %p7216_p1 = scmp.ge.s32.totalorder %s7414_s21, 2  ;;  %s5911_s30 = sand.u32 1, %s7402_s18  }
 0x340   : > { %s5912_s6 = scalar_lea.sflag [#allocation5], %s5911_s30 }
 0x341   : > { %p7213_p2 = pnand %p7216_p1, %p7491_p6 }
 0x343   : > { %7397 = dma.done.wait (!%p7213_p2), %s5912_s6, 16  }
 0x344   : > { %7399 = vsyncadd (!%p7213_p2), %s5912_s6, 4294967280  ;;  %p15_p3 = scmp.ge.s32.totalorder %s7474_s24, 4   ;;  %s9423_s18 = smov %s7406_s19 }
 0x345   : > { %s9424_s19 = smov %s7410_s20  ;;  %s9425_s20 = smov %s7485_s27 }
 0x346   : > { %s9426_s21 = smov %s7474_s24  ;;  %17 = sbr.rel (!%p15_p3) target bundleno = 3 (0x3), region = 83 }
 0x34d   :  { %5916 = vsyncpa [#allocation5], 1 }
 0x34e   :  { %5918 = vsyncpa [#allocation5 + $0x1], 1 }

</bundles_post_ra>
